<compile_context>
chip_gen: v5e
topology: v5e:2x2
jax: 0.10.0
libtpu: 0.0.40
codegen_flags: <defaults>
</compile_context>

<pallas_src>
import functools

import numpy as np
import jax
import jax.numpy as jnp
from jax.experimental import pallas as pl
from jax.experimental.pallas import tpu as pltpu


def _unpatchify_kernel(a_ref, b2_ref, x_ref, o_ref, *, precision):
    # a_ref : (p*H, p*p*nH)          stacked one-hot row selector (permutation)
    # b2_ref: (g*W, g*W)             fused column scatter for g rows at a time
    # x_ref : (1, p*p, tblk, nH, nW) patches for one (batch, t-block)
    # o_ref : (1, tblk, 1, H//g, g*W) lane-dense output frames
    _, _PP, Tblk, nH, nW = x_ref.shape
    M1, K1 = a_ref.shape
    GW = b2_ref.shape[0]
    Hg = o_ref.shape[3]
    gp = GW // nW                      # g * p

    # Hoist the loop-invariant selector loads out of the frame loop.
    A = a_ref[...]
    B2 = b2_ref[...]

    # ---- Stage 1: ONE stacked matmul per grid step --------------------------
    # RHS = the whole t-block concatenated along lanes, so N = Tblk*nW is
    # lane-dense instead of nW.  RHS rows are (channel, h'): a pure view when
    # nH is a multiple of the sublane count (nH >= 8); for smaller nH the
    # reshape still lowers correctly, just with a relayout.
    x2_all = jnp.concatenate(
        [x_ref[0, :, t, :, :].reshape(K1, nW) for t in range(Tblk)], axis=-1)
    r_all = jnp.dot(A, x2_all, preferred_element_type=jnp.float32,
                    precision=precision)                 # (p*H, Tblk*nW)
    # r_all[(kw*g + r%g)*(H//g) + r//g, t*nW + w'] = x[kh*p+kw, t, h', w']
    # with r = h'*p + kh.

    # ---- Stage 2: one fused column-scatter matmul + one full, unmasked
    # lane-dense tile store per frame ------------------------------------------
    for t in range(Tblk):
        r_t = r_all[:, t * nW:(t + 1) * nW]              # (p*H, nW)
        r3 = r_t.reshape(gp, Hg, nW)                     # [(kw, g-phase), H//g, w']
        rcat = jnp.concatenate([r3[k] for k in range(gp)], axis=-1)  # (H//g, g*W)
        frame = jnp.dot(rcat, B2, preferred_element_type=jnp.float32,
                        precision=precision)             # (H//g, g*W), lane-dense
        o_ref[0, t, 0, :, :] = frame.astype(o_ref.dtype)


def _largest_divisor_leq(n, cap):
    for c in range(min(n, cap), 0, -1):
        if n % c == 0:
            return c
    return 1


def _pick_tblk(B, T, cap=8):
    # Largest divisor of T not exceeding `cap` (a few hundred KiB of real
    # traffic per grid step), but keep >= 2 grid steps when possible so v7x's
    # two TensorCores both get work and DMA/compute can pipeline.
    tblk = _largest_divisor_leq(T, cap)
    if B == 1 and T >= 2 and T // tblk < 2:
        tblk = _largest_divisor_leq(T, T // 2)
    return tblk


def _build_selectors(p, out_size, g):
    # Deterministic 0/1 permutation selectors, built at trace time.
    H = W = out_size
    nH = nW = out_size // p
    A = np.zeros((p * H, p * p * nH), np.float32)
    for kw in range(p):
        for kh in range(p):
            for hp in range(nH):
                r = hp * p + kh
                m = (kw * g + (r % g)) * (H // g) + (r // g)
                A[m, (kh * p + kw) * nH + hp] = 1.0
    B2 = np.zeros((g * W, g * W), np.float32)
    for kw in range(p):
        for par in range(g):
            for wp in range(nW):
                B2[(kw * g + par) * nW + wp, par * W + wp * p + kw] = 1.0
    return A, B2


@functools.partial(jax.jit, static_argnames=("patch_size", "out_size", "exact"))
def unpatchify(x, patch_size=4, out_size=64, exact=True):
    B, newC, T, nH, nW = x.shape
    p = patch_size
    H = W = out_size
    assert out_size % p == 0, "out_size must be divisible by patch_size"
    assert newC == p * p, "fold with a single output channel requires newC == p*p"
    assert nH == out_size // p and nW == out_size // p

    # Fold g consecutive output rows into one stored row of width g*W (>= 128
    # lanes whenever H allows it) so stores are unmasked full tiles.
    g = 1
    while g * W < 128 and H % (g * 2) == 0:
        g *= 2

    A, B2 = _build_selectors(p, out_size, g)
    A = jnp.asarray(A)
    B2 = jnp.asarray(B2)

    tblk = _pick_tblk(B, T)
    precision = (jax.lax.Precision.HIGHEST if exact
                 else jax.lax.Precision.DEFAULT)

    out = pl.pallas_call(
        functools.partial(_unpatchify_kernel, precision=precision),
        out_shape=jax.ShapeDtypeStruct((B, T, 1, H // g, g * W), x.dtype),
        grid=(B, T // tblk),
        in_specs=[
            pl.BlockSpec((p * H, p * p * nH), lambda b, tb: (0, 0)),
            pl.BlockSpec((g * W, g * W), lambda b, tb: (0, 0)),
            pl.BlockSpec((1, p * p, tblk, nH, nW),
                         lambda b, tb: (b, 0, tb, 0, 0)),
        ],
        out_specs=pl.BlockSpec((1, tblk, 1, H // g, g * W),
                               lambda b, tb: (b, tb, 0, 0, 0)),
        compiler_params=pltpu.CompilerParams(
            dimension_semantics=("parallel", "parallel")),
    )(A, B2, x)

    # Free contiguous view back to the PyTorch output layout.
    return out.reshape(B, T, 1, H, W)


def _unpatchify_ref(x, p, out_size):
    # Pure-JAX reference mirroring the PyTorch nn.Fold semantics.
    B, newC, T, nH, nW = x.shape
    v = x.reshape(B, p, p, T, nH, nW)            # (B, kh, kw, T, h', w')
    v = v.transpose(0, 3, 4, 1, 5, 2)            # (B, T, h', kh, w', kw)
    return v.reshape(B, T, 1, nH * p, nW * p)


if __name__ == "__main__":
    key = jax.random.PRNGKey(0)
    patch_size, out_size = 4, 64
    B, T = 2, 2
    nH = nW = out_size // patch_size             # 16
    newC = patch_size * patch_size               # 16

    x = jax.random.normal(key, (B, newC, T, nH, nW), dtype=jnp.float32)

    out = unpatchify(x, patch_size=patch_size, out_size=out_size)
    out = jax.block_until_ready(out)

    ref = _unpatchify_ref(x, patch_size, out_size)
    assert out.shape == (B, T, 1, out_size, out_size)
    assert out.dtype == x.dtype
    assert jnp.allclose(out, ref, rtol=1e-6, atol=1e-6)

    print("KERNEL_OK")
</pallas_src>

<mosaic_0001>
module attributes {stable_mosaic.version = 11 : i64} {
  func.func @_unpatchify_kernel(%arg0: i32, %arg1: i32, %arg2: memref<256x256xf32, #tpu.memory_space<vmem>>, %arg3: memref<128x128xf32, #tpu.memory_space<vmem>>, %arg4: memref<1x16x2x16x16xf32, #tpu.memory_space<vmem>>, %arg5: memref<1x2x1x32x128xf32, #tpu.memory_space<vmem>>) attributes {dimension_semantics = [#tpu.dimension_semantics<parallel>, #tpu.dimension_semantics<parallel>], iteration_bounds = array<i64: 2, 1>, scalar_prefetch = 0 : i64, scratch_operands = 0 : i64, tpu.core_type = #tpu.core_type<tc>, window_params = [{pipeline_mode = #tpu.pipeline_mode<synchronous>, transform_indices = @transform_0, window_bounds = array<i64: 256, 256>}, {pipeline_mode = #tpu.pipeline_mode<synchronous>, transform_indices = @transform_1, window_bounds = array<i64: 128, 128>}, {transform_indices = @transform_2, window_bounds = array<i64: 1, 16, 2, 16, 16>}, {transform_indices = @transform_3, window_bounds = array<i64: 1, 2, 1, 32, 128>}]} {
    %c0 = arith.constant 0 : index
    %c0_0 = arith.constant 0 : index
    %0 = vector.load %arg2[%c0, %c0_0] : memref<256x256xf32, #tpu.memory_space<vmem>>, vector<256x256xf32>
    %c0_1 = arith.constant 0 : index
    %c0_2 = arith.constant 0 : index
    %1 = vector.load %arg3[%c0_1, %c0_2] : memref<128x128xf32, #tpu.memory_space<vmem>>, vector<128x128xf32>
    %c0_3 = arith.constant 0 : index
    %c0_4 = arith.constant 0 : index
    %c0_5 = arith.constant 0 : index
    %c0_6 = arith.constant 0 : index
    %c0_7 = arith.constant 0 : index
    %2 = vector.load %arg4[%c0_3, %c0_4, %c0_5, %c0_6, %c0_7] : memref<1x16x2x16x16xf32, #tpu.memory_space<vmem>>, vector<1x16x1x16x16xf32>
    %3 = vector.shape_cast %2 : vector<1x16x1x16x16xf32> to vector<16x16x16xf32>
    %4 = vector.shape_cast %3 : vector<16x16x16xf32> to vector<256x16xf32>
    %c0_8 = arith.constant 0 : index
    %c0_9 = arith.constant 0 : index
    %c1 = arith.constant 1 : index
    %c0_10 = arith.constant 0 : index
    %c0_11 = arith.constant 0 : index
    %5 = vector.load %arg4[%c0_8, %c0_9, %c1, %c0_10, %c0_11] : memref<1x16x2x16x16xf32, #tpu.memory_space<vmem>>, vector<1x16x1x16x16xf32>
    %6 = vector.shape_cast %5 : vector<1x16x1x16x16xf32> to vector<16x16x16xf32>
    %7 = vector.shape_cast %6 : vector<16x16x16xf32> to vector<256x16xf32>
    %8 = tpu.concatenate %4, %7 in 1 : vector<256x16xf32>, vector<256x16xf32> -> vector<256x32xf32>
    %cst = arith.constant dense<0.000000e+00> : vector<256x32xf32>
    %9 = tpu.matmul %0, %8, %cst {dimension_numbers = #tpu.dot_dimension_numbers<[1], [0], [0], [1], [0, 0, 1, 1], [], []>, precision = #tpu.contract_precision<fp32>} : vector<256x256xf32>, vector<256x32xf32>, vector<256x32xf32> -> vector<256x32xf32>
    %10 = vector.extract_strided_slice %9 {offsets = [0, 0], sizes = [256, 16], strides = [1, 1]} : vector<256x32xf32> to vector<256x16xf32>
    %11 = vector.shape_cast %10 : vector<256x16xf32> to vector<8x32x16xf32>
    %12 = vector.extract_strided_slice %11 {offsets = [0, 0, 0], sizes = [1, 32, 16], strides = [1, 1, 1]} : vector<8x32x16xf32> to vector<1x32x16xf32>
    %13 = vector.shape_cast %12 : vector<1x32x16xf32> to vector<32x16xf32>
    %14 = vector.extract_strided_slice %11 {offsets = [1, 0, 0], sizes = [1, 32, 16], strides = [1, 1, 1]} : vector<8x32x16xf32> to vector<1x32x16xf32>
    %15 = vector.shape_cast %14 : vector<1x32x16xf32> to vector<32x16xf32>
    %16 = vector.extract_strided_slice %11 {offsets = [2, 0, 0], sizes = [1, 32, 16], strides = [1, 1, 1]} : vector<8x32x16xf32> to vector<1x32x16xf32>
    %17 = vector.shape_cast %16 : vector<1x32x16xf32> to vector<32x16xf32>
    %18 = vector.extract_strided_slice %11 {offsets = [3, 0, 0], sizes = [1, 32, 16], strides = [1, 1, 1]} : vector<8x32x16xf32> to vector<1x32x16xf32>
    %19 = vector.shape_cast %18 : vector<1x32x16xf32> to vector<32x16xf32>
    %20 = vector.extract_strided_slice %11 {offsets = [4, 0, 0], sizes = [1, 32, 16], strides = [1, 1, 1]} : vector<8x32x16xf32> to vector<1x32x16xf32>
    %21 = vector.shape_cast %20 : vector<1x32x16xf32> to vector<32x16xf32>
    %22 = vector.extract_strided_slice %11 {offsets = [5, 0, 0], sizes = [1, 32, 16], strides = [1, 1, 1]} : vector<8x32x16xf32> to vector<1x32x16xf32>
    %23 = vector.shape_cast %22 : vector<1x32x16xf32> to vector<32x16xf32>
    %24 = vector.extract_strided_slice %11 {offsets = [6, 0, 0], sizes = [1, 32, 16], strides = [1, 1, 1]} : vector<8x32x16xf32> to vector<1x32x16xf32>
    %25 = vector.shape_cast %24 : vector<1x32x16xf32> to vector<32x16xf32>
    %26 = vector.extract_strided_slice %11 {offsets = [7, 0, 0], sizes = [1, 32, 16], strides = [1, 1, 1]} : vector<8x32x16xf32> to vector<1x32x16xf32>
    %27 = vector.shape_cast %26 : vector<1x32x16xf32> to vector<32x16xf32>
    %28 = tpu.concatenate %13, %15, %17, %19, %21, %23, %25, %27 in 1 : vector<32x16xf32>, vector<32x16xf32>, vector<32x16xf32>, vector<32x16xf32>, vector<32x16xf32>, vector<32x16xf32>, vector<32x16xf32>, vector<32x16xf32> -> vector<32x128xf32>
    %cst_12 = arith.constant dense<0.000000e+00> : vector<32x128xf32>
    %29 = tpu.matmul %28, %1, %cst_12 {dimension_numbers = #tpu.dot_dimension_numbers<[1], [0], [0], [1], [0, 0, 1, 1], [], []>, precision = #tpu.contract_precision<fp32>} : vector<32x128xf32>, vector<128x128xf32>, vector<32x128xf32> -> vector<32x128xf32>
    %c0_13 = arith.constant 0 : index
    %c0_14 = arith.constant 0 : index
    %c0_15 = arith.constant 0 : index
    %c0_16 = arith.constant 0 : index
    %c0_17 = arith.constant 0 : index
    %30 = vector.load %arg5[%c0_13, %c0_14, %c0_15, %c0_16, %c0_17] : memref<1x2x1x32x128xf32, #tpu.memory_space<vmem>>, vector<1x1x1x32x128xf32>
    %31 = vector.shape_cast %30 : vector<1x1x1x32x128xf32> to vector<32x128xf32>
    %32 = vector.shape_cast %29 : vector<32x128xf32> to vector<1x1x1x32x128xf32>
    tpu.vector_store %arg5[%c0_13, %c0_14, %c0_15, %c0_16, %c0_17], %32 {strides = array<i32>} : memref<1x2x1x32x128xf32, #tpu.memory_space<vmem>>, vector<1x1x1x32x128xf32>,
    %33 = vector.extract_strided_slice %9 {offsets = [0, 16], sizes = [256, 16], strides = [1, 1]} : vector<256x32xf32> to vector<256x16xf32>
    %34 = vector.shape_cast %33 : vector<256x16xf32> to vector<8x32x16xf32>
    %35 = vector.extract_strided_slice %34 {offsets = [0, 0, 0], sizes = [1, 32, 16], strides = [1, 1, 1]} : vector<8x32x16xf32> to vector<1x32x16xf32>
    %36 = vector.shape_cast %35 : vector<1x32x16xf32> to vector<32x16xf32>
    %37 = vector.extract_strided_slice %34 {offsets = [1, 0, 0], sizes = [1, 32, 16], strides = [1, 1, 1]} : vector<8x32x16xf32> to vector<1x32x16xf32>
    %38 = vector.shape_cast %37 : vector<1x32x16xf32> to vector<32x16xf32>
    %39 = vector.extract_strided_slice %34 {offsets = [2, 0, 0], sizes = [1, 32, 16], strides = [1, 1, 1]} : vector<8x32x16xf32> to vector<1x32x16xf32>
    %40 = vector.shape_cast %39 : vector<1x32x16xf32> to vector<32x16xf32>
    %41 = vector.extract_strided_slice %34 {offsets = [3, 0, 0], sizes = [1, 32, 16], strides = [1, 1, 1]} : vector<8x32x16xf32> to vector<1x32x16xf32>
    %42 = vector.shape_cast %41 : vector<1x32x16xf32> to vector<32x16xf32>
    %43 = vector.extract_strided_slice %34 {offsets = [4, 0, 0], sizes = [1, 32, 16], strides = [1, 1, 1]} : vector<8x32x16xf32> to vector<1x32x16xf32>
    %44 = vector.shape_cast %43 : vector<1x32x16xf32> to vector<32x16xf32>
    %45 = vector.extract_strided_slice %34 {offsets = [5, 0, 0], sizes = [1, 32, 16], strides = [1, 1, 1]} : vector<8x32x16xf32> to vector<1x32x16xf32>
    %46 = vector.shape_cast %45 : vector<1x32x16xf32> to vector<32x16xf32>
    %47 = vector.extract_strided_slice %34 {offsets = [6, 0, 0], sizes = [1, 32, 16], strides = [1, 1, 1]} : vector<8x32x16xf32> to vector<1x32x16xf32>
    %48 = vector.shape_cast %47 : vector<1x32x16xf32> to vector<32x16xf32>
    %49 = vector.extract_strided_slice %34 {offsets = [7, 0, 0], sizes = [1, 32, 16], strides = [1, 1, 1]} : vector<8x32x16xf32> to vector<1x32x16xf32>
    %50 = vector.shape_cast %49 : vector<1x32x16xf32> to vector<32x16xf32>
    %51 = tpu.concatenate %36, %38, %40, %42, %44, %46, %48, %50 in 1 : vector<32x16xf32>, vector<32x16xf32>, vector<32x16xf32>, vector<32x16xf32>, vector<32x16xf32>, vector<32x16xf32>, vector<32x16xf32>, vector<32x16xf32> -> vector<32x128xf32>
    %cst_18 = arith.constant dense<0.000000e+00> : vector<32x128xf32>
    %52 = tpu.matmul %51, %1, %cst_18 {dimension_numbers = #tpu.dot_dimension_numbers<[1], [0], [0], [1], [0, 0, 1, 1], [], []>, precision = #tpu.contract_precision<fp32>} : vector<32x128xf32>, vector<128x128xf32>, vector<32x128xf32> -> vector<32x128xf32>
    %c0_19 = arith.constant 0 : index
    %c1_20 = arith.constant 1 : index
    %c0_21 = arith.constant 0 : index
    %c0_22 = arith.constant 0 : index
    %c0_23 = arith.constant 0 : index
    %53 = vector.load %arg5[%c0_19, %c1_20, %c0_21, %c0_22, %c0_23] : memref<1x2x1x32x128xf32, #tpu.memory_space<vmem>>, vector<1x1x1x32x128xf32>
    %54 = vector.shape_cast %53 : vector<1x1x1x32x128xf32> to vector<32x128xf32>
    %55 = vector.shape_cast %52 : vector<32x128xf32> to vector<1x1x1x32x128xf32>
    tpu.vector_store %arg5[%c0_19, %c1_20, %c0_21, %c0_22, %c0_23], %55 {strides = array<i32>} : memref<1x2x1x32x128xf32, #tpu.memory_space<vmem>>, vector<1x1x1x32x128xf32>,
    return
  }
  func.func @transform_0(%arg0: i32, %arg1: i32) -> (i32, i32) {
    %c0_i32 = arith.constant 0 : i32
    %c0_i32_0 = arith.constant 0 : i32
    %c0_i32_1 = arith.constant 0 : i32
    return %c0_i32, %c0_i32_0 : i32, i32
  }
  func.func @transform_1(%arg0: i32, %arg1: i32) -> (i32, i32) {
    %c0_i32 = arith.constant 0 : i32
    %c0_i32_0 = arith.constant 0 : i32
    %c0_i32_1 = arith.constant 0 : i32
    return %c0_i32, %c0_i32_0 : i32, i32
  }
  func.func @transform_2(%arg0: i32, %arg1: i32) -> (i32, i32, i32, i32, i32) {
    %c0_i32 = arith.constant 0 : i32
    %c0_i32_0 = arith.constant 0 : i32
    %c0_i32_1 = arith.constant 0 : i32
    %c0_i32_2 = arith.constant 0 : i32
    return %arg0, %c0_i32, %arg1, %c0_i32_0, %c0_i32_1 : i32, i32, i32, i32, i32
  }
  func.func @transform_3(%arg0: i32, %arg1: i32) -> (i32, i32, i32, i32, i32) {
    %c0_i32 = arith.constant 0 : i32
    %c0_i32_0 = arith.constant 0 : i32
    %c0_i32_1 = arith.constant 0 : i32
    %c0_i32_2 = arith.constant 0 : i32
    return %arg0, %arg1, %c0_i32, %c0_i32_0, %c0_i32_1 : i32, i32, i32, i32, i32
  }
}

</mosaic_0001>

<bundles_post_ra>
// kernel: unpatchify.1
= control target key start
LH: loop header
LB: loop body
LE: loop exit
PB: predicated region body
PF: predicated region fallthrough
CT: control target
= control target key end

     0   :  { %8 = vsyncpa [#allocation3], 0  ;;  %s7118_s0 = inlined_call_operand.hbm [shape: f32[256,256], index: 0, kind: input, shape index: {}]   ;;  %s7119_s1 = inlined_call_operand.hbm [shape: f32[128,128], index: 1, kind: input, shape index: {}]   ;;  %s7120_s2 = inlined_call_operand.hbm [shape: f32[2,16,2,16,16], index: 2, kind: input, shape index: {}]   ;;  %s7121_s3 = inlined_call_operand.vmem [shape: f32[2,2,1,32,128], index: 3, kind: output, shape index: {}]  }
   0x1   :  { %9 = vsyncpa [#allocation5], 0  ;;  %s4749_s12 = smov 0   ;;  %s4751_s13 = smov 0  }
   0x2   :  { %s4753_s14 = smov 0   ;;  %s4755_s15 = smov 0  }
   0x3   :  { %s4757_s16 = smov 0   ;;  %s4759_s17 = smov 0  }
   0x4 LB: > { %s4424_s18 = sadd.s32 4294967295, %s4714_s17   ;;  %p91_p0 = scmp.ne.s32.totalorder %s4698_s13, %s4694_s12  ;;  %s4714_s17 = sphi %s4759_s17, %s15_s17   ;;  %s4710_s16 = sphi %s4757_s16, %s7486_s16   ;;  %s4706_s15 = sphi %s4755_s15, %s7485_s15   ;;  %s4702_s14 = sphi %s4753_s14, %s7484_s14   ;;  %s4698_s13 = sphi %s4751_s13, %s7483_s13   ;;  %s4694_s12 = sphi %s4749_s12, %s7482_s12  }
   0x5   : > { %p4781_p1 = scmp.eq.s32.totalorder %s4424_s18, 0  ;;  %p4426_p2 = scmp.ge.s32.totalorder %s4714_s17, 1 }
   0x6   : > { %p130_p3 = scmp.lt.s32.totalorder %s4714_s17, 3  ;;  %s141_s23 = sshll.u32 %s7118_s0, 4  ;;  %s142_s23 = int_to_ptr.hbm [resolvable:$true] %s141_s23 }
   0x7   : > { %p4789_p4 = por %p4781_p1, %p91_p0  ;;  %s4716_s25 = smov [#allocation2]  }
   0x8   : > { %p4796_p5 = pnand %p4426_p2, %p130_p3  ;;  %s143_s26 = sshll.u32 %s4716_s25, 4  ;;  %s144_s26 = int_to_ptr.vmem [resolvable:$true] %s143_s26 }
   0x9   : > { %s155_s29 = sshll.u32 %s7119_s1, 4  ;;  %s4717_s30 = smov 256   ;;  %s156_s29 = int_to_ptr.hbm [resolvable:$true] %s155_s29 }
   0xa   : > { %p4489_p6 = pneg %p4796_p5  ;;  %s4718_s4 = smov 16  }
   0xb   : > { %s4719_s5 = smov [#allocation4]   ;;  %s4720_s7 = smov 128  }
   0xc   : > { %p4490_p7 = pnand %p4489_p6, %p4781_p1  ;;  %s157_s6 = sshll.u32 %s4719_s5, 4  ;;  %s158_s6 = int_to_ptr.vmem [resolvable:$true] %s157_s6 }
   0xd   : > { %s4721_s8 = smov 8   ;;  %s27_s9 = sadd.s32 1, %s4710_s16 }
   0xe   : > { %4492 = dma.hbm_to_vmem [thread:$0]  (!%p4490_p7), %s142_s23, 8192, %s144_s26, [#allocation3], %s4717_s30, %s4717_s30, %s4718_s4  }
   0xf   : > { %4495 = dma.hbm_to_vmem [thread:$0]  (!%p4490_p7), %s156_s29, 2048, %s158_s6, [#allocation5], %s4720_s7, %s4720_s7, %s4721_s8  }
  0x10   : > { %p29_p8 = scmp.ge.s32.totalorder %s27_s9, 2  ;;  %p85_p9 = scmp.ne.s32.totalorder %s4702_s14, %s4698_s13 }
  0x11   : > { %s78_s10 = sadd.s32 1, %s4702_s14  ;;  %p86_p10 = scmp.eq.s32.totalorder %s4714_s17, 0 }
  0x12   : > { %s7488_s9 = smov (%p29_p8, %s27_s9), 0  ;;  %p4502_p12 = scmp.lt.s32.totalorder %s4714_s17, 2 }
  0x13   : > { %p4817_p11 = por %p86_p10, %p85_p9  ;;  %s73_s12 = ssub.s32 %s4710_s16, %s7488_s9 }
  0x14   : > { %s171_s21 = sand.u32 1, %s4714_s17   ;;  %p76_p13 = scmp.eq.s32.totalorder %s73_s12, 0 }
  0x15   : > { %s173_s22 = sand.u32 1, %s4702_s14   ;;  %s4477_s25 = sshll.u32 %s4710_s16, 9 }
  0x16   : > { %s4430_s23 = sshll.u32 %s173_s22, 9  ;;  %s183_s29 = scalar_lea.hbm %s7120_s2, %s4477_s25 }
  0x17   : > { %s4828_s26 = scalar_select %p76_p13, %s4702_s14, %s78_s10  }
  0x18   : > { %s184_s30 = sshll.u32 %s183_s29, 4  ;;  %s175_s4 = scalar_lea.vmem [#allocation6], %s4430_s23  ;;  %s185_s30 = int_to_ptr.hbm [resolvable:$true] %s184_s30 }
  0x19   : > { %s186_s5 = sshll.u32 %s175_s4, 4  ;;  %p4497_p0 = pnand %p4502_p12, %p4817_p11  ;;  %s187_s5 = int_to_ptr.vmem [resolvable:$true] %s186_s5 }
  0x1a   : > { %s172_s6 = scalar_lea.sflag [#allocation3], %s171_s21  ;;  %198 = sbr.rel (%p4796_p5) target bundleno = 1433 (0x599), region = 32 }
  0x1b   : > { %4499 = dma.hbm_to_vmem [thread:$0]  (!%p4497_p0), %s185_s30, 8192, %s187_s5, %s172_s6, %s4720_s7, %s4720_s7, %s4721_s8  }
  0x1f   : > { %4681 = dma.done.wait (%p4781_p1), [#allocation3], 8192  }
  0x20   : > { %4683 = vsyncadd (%p4781_p1), [#allocation3], 4294959104 }
  0x21   : > { %4685 = dma.done.wait (%p4781_p1), [#allocation5], 2048  }
  0x22   : > { %4687 = vsyncadd (%p4781_p1), [#allocation5], 4294965248  ;;  %s210_s7 = sand.u32 1, %s4424_s18   ;;  %s212_s8 = sand.u32 1, %s4698_s13  }
  0x23   : > { %s4436_s24 = sshll.u32 %s212_s8, 9  ;;  %s211_s10 = scalar_lea.sflag [#allocation3], %s210_s7 }
  0x24   : > { %s4853_s11 = scalar_lea.vmem [#allocation6], %s4436_s24 }
  0x25   : > { %4689 = dma.done.wait (%p4789_p4), %s211_s10, 8192  }
  0x26   : > { %4691 = vsyncadd (%p4789_p4), %s211_s10, 4294959104  ;;  %v4454_v0 = vld [vmem:[%s4853_s11 + $0xf8] sm:$0xff]  ;;  %s4722_s18 = smov 16   ;;  %v4453_v3 = vld [vmem:[%s4853_s11 + $0xf0] sm:$0xff]  ;;  %vm528_vm0 = vcmask 130048   ;;  %s4723_s19 = smov 112  }
  0x27   : > { %v4452_v1 = vld [vmem:[%s4853_s11 + $0xd8] sm:$0xff]  ;;  %462 = vrot.lane.b32.xlu0 %v4454_v0, %s4722_s18  ;;  %v4451_v4 = vld [vmem:[%s4853_s11 + $0xd0] sm:$0xff]  ;;  %v350_v34 = vld [vmem:[%s4853_s11 + $0xe8] sm:$0xff]  ;;  %s4724_s20 = smov 32   ;;  %s4725_s12 = smov 48   ;;  %vm3281_vm1 = vcmask 261120  }
  0x28   : > { %458 = vrot.lane.b32.xlu1 %v4452_v1, %s4722_s18  ;;  %v4450_v2 = vld [vmem:[%s4853_s11 + $0xb8] sm:$0xff]  ;;  %v4449_v5 = vld [vmem:[%s4853_s11 + $0xb0] sm:$0xff]  ;;  %v348_v35 = vld [vmem:[%s4853_s11 + $0xc8] sm:$0xff]  ;;  %s4726_s21 = smov 64   ;;  %s4727_s22 = smov 80   ;;  %vm3286_vm2 = vcmask 392192  }
  0x29   : > { %454 = vrot.lane.b32.xlu2 %v4450_v2, %s4722_s18  ;;  %v4448_v6 = vld [vmem:[%s4853_s11 + $0x98] sm:$0xff]  ;;  %v4447_v7 = vld [vmem:[%s4853_s11 + $0x90] sm:$0xff]  ;;  %v346_v40 = vld [vmem:[%s4853_s11 + $0xa8] sm:$0xff]  ;;  %s4728_s23 = smov 96   ;;  %vm3291_vm3 = vcmask 523264   ;;  %vm3296_vm4 = vcmask 654336  }
  0x2a   : > { %v4446_v8 = vld [vmem:[%s4853_s11 + $0x78] sm:$0xff]  ;;  %v4445_v9 = vld [vmem:[%s4853_s11 + $0x70] sm:$0xff]  ;;  %v345_v43 = vld [vmem:[%s4853_s11 + $0xa0] sm:$0xff]  ;;  %vm3301_vm5 = vcmask 785408   ;;  %vm3306_vm6 = vcmask 916480   ;;  %p245_p1 = scmp.lt.s32.totalorder %s4706_s15, 1 }
  0x2b   : > { %v4444_v10 = vld [vmem:[%s4853_s11 + $0x58] sm:$0xff]  ;;  %v4443_v11 = vld [vmem:[%s4853_s11 + $0x50] sm:$0xff]  ;;  %v349_v47 = vld [vmem:[%s4853_s11 + $0xe0] sm:$0xff] }
  0x2c   : > { %v4442_v12 = vld [vmem:[%s4853_s11 + $0x38] sm:$0xff]  ;;  %v4441_v13 = vld [vmem:[%s4853_s11 + $0x30] sm:$0xff]  ;;  %v347_v48 = vld [vmem:[%s4853_s11 + $0xc0] sm:$0xff]  ;;  %s7490_s15 = smov (!%p245_p1, %s4706_s15), 1 }
  0x2d   : > { %v4440_v14 = vld [vmem:[%s4853_s11 + $0x18] sm:$0xff]  ;;  %v4439_v16 = vld [vmem:[%s4853_s11 + $0x10] sm:$0xff]  ;;  %v342_v59 = vld [vmem:[%s4853_s11 + $0x68] sm:$0xff]  ;;  %s4478_s25 = sshll.u32 %s7490_s15, 6 }
  0x2e   : > { %v4470_v15 = vld [vmem:[%s4853_s11 + $0x1f8] sm:$0xff]  ;;  %v4469_v17 = vld [vmem:[%s4853_s11 + $0x1f0] sm:$0xff]  ;;  %s7090_s29 = scalar_lea.vmem %s7121_s3, %s4478_s25 }
  0x2f   : > { %460 = vrot.lane.b32.xlu0 %v4453_v3, %s4722_s18  ;;  %v4468_v18 = vld [vmem:[%s4853_s11 + $0x1d8] sm:$0xff]  ;;  %v4467_v19 = vld [vmem:[%s4853_s11 + $0x1d0] sm:$0xff] }
  0x30   : > { %456 = vrot.lane.b32.xlu1 %v4451_v4, %s4722_s18  ;;  %v4466_v20 = vld [vmem:[%s4853_s11 + $0x1b8] sm:$0xff]  ;;  %v4465_v21 = vld [vmem:[%s4853_s11 + $0x1b0] sm:$0xff] }
  0x31   : > { %452 = vrot.lane.b32.xlu2 %v4449_v5, %s4722_s18  ;;  %v4464_v22 = vld [vmem:[%s4853_s11 + $0x198] sm:$0xff]  ;;  %v4463_v23 = vld [vmem:[%s4853_s11 + $0x190] sm:$0xff] }
  0x32   : > { %v4462_v24 = vld [vmem:[%s4853_s11 + $0x178] sm:$0xff]  ;;  %v4461_v25 = vld [vmem:[%s4853_s11 + $0x170] sm:$0xff] }
  0x33   : > { %v4460_v26 = vld [vmem:[%s4853_s11 + $0x158] sm:$0xff]  ;;  %v4459_v27 = vld [vmem:[%s4853_s11 + $0x150] sm:$0xff] }
  0x34   : > { %v4458_v28 = vld [vmem:[%s4853_s11 + $0x138] sm:$0xff]  ;;  %v4457_v29 = vld [vmem:[%s4853_s11 + $0x130] sm:$0xff] }
  0x35   : > { %v4456_v30 = vld [vmem:[%s4853_s11 + $0x118] sm:$0xff]  ;;  %v4455_v31 = vld [vmem:[%s4853_s11 + $0x110] sm:$0xff] }
  0x37   : > { %450 = vrot.lane.b32.xlu0 %v4448_v6, %s4722_s18  ;;  %v344_v6 = vld [vmem:[%s4853_s11 + $0x88] sm:$0xff] }
  0x38   : > { %448 = vrot.lane.b32.xlu1 %v4447_v7, %s4722_s18  ;;  %v343_v7 = vld [vmem:[%s4853_s11 + $0x80] sm:$0xff] }
  0x39   : > { %446 = vrot.lane.b32.xlu2 %v4446_v8, %s4722_s18 }
  0x3f   : > { %444 = vrot.lane.b32.xlu0 %v4445_v9, %s4722_s18 }
  0x40   : > { %442 = vrot.lane.b32.xlu1 %v4444_v10, %s4722_s18 }
  0x41   : > { %440 = vrot.lane.b32.xlu2 %v4443_v11, %s4722_s18 }
  0x47   : > { %438 = vrot.lane.b32.xlu0 %v4442_v12, %s4722_s18 }
  0x48   : > { %436 = vrot.lane.b32.xlu1 %v4441_v13, %s4722_s18 }
  0x49   : > { %434 = vrot.lane.b32.xlu2 %v4440_v14, %s4722_s18 }
  0x4f   : > { %432 = vrot.lane.b32.xlu0 %v4439_v16, %s4722_s18  ;;  %v339_v16 = vld [vmem:[%s4853_s11 + $0x40] sm:$0xff] }
  0x50   : > { %494 = vrot.lane.b32.xlu1 %v4470_v15, %s4722_s18 }
  0x51   : > { %492 = vrot.lane.b32.xlu2 %v4469_v17, %s4722_s18 }
  0x57   : > { %490 = vrot.lane.b32.xlu0 %v4468_v18, %s4722_s18 }
  0x58   : > { %488 = vrot.lane.b32.xlu1 %v4467_v19, %s4722_s18 }
  0x59   : > { %486 = vrot.lane.b32.xlu2 %v4466_v20, %s4722_s18 }
  0x5f   : > { %484 = vrot.lane.b32.xlu0 %v4465_v21, %s4722_s18 }
  0x60   : > { %482 = vrot.lane.b32.xlu1 %v4464_v22, %s4722_s18 }
  0x61   : > { %480 = vrot.lane.b32.xlu2 %v4463_v23, %s4722_s18 }
  0x67   : > { %478 = vrot.lane.b32.xlu0 %v4462_v24, %s4722_s18 }
  0x68   : > { %476 = vrot.lane.b32.xlu1 %v4461_v25, %s4722_s18 }
  0x69   : > { %474 = vrot.lane.b32.xlu2 %v4460_v26, %s4722_s18 }
  0x6f   : > { %472 = vrot.lane.b32.xlu0 %v4459_v27, %s4722_s18 }
  0x70   : > { %470 = vrot.lane.b32.xlu1 %v4458_v28, %s4722_s18 }
  0x71   : > { %468 = vrot.lane.b32.xlu2 %v4457_v29, %s4722_s18 }
  0x77   : > { %466 = vrot.lane.b32.xlu0 %v4456_v30, %s4722_s18  ;;  %v341_v30 = vld [vmem:[%s4853_s11 + $0x60] sm:$0xff] }
  0x78   : > { %464 = vrot.lane.b32.xlu1 %v4455_v31, %s4722_s18 }
  0x83   : > { %v455_v32 = vpop.permute.xlu2 %454 }
  0x84   : > { %v540_v46 = vsel %vm528_vm0, %v346_v40, %v455_v32 }
  0x85   : > { %v4944_v51 = vand.u32 4294901760, %v540_v46 }
  0x87   : > { %v4962_v63 = vsub.f32 %v540_v46, %v4944_v51 }
  0x89   : > { %v876_v15 = vand.u32 4294901760, %v4962_v63 }
  0x8b   : > { %v453_v33 = vpop.permute.xlu2 %452  ;;  %v877_v29 = vsub.f32 %v4962_v63, %v876_v15 }
  0x8c   : > { %v539_v49 = vsel %vm528_vm0, %v345_v43, %v453_v33  ;;  %v340_v33 = vld [vmem:[%s4853_s11 + $0x48] sm:$0xff] }
  0x8d   : > { %v4954_v58 = vand.u32 4294901760, %v539_v49  ;;  %v878_v43 = vand.u32 4294901760, %v877_v29 }
  0x8f   : > { %v4974_v5 = vsub.f32 %v539_v49, %v4954_v58 }
  0x91   : > { %v7131_v19 = vand.u32 4294901760, %v4974_v5 }
  0x93   : > { %v447_v41 = vpop.permute.xlu2 %446  ;;  %v883_v31 = vsub.f32 %v4974_v5, %v7131_v19 }
  0x94   : > { %v536_v3 = vsel %vm528_vm0, %v342_v59, %v447_v41 }
  0x95   : > { %v4984_v10 = vand.u32 4294901760, %v536_v3  ;;  %v884_v49 = vand.u32 4294901760, %v883_v31 }
  0x97   : > { %v5011_v24 = vsub.f32 %v536_v3, %v4984_v10 }
  0x99   : > { %v463_v36 = vpop.permute.xlu0 %462 }
  0x9a   : > { %v459_v37 = vpop.permute.xlu1 %458  ;;  %v544_v38 = vsel %vm528_vm0, %v350_v34, %v463_v36 }
  0x9b   : > { %v542_v39 = vsel %vm528_vm0, %v348_v35, %v459_v37  ;;  %v4928_v42 = vand.u32 4294901760, %v544_v38  ;;  %v441_v0 = vpop.permute.xlu2 %440 }
  0x9c   : > { %v4934_v45 = vand.u32 4294901760, %v542_v39  ;;  %v533_v25 = vsel %vm528_vm0, %v339_v16, %v441_v0  ;;  %v337_v16 = vld [vmem:[%s4853_s11 + $0x20] sm:$0xff] }
  0x9d   : > { %v4932_v44 = vsub.f32 %v544_v38, %v4928_v42  ;;  %562 = vmatpush.msra.mxu0 %v4928_v42  ;;  %1285 = vmatpush.msra.mxu3 %v4928_v42  ;;  %v5032_v35 = vand.u32 4294901760, %v533_v25  ;;  %v255_v38 = vld [vmem:[#allocation2] sm:$0xff] }
  0x9e   : > { %v4947_v52 = vsub.f32 %v542_v39, %v4934_v45  ;;  %v7125_v39 = vand.u32 4294901760, %v5011_v24 }
  0x9f   : > { %1077 = vmatpush.msra.mxu2 %v4932_v44  ;;  %v852_v50 = vand.u32 4294901760, %v4932_v44 }
  0xa0   : > { %v864_v4 = vand.u32 4294901760, %v4947_v52 }
  0xa1   : > { %v461_v53 = vpop.permute.xlu0 %460  ;;  %v853_v55 = vsub.f32 %v4932_v44, %v852_v50 }
  0xa2   : > { %v457_v54 = vpop.permute.xlu1 %456  ;;  %v543_v56 = vsel %vm528_vm0, %v349_v47, %v461_v53  ;;  %v865_v14 = vsub.f32 %v4947_v52, %v864_v4  ;;  %v336_v53 = vld [vmem:[%s4853_s11 + $0x8] sm:$0xff] }
  0xa3   : > { %v541_v57 = vsel %vm528_vm0, %v347_v48, %v457_v54  ;;  %v4957_v60 = vand.u32 4294901760, %v543_v56  ;;  %v854_v62 = vand.u32 4294901760, %v853_v55  ;;  %v435_v32 = vpop.permute.xlu2 %434  ;;  %v5048_v54 = vand.u32 4294901760, %v255_v38 }
  0xa4   : > { %v4959_v61 = vand.u32 4294901760, %v541_v57  ;;  %v866_v28 = vand.u32 4294901760, %v865_v14  ;;  %v338_v14 = vld [vmem:[%s4853_s11 + $0x28] sm:$0xff] }
  0xa5   : > { %v4965_v1 = vsub.f32 %v543_v56, %v4957_v60  ;;  %564 = vmatpush.msra.mxu0 %v4957_v60  ;;  %855 = vmatpush.msra.mxu1 %v854_v62  ;;  %v901_v62 = vsub.f32 %v5011_v24, %v7125_v39 }
  0xa6   : > { %v4968_v2 = vsub.f32 %v541_v57, %v4959_v61  ;;  %1287 = vmatpush.msra.mxu3 %v4957_v60  ;;  %v5056_v57 = vsub.f32 %v533_v25, %v5032_v35 }
  0xa7   : > { %566 = vmatpush.msra.mxu0 %v4934_v45  ;;  %1080 = vmatpush.msra.mxu2 %v4965_v1  ;;  %v858_v8 = vand.u32 4294901760, %v4965_v1  ;;  %v902_v31 = vand.u32 4294901760, %v901_v62 }
  0xa8   : > { %v870_v9 = vand.u32 4294901760, %v4968_v2  ;;  %1289 = vmatpush.msra.mxu3 %v4934_v45 }
  0xa9   : > { %v451_v11 = vpop.permute.xlu0 %450  ;;  %568 = vmatpush.msra.mxu0 %v4959_v61  ;;  %1083 = vmatpush.msra.mxu2 %v4947_v52  ;;  %v859_v13 = vsub.f32 %v4965_v1, %v858_v8 }
  0xaa   : > { %v449_v12 = vpop.permute.xlu1 %448  ;;  %v538_v17 = vsel %vm528_vm0, %v344_v6, %v451_v11  ;;  %1291 = vmatpush.msra.mxu3 %v4959_v61  ;;  %v871_v23 = vsub.f32 %v4968_v2, %v870_v9  ;;  %v257_v11 = vld [vmem:[#allocation2 + $0x10] sm:$0xff] }
  0xab   : > { %v537_v18 = vsel %vm528_vm0, %v343_v7, %v449_v12  ;;  %v5000_v20 = vand.u32 4294901760, %v538_v17  ;;  %570 = vmatpush.msra.mxu0 %v4944_v51  ;;  %1086 = vmatpush.msra.mxu2 %v4968_v2  ;;  %v860_v22 = vand.u32 4294901760, %v859_v13  ;;  %v530_v7 = vsel %vm528_vm0, %v336_v53, %v435_v32  ;;  %v493_v13 = vpop.permute.xlu2 %492  ;;  %v360_v2 = vld [vmem:[%s4853_s11 + $0x188] sm:$0xff] }
  0xac   : > { %v5002_v21 = vand.u32 4294901760, %v537_v18  ;;  %1293 = vmatpush.msra.mxu3 %v4944_v51  ;;  %v872_v34 = vand.u32 4294901760, %v871_v23  ;;  %v5077_v12 = vsub.f32 %v255_v38, %v5048_v54  ;;  %v7122_v23 = vand.u32 4294901760, %v5056_v57 }
  0xad   : > { %v5015_v26 = vsub.f32 %v538_v17, %v5000_v20  ;;  %572 = vmatpush.msra.mxu0 %v4954_v58  ;;  %861 = vmatpush.msra.mxu1 %v860_v22  ;;  %v5087_v25 = vand.u32 4294901760, %v530_v7 }
  0xae   : > { %v5018_v27 = vsub.f32 %v537_v18, %v5002_v21  ;;  %1089 = vmatpush.msra.mxu2 %v4962_v63  ;;  %1295 = vmatpush.msra.mxu3 %v4954_v58  ;;  %v7289_v63 = vand.u32 4294901760, %v4974_v5 }
  0xaf   : > { %574 = vmatpush.msra.mxu0 %v5000_v20  ;;  %867 = vmatpush.msra.mxu1 %v866_v28  ;;  %v7130_v36 = vand.u32 4294901760, %v5015_v26  ;;  %v5089_v28 = vand.u32 4294901760, %v257_v11 }
  0xb0   : > { %v7129_v37 = vand.u32 4294901760, %v5018_v27  ;;  %1092 = vmatpush.msra.mxu2 %v4974_v5  ;;  %1297 = vmatpush.msra.mxu3 %v5000_v20 }
  0xb1   : > { %v445_v40 = vpop.permute.xlu0 %444  ;;  %576 = vmatpush.msra.mxu0 %v5002_v21  ;;  %873 = vmatpush.msra.mxu1 %v872_v34  ;;  %v889_v46 = vsub.f32 %v5015_v26, %v7130_v36  ;;  %v5116_v53 = vsub.f32 %v257_v11, %v5089_v28  ;;  %v259_v11 = vld [vmem:[#allocation2 + $0x20] sm:$0xff]  ;;  %v261_v36 = vld [vmem:[#allocation2 + $0x30] sm:$0xff] }
  0xb2   : > { %v443_v41 = vpop.permute.xlu1 %442  ;;  %v535_v47 = vsel %vm528_vm0, %v341_v30, %v445_v40  ;;  %1095 = vmatpush.msra.mxu2 %v5015_v26  ;;  %1299 = vmatpush.msra.mxu3 %v5002_v21  ;;  %v895_v59 = vsub.f32 %v5018_v27, %v7129_v37  ;;  %v595_v40 = vand.u32 4294901760, %v5077_v12  ;;  %v362_v37 = vld [vmem:[%s4853_s11 + $0x1a8] sm:$0xff] }
  0xb3   : > { %v534_v48 = vsel %vm528_vm0, %v340_v33, %v443_v41  ;;  %v5050_v55 = vand.u32 4294901760, %v535_v47  ;;  %578 = vmatpush.msra.mxu0 %v4984_v10  ;;  %879 = vmatpush.msra.mxu1 %v878_v43  ;;  %v890_v6 = vand.u32 4294901760, %v889_v46  ;;  %v365_v41 = vld [vmem:[%s4853_s11 + $0x1e0] sm:$0xff] }
  0xb4   : > { %v5052_v56 = vand.u32 4294901760, %v534_v48  ;;  %1098 = vmatpush.msra.mxu2 %v5018_v27  ;;  %1301 = vmatpush.msra.mxu3 %v4984_v10  ;;  %v896_v17 = vand.u32 4294901760, %v895_v59 }
  0xb5   : > { %v5067_v0 = vsub.f32 %v535_v47, %v5050_v55  ;;  %580 = vmatpush.msra.mxu0 %v5050_v55  ;;  %885 = vmatpush.msra.mxu1 %v884_v49  ;;  %v5112_v49 = vsub.f32 %v530_v7, %v5087_v25  ;;  %v596_v7 = vsub.f32 %v5077_v12, %v595_v40 }
  0xb6   : > { %v5070_v3 = vsub.f32 %v534_v48, %v5052_v56  ;;  %1101 = vmatpush.msra.mxu2 %v5011_v24  ;;  %1303 = vmatpush.msra.mxu3 %v5050_v55  ;;  %v919_v48 = vsub.f32 %v5056_v57, %v7122_v23 }
  0xb7   : > { %582 = vmatpush.msra.mxu0 %v5052_v56  ;;  %891 = vmatpush.msra.mxu1 %v890_v6  ;;  %v7124_v18 = vand.u32 4294901760, %v5067_v0 }
  0xb8   : > { %v7123_v22 = vand.u32 4294901760, %v5070_v3  ;;  %1104 = vmatpush.msra.mxu2 %v5067_v0  ;;  %1305 = vmatpush.msra.mxu3 %v5052_v56 }
  0xb9   : > { %v439_v29 = vpop.permute.xlu0 %438  ;;  %897 = vmatpush.msra.mxu1 %v896_v17  ;;  %584 = vmatpush.msra.mxu0 %v5032_v35  ;;  %v907_v32 = vsub.f32 %v5067_v0, %v7124_v18  ;;  %v335_v17 = vld [vmem:[%s4853_s11] sm:$0xff] }
  0xba   : > { %v437_v30 = vpop.permute.xlu1 %436  ;;  %v913_v33 = vsub.f32 %v5070_v3, %v7123_v22  ;;  %v532_v34 = vsel %vm528_vm0, %v338_v14, %v439_v29  ;;  %1107 = vmatpush.msra.mxu2 %v5070_v3  ;;  %1307 = vmatpush.msra.mxu3 %v5032_v35  ;;  %v559_v14 = vsel %vm528_vm0, %v365_v41, %v493_v13  ;;  %v920_v29 = vand.u32 4294901760, %v919_v48 }
  0xbb   : > { %v531_v38 = vsel %vm528_vm0, %v337_v16, %v437_v30  ;;  %v5104_v43 = vand.u32 4294901760, %v532_v34  ;;  %903 = vmatpush.msra.mxu1 %v902_v31  ;;  %v908_v47 = vand.u32 4294901760, %v907_v32  ;;  %v366_v16 = vld [vmem:[%s4853_s11 + $0x1e8] sm:$0xff]  ;;  %v5137_v13 = vand.u32 4294901760, %v559_v14 }
  0xbc   : > { %v5106_v46 = vand.u32 4294901760, %v531_v38  ;;  %1110 = vmatpush.msra.mxu2 %v5056_v57  ;;  %v914_v6 = vand.u32 4294901760, %v913_v33  ;;  %v7128_v32 = vand.u32 4294901760, %v5112_v49  ;;  %v7132_v33 = vand.u32 4294901760, %v5116_v53 }
  0xbd   : > { %v5119_v59 = vsub.f32 %v532_v34, %v5104_v43  ;;  %586 = vmatpush.msra.mxu0 %v5104_v43  ;;  %909 = vmatpush.msra.mxu1 %v908_v47  ;;  %v487_v34 = vpop.permute.xlu2 %486 }
  0xbe   : > { %v5122_v62 = vsub.f32 %v531_v38, %v5106_v46  ;;  %1309 = vmatpush.msra.mxu3 %v5104_v43 }
  0xbf   : > { %588 = vmatpush.msra.mxu0 %v5106_v46  ;;  %915 = vmatpush.msra.mxu1 %v914_v6  ;;  %v7126_v30 = vand.u32 4294901760, %v5119_v59  ;;  %v5148_v6 = vand.u32 4294901760, %v259_v11 }
  0xc0   : > { %v7127_v31 = vand.u32 4294901760, %v5122_v62  ;;  %1113 = vmatpush.msra.mxu2 %v5119_v59  ;;  %1311 = vmatpush.msra.mxu3 %v5106_v46 }
  0xc1   : > { %v433_v41 = vpop.permute.xlu0 %432  ;;  %921 = vmatpush.msra.mxu1 %v920_v29  ;;  %590 = vmatpush.msra.mxu0 %v5087_v25  ;;  %v925_v47 = vsub.f32 %v5119_v59, %v7126_v30  ;;  %v597_v29 = vand.u32 4294901760, %v596_v7  ;;  %v604_v7 = vsub.f32 %v5116_v53, %v7132_v33  ;;  %v5204_v33 = vand.u32 4294901760, %v261_v36 }
  0xc2   : > { %v495_v38 = vpop.permute.xlu1 %494  ;;  %v931_v48 = vsub.f32 %v5122_v62, %v7127_v31  ;;  %v529_v22 = vsel %vm528_vm0, %v335_v17, %v433_v41  ;;  %1116 = vmatpush.msra.mxu2 %v5122_v62  ;;  %1313 = vmatpush.msra.mxu3 %v5087_v25  ;;  %v5160_v31 = vsub.f32 %v559_v14, %v5137_v13 }
  0xc3   : > { %v560_v23 = vsel %vm528_vm0, %v366_v16, %v495_v38  ;;  %v5156_v39 = vand.u32 4294901760, %v529_v22  ;;  %v926_v30 = vand.u32 4294901760, %v925_v47  ;;  %v937_v16 = vsub.f32 %v5112_v49, %v7128_v32  ;;  %v364_v47 = vld [vmem:[%s4853_s11 + $0x1c8] sm:$0xff] }
  0xc4   : > { %v5154_v18 = vand.u32 4294901760, %v560_v23  ;;  %1119 = vmatpush.msra.mxu2 %v5112_v49  ;;  %v932_v14 = vand.u32 4294901760, %v931_v48  ;;  %v5176_v41 = vsub.f32 %v259_v11, %v5148_v6  ;;  %v2160_v11 = vand.u32 4294901760, %v5160_v31 }
  0xc5   : > { %v5172_v38 = vsub.f32 %v529_v22, %v5156_v39  ;;  %592 = vmatpush.msra.mxu0 %v5156_v39  ;;  %927 = vmatpush.msra.mxu1 %v926_v30  ;;  %v938_v30 = vand.u32 4294901760, %v937_v16  ;;  %v605_v16 = vand.u32 4294901760, %v604_v7  ;;  %v481_v19 = vpop.permute.xlu2 %480 }
  0xc6   : > { %v5169_v17 = vsub.f32 %v560_v23, %v5154_v18  ;;  %598 = vmatmul.f32.vlgmr.msra.gmra.mxu0 %v597_v29  ;;  %1315 = vmatpush.msra.mxu3 %v5156_v39  ;;  %v363_v23 = vld [vmem:[%s4853_s11 + $0x1c0] sm:$0xff] }
  0xc7   : > { %1512 = vmatpush.msrb.mxu0 %v852_v50  ;;  %933 = vmatpush.msra.mxu1 %v932_v14  ;;  %v7133_v32 = vand.u32 4294901760, %v5172_v38 }
  0xc8   : > { %v7134_v22 = vand.u32 4294901760, %v5169_v17  ;;  %1122 = vmatpush.msra.mxu2 %v5172_v38  ;;  %1319 = vmatmul.f32.vlgmr.msra.gmra.mxu3 %v595_v40  ;;  %v611_v40 = vand.u32 4294901760, %v5176_v41 }
  0xc9   : > { %1516 = vmatpush.msrb.mxu0 %v858_v8  ;;  %v491_v44 = vpop.permute.xlu0 %490  ;;  %v943_v48 = vsub.f32 %v5172_v38, %v7133_v32  ;;  %939 = vmatpush.msra.mxu1 %v938_v30  ;;  %v556_v8 = vsel %vm528_vm0, %v362_v37, %v487_v34  ;;  %v2161_v37 = vsub.f32 %v5160_v31, %v2160_v11 }
  0xca   : > { %1864 = vmatpush.msrb.mxu2 %v5154_v18  ;;  %v489_v50 = vpop.permute.xlu1 %488  ;;  %v2155_v29 = vsub.f32 %v5169_v17, %v7134_v22  ;;  %v558_v14 = vsel %vm528_vm0, %v364_v47, %v491_v44  ;;  %v5221_v52 = vand.u32 4294901760, %v556_v8  ;;  %v5227_v47 = vsub.f32 %v261_v36, %v5204_v33 }
  0xcb   : > { %1125 = vmatmul.f32.vlgmr.msra.gmra.mxu2 %v5077_v12  ;;  %v557_v1 = vsel %vm528_vm0, %v363_v23, %v489_v50  ;;  %v5206_v32 = vand.u32 4294901760, %v558_v14  ;;  %1520 = vmatpush.msrb.mxu0 %v864_v4  ;;  %v944_v7 = vand.u32 4294901760, %v943_v48  ;;  %v612_v4 = vsub.f32 %v5176_v41, %v611_v40  ;;  %v361_v23 = vld [vmem:[%s4853_s11 + $0x1a0] sm:$0xff] }
  0xcc   : > { %v2156_v22 = vand.u32 4294901760, %v2155_v29  ;;  %1866 = vmatpush.msrb.mxu2 %v5137_v13  ;;  %v5211_v12 = vand.u32 4294901760, %v557_v1  ;;  %v7288_v44 = vand.u32 4294901760, %v5116_v53  ;;  %v5243_v50 = vsub.f32 %v556_v8, %v5221_v52 }
  0xcd   : > { %v5217_v34 = vsub.f32 %v558_v14, %v5206_v32  ;;  %1524 = vmatpush.msrb.mxu0 %v870_v9  ;;  %945 = vmatpush.msra.mxu1 %v944_v7  ;;  %v359_v9 = vld [vmem:[%s4853_s11 + $0x180] sm:$0xff]  ;;  %v613_v29 = vand.u32 4294901760, %v612_v4  ;;  %v619_v8 = vand.u32 4294901760, %v5227_v47  ;;  %v7290_v7 = vand.u32 4294901760, %v5015_v26 }
  0xce   : > { %2157 = vmatpush.msrb.mxu3 %v2156_v22  ;;  %606 = vmatmul.f32.gmra.mxu0 %v605_v16  ;;  %v5236_v30 = vsub.f32 %v557_v1, %v5211_v12  ;;  %v2162_v22 = vand.u32 4294901760, %v2161_v37  ;;  %v263_v16 = vld [vmem:[#allocation2 + $0x40] sm:$0xff]  ;;  %v553_v1 = vsel %vm528_vm0, %v359_v9, %v481_v19  ;;  %v475_v19 = vpop.permute.xlu2 %474  ;;  %v356_v9 = vld [vmem:[%s4853_s11 + $0x148] sm:$0xff] }
  0xcf   : > { %947 = vmatmul.f32.vlgmr.msra.gmra.mxu1 %v5048_v54  ;;  %1528 = vmatpush.msrb.mxu0 %v876_v15  ;;  %v2166_v36 = vand.u32 4294901760, %v5217_v34  ;;  %v5266_v4 = vand.u32 4294901760, %v263_v16 }
  0xd0   : > { %1703 = vmatpush.msrb.mxu1 %v4928_v42  ;;  %1325 = vmatmul.f32.gmra.mxu3 %v7288_v44  ;;  %v7137_v44 = vand.u32 4294901760, %v5243_v50 }
  0xd1   : > { %1532 = vmatpush.msrb.mxu0 %v7289_v63  ;;  %v485_v15 = vpop.permute.xlu0 %484  ;;  %1868 = vmatpush.msrb.mxu2 %v5206_v32  ;;  %v358_v63 = vld [vmem:[%s4853_s11 + $0x168] sm:$0xff] }
  0xd2   : > { %v483_v48 = vpop.permute.xlu1 %482  ;;  %1705 = vmatpush.msrb.mxu1 %v4957_v60  ;;  %v555_v42 = vsel %vm528_vm0, %v361_v23, %v485_v15  ;;  %2163 = vmatpush.msrb.mxu3 %v2162_v22  ;;  %v2167_v60 = vsub.f32 %v5217_v34, %v2166_v36  ;;  %v7291_v23 = vand.u32 4294901760, %v5018_v27  ;;  %v7292_v27 = vand.u32 4294901760, %v5011_v24  ;;  %v357_v15 = vld [vmem:[%s4853_s11 + $0x160] sm:$0xff] }
  0xd3   : > { %1130 = vmatmul.f32.gmra.mxu2 %v5116_v53  ;;  %v554_v14 = vsel %vm528_vm0, %v360_v2, %v483_v48  ;;  %v5254_v5 = vand.u32 4294901760, %v555_v42  ;;  %1536 = vmatpush.msrb.mxu0 %v7290_v7  ;;  %v2172_v53 = vand.u32 4294901760, %v5236_v30  ;;  %v5273_v2 = vand.u32 4294901760, %v553_v1 }
  0xd4   : > { %v5258_v37 = vand.u32 4294901760, %v554_v14  ;;  %1870 = vmatpush.msrb.mxu2 %v5211_v12  ;;  %1707 = vmatpush.msrb.mxu1 %v4934_v45  ;;  %v620_v45 = vsub.f32 %v5227_v47, %v619_v8  ;;  %v7293_v24 = vand.u32 4294901760, %v5067_v0  ;;  %v2179_v0 = vsub.f32 %v5243_v50, %v7137_v44 }
  0xd5   : > { %v5269_v26 = vsub.f32 %v555_v42, %v5254_v5  ;;  %1540 = vmatpush.msrb.mxu0 %v7291_v23  ;;  %v2173_v48 = vsub.f32 %v5236_v30, %v2172_v53  ;;  %v5299_v42 = vsub.f32 %v553_v1, %v5273_v2 }
  0xd6   : > { %1872 = vmatpush.msrb.mxu2 %v5221_v52  ;;  %1709 = vmatpush.msrb.mxu1 %v4959_v61  ;;  %v5283_v22 = vsub.f32 %v554_v14, %v5258_v37  ;;  %v2168_v61 = vand.u32 4294901760, %v2167_v60  ;;  %v621_v23 = vand.u32 4294901760, %v620_v45 }
  0xd7   : > { %614 = vmatmul.f32.gmra.mxu0 %v613_v29  ;;  %951 = vmatmul.f32.gmra.mxu1 %v5089_v28  ;;  %v5296_v29 = vsub.f32 %v263_v16, %v5266_v4  ;;  %v7135_v60 = vand.u32 4294901760, %v5269_v26 }
  0xd8   : > { %1544 = vmatpush.msrb.mxu0 %v7292_v27  ;;  %1711 = vmatpush.msrb.mxu1 %v4944_v51  ;;  %v550_v51 = vsel %vm528_vm0, %v356_v9, %v475_v19  ;;  %v265_v27 = vld [vmem:[#allocation2 + $0x50] sm:$0xff] }
  0xd9   : > { %1874 = vmatpush.msrb.mxu2 %v5254_v5  ;;  %v479_v14 = vpop.permute.xlu0 %478  ;;  %1331 = vmatmul.f32.gmra.mxu3 %v611_v40  ;;  %v7294_v40 = vand.u32 4294901760, %v5070_v3  ;;  %v627_v45 = vand.u32 4294901760, %v5296_v29  ;;  %v7295_v3 = vand.u32 4294901760, %v5056_v57  ;;  %v2196_v57 = vand.u32 4294901760, %v5299_v42 }
  0xda   : > { %1548 = vmatpush.msrb.mxu0 %v7293_v24  ;;  %v477_v7 = vpop.permute.xlu1 %476  ;;  %1713 = vmatpush.msrb.mxu1 %v4954_v58  ;;  %v552_v16 = vsel %vm528_vm0, %v358_v63, %v479_v14  ;;  %v7136_v58 = vand.u32 4294901760, %v5283_v22  ;;  %v5329_v63 = vand.u32 4294901760, %v550_v51  ;;  %v353_v14 = vld [vmem:[%s4853_s11 + $0x120] sm:$0xff] }
  0xdb   : > { %1135 = vmatmul.f32.gmra.mxu2 %v5176_v41  ;;  %v551_v1 = vsel %vm528_vm0, %v357_v15, %v477_v7  ;;  %v5314_v24 = vand.u32 4294901760, %v552_v16  ;;  %2169 = vmatpush.msrb.mxu3 %v2168_v61  ;;  %v2174_v41 = vand.u32 4294901760, %v2173_v48  ;;  %v5335_v15 = vand.u32 4294901760, %v265_v27  ;;  %v469_v48 = vpop.permute.xlu2 %468 }
  0xdc   : > { %1552 = vmatpush.msrb.mxu0 %v7294_v40  ;;  %v5318_v19 = vand.u32 4294901760, %v551_v1  ;;  %1876 = vmatpush.msrb.mxu2 %v5258_v37  ;;  %v2180_v61 = vand.u32 4294901760, %v2179_v0  ;;  %v355_v40 = vld [vmem:[%s4853_s11 + $0x140] sm:$0xff]  ;;  %v5357_v0 = vsub.f32 %v550_v51, %v5329_v63 }
  0xdd   : > { %1715 = vmatpush.msrb.mxu1 %v5000_v20  ;;  %v5325_v9 = vsub.f32 %v552_v16, %v5314_v24  ;;  %v2185_v20 = vsub.f32 %v5269_v26, %v7135_v60  ;;  %v7296_v16 = vand.u32 4294901760, %v5119_v59  ;;  %2175 = vmatpush.msrb.mxu3 %v2174_v41  ;;  %v7297_v59 = vand.u32 4294901760, %v5122_v62 }
  0xde   : > { %1556 = vmatpush.msrb.mxu0 %v7295_v3  ;;  %1878 = vmatpush.msrb.mxu2 %v5273_v2  ;;  %v5341_v7 = vsub.f32 %v551_v1, %v5318_v19  ;;  %v354_v3 = vld [vmem:[%s4853_s11 + $0x128] sm:$0xff]  ;;  %v5364_v41 = vsub.f32 %v265_v27, %v5335_v15  ;;  %v2197_v62 = vsub.f32 %v5299_v42, %v2196_v57 }
  0xdf   : > { %1717 = vmatpush.msrb.mxu1 %v5002_v21  ;;  %622 = vmatmul.f32.gmra.mxu0 %v621_v23  ;;  %v2191_v21 = vsub.f32 %v5283_v22, %v7136_v58  ;;  %v628_v23 = vsub.f32 %v5296_v29, %v627_v45  ;;  %v7141_v1 = vand.u32 4294901760, %v5325_v9  ;;  %v2186_v58 = vand.u32 4294901760, %v2185_v20 }
  0xe0   : > { %955 = vmatmul.f32.gmra.mxu1 %v5148_v6  ;;  %1560 = vmatpush.msrb.mxu0 %v7296_v16  ;;  %v7298_v20 = vand.u32 4294901760, %v5112_v49 }
  0xe1   : > { %1719 = vmatpush.msrb.mxu1 %v4984_v10  ;;  %v473_v16 = vpop.permute.xlu0 %472  ;;  %1880 = vmatpush.msrb.mxu2 %v5314_v24  ;;  %v547_v10 = vsel %vm528_vm0, %v353_v14, %v469_v48  ;;  %v2192_v48 = vand.u32 4294901760, %v2191_v21  ;;  %v267_v14 = vld [vmem:[#allocation2 + $0x60] sm:$0xff] }
  0xe2   : > { %1564 = vmatpush.msrb.mxu0 %v7297_v59  ;;  %v471_v60 = vpop.permute.xlu1 %470  ;;  %v549_v44 = vsel %vm528_vm0, %v355_v40, %v473_v16  ;;  %2181 = vmatpush.msrb.mxu3 %v2180_v61  ;;  %v2203_v61 = vsub.f32 %v5325_v9, %v7141_v1  ;;  %v7299_v40 = vand.u32 4294901760, %v5172_v38  ;;  %v2198_v16 = vand.u32 4294901760, %v2197_v62  ;;  %v351_v38 = vld [vmem:[%s4853_s11 + $0x100] sm:$0xff] }
  0xe3   : > { %1721 = vmatpush.msrb.mxu1 %v5050_v55  ;;  %v548_v51 = vsel %vm528_vm0, %v354_v3, %v471_v60  ;;  %v5372_v59 = vand.u32 4294901760, %v549_v44  ;;  %1140 = vmatmul.f32.gmra.mxu2 %v5227_v47  ;;  %v7139_v55 = vand.u32 4294901760, %v5341_v7  ;;  %v5382_v60 = vand.u32 4294901760, %v547_v10 }
  0xe4   : > { %1568 = vmatpush.msrb.mxu0 %v7298_v20  ;;  %v5377_v27 = vand.u32 4294901760, %v548_v51  ;;  %1882 = vmatpush.msrb.mxu2 %v5318_v19  ;;  %v629_v3 = vand.u32 4294901760, %v628_v23  ;;  %v635_v20 = vand.u32 4294901760, %v5364_v41  ;;  %v5406_v23 = vand.u32 4294901760, %v267_v14 }
  0xe5   : > { %1723 = vmatpush.msrb.mxu1 %v5052_v56  ;;  %v5388_v49 = vsub.f32 %v549_v44, %v5372_v59  ;;  %2187 = vmatpush.msrb.mxu3 %v2186_v58  ;;  %v7138_v56 = vand.u32 4294901760, %v5357_v0  ;;  %v352_v44 = vld [vmem:[%s4853_s11 + $0x108] sm:$0xff]  ;;  %v2209_v58 = vsub.f32 %v5341_v7, %v7139_v55  ;;  %v2204_v47 = vand.u32 4294901760, %v2203_v61 }
  0xe6   : > { %1572 = vmatpush.msrb.mxu0 %v7299_v40  ;;  %v5394_v21 = vsub.f32 %v548_v51, %v5377_v27  ;;  %1337 = vmatmul.f32.gmra.mxu3 %v619_v8  ;;  %v636_v61 = vsub.f32 %v5364_v41, %v635_v20 }
  0xe7   : > { %1725 = vmatpush.msrb.mxu1 %v5032_v35  ;;  %1884 = vmatpush.msrb.mxu2 %v5329_v63  ;;  %v5411_v35 = vsub.f32 %v547_v10, %v5382_v60  ;;  %v7140_v8 = vand.u32 4294901760, %v5388_v49  ;;  %v2210_v55 = vand.u32 4294901760, %v2209_v58 }
  0xe8   : > { %2193 = vmatpush.msrb.mxu3 %v2192_v48  ;;  %2379 = vmatpush.msra.mxu0 %v5169_v17  ;;  %v2215_v48 = vsub.f32 %v5357_v0, %v7138_v56 }
  0xe9   : > { %959 = vmatmul.f32.gmra.mxu1 %v5204_v33  ;;  %630 = vmatmul.f32.gmra.mxu0 %v629_v3  ;;  %v467_v51 = vpop.permute.xlu0 %466  ;;  %v2226_v3 = vand.u32 4294901760, %v5394_v21 }
  0xea   : > { %1727 = vmatpush.msrb.mxu1 %v5104_v43  ;;  %v465_v62 = vpop.permute.xlu1 %464  ;;  %1886 = vmatpush.msrb.mxu2 %v5372_v59  ;;  %v546_v40 = vsel %vm528_vm0, %v352_v44, %v467_v51  ;;  %v2221_v44 = vsub.f32 %v5388_v49, %v7140_v8  ;;  %v269_v51 = vld [vmem:[#allocation2 + $0x70] sm:$0xff]  ;;  %v2216_v58 = vand.u32 4294901760, %v2215_v48 }
  0xeb   : > { %2199 = vmatpush.msrb.mxu3 %v2198_v16  ;;  %v545_v10 = vsel %vm528_vm0, %v351_v38, %v465_v62  ;;  %2382 = vmatpush.msra.mxu0 %v5160_v31  ;;  %v5427_v43 = vand.u32 4294901760, %v546_v40  ;;  %v5432_v16 = vsub.f32 %v267_v14, %v5406_v23  ;;  %v2232_v38 = vand.u32 4294901760, %v5411_v35  ;;  %v273_v31 = vld [vmem:[#allocation2 + $0x90] sm:$0xff] }
  0xec   : > { %1729 = vmatpush.msrb.mxu1 %v5106_v46  ;;  %v5429_v56 = vand.u32 4294901760, %v545_v10  ;;  %1888 = vmatpush.msrb.mxu2 %v5377_v27  ;;  %v2227_v62 = vsub.f32 %v5394_v21, %v2226_v3  ;;  %v5455_v1 = vand.u32 4294901760, %v269_v51 }
  0xed   : > { %2205 = vmatpush.msrb.mxu3 %v2204_v47  ;;  %v5440_v46 = vsub.f32 %v546_v40, %v5427_v43  ;;  %2385 = vmatpush.msra.mxu0 %v5217_v34  ;;  %v637_v47 = vand.u32 4294901760, %v636_v61  ;;  %v643_v8 = vand.u32 4294901760, %v5432_v16  ;;  %v2233_v48 = vsub.f32 %v5411_v35, %v2232_v38 }
  0xee   : > { %1145 = vmatmul.f32.gmra.mxu2 %v5296_v29  ;;  %v5445_v14 = vsub.f32 %v545_v10, %v5429_v56  ;;  %1731 = vmatpush.msrb.mxu1 %v5087_v25  ;;  %v2222_v25 = vand.u32 4294901760, %v2221_v44  ;;  %v2228_v10 = vand.u32 4294901760, %v2227_v62 }
  0xef   : > { %1890 = vmatpush.msrb.mxu2 %v5382_v60  ;;  %2211 = vmatpush.msrb.mxu3 %v2210_v55  ;;  %v2238_v40 = vand.u32 4294901760, %v5440_v46  ;;  %v2234_v61 = vand.u32 4294901760, %v2233_v48 }
  0xf0   : > { %2388 = vmatpush.msra.mxu0 %v5236_v30  ;;  %1343 = vmatmul.f32.gmra.mxu3 %v627_v45  ;;  %v2244_v55 = vand.u32 4294901760, %v5445_v14  ;;  %v5473_v45 = vsub.f32 %v269_v51, %v5455_v1  ;;  %v7302_v30 = vand.u32 4294901760, %v5269_v26 }
  0xf1   : > { %1733 = vmatpush.msrb.mxu1 %v5156_v39  ;;  %1892 = vmatpush.msrb.mxu2 %v5427_v43  ;;  %v2239_v29 = vsub.f32 %v5440_v46, %v2238_v40  ;;  %v644_v39 = vsub.f32 %v5432_v16, %v643_v8 }
  0xf2   : > { %2217 = vmatpush.msrb.mxu3 %v2216_v58  ;;  %638 = vmatmul.f32.gmra.mxu0 %v637_v47  ;;  %v2245_v44 = vsub.f32 %v5445_v14, %v2244_v55  ;;  %v271_v58 = vld [vmem:[#allocation2 + $0x80] sm:$0xff]  ;;  %v7300_v47 = vand.u32 4294901760, %v5169_v17 }
  0xf3   : > { %2587 = vmatpush.msra.mxu1 %v5154_v18  ;;  %1894 = vmatpush.msrb.mxu2 %v5429_v56  ;;  %v2240_v62 = vand.u32 4294901760, %v2239_v29  ;;  %v645_v51 = vand.u32 4294901760, %v644_v39  ;;  %v5485_v48 = vand.u32 4294901760, %v271_v58  ;;  %v285_v39 = vld [vmem:[#allocation2 + $0xf0] sm:$0xff] }
  0xf4   : > { %963 = vmatmul.f32.gmra.mxu1 %v5266_v4  ;;  %2223 = vmatpush.msrb.mxu3 %v2222_v25  ;;  %v651_v25 = vand.u32 4294901760, %v5473_v45  ;;  %v2246_v17 = vand.u32 4294901760, %v2245_v44  ;;  %v5588_v44 = vand.u32 4294901760, %v285_v39 }
  0xf5   : > { %2589 = vmatpush.msra.mxu1 %v5137_v13  ;;  %2814 = vmatpush.msra.mxu2 %v7300_v47  ;;  %v658_v29 = vsub.f32 %v271_v58, %v5485_v48 }
  0xf6   : > { %2391 = vmatpush.msra.mxu0 %v5243_v50  ;;  %2229 = vmatpush.msrb.mxu3 %v2228_v10  ;;  %v652_v10 = vsub.f32 %v5473_v45, %v651_v25  ;;  %v714_v47 = vsub.f32 %v285_v39, %v5588_v44 }
  0xf7   : > { %2591 = vmatpush.msra.mxu1 %v5206_v32  ;;  %1150 = vmatmul.f32.gmra.mxu2 %v5364_v41  ;;  %v5507_v41 = vand.u32 4294901760, %v273_v31 }
  0xf8   : > { %2394 = vmatpush.msra.mxu0 %v5269_v26  ;;  %2818 = vmatpush.msra.mxu2 %v2160_v11  ;;  %v7301_v11 = vand.u32 4294901760, %v5243_v50  ;;  %v653_v34 = vand.u32 4294901760, %v652_v10  ;;  %v275_v50 = vld [vmem:[#allocation2 + $0xa0] sm:$0xff] }
  0xf9   : > { %2235 = vmatpush.msrb.mxu3 %v2234_v61  ;;  %2593 = vmatpush.msra.mxu1 %v5211_v12 }
  0xfa   : > { %1349 = vmatmul.f32.gmra.mxu3 %v635_v20  ;;  %2822 = vmatpush.msra.mxu2 %v2166_v36  ;;  %v659_v36 = vand.u32 4294901760, %v658_v29  ;;  %v5526_v20 = vand.u32 4294901760, %v275_v50 }
  0xfb   : > { %2241 = vmatpush.msrb.mxu3 %v2240_v62  ;;  %646 = vmatmul.f32.gmra.mxu0 %v645_v51  ;;  %v287_v62 = vld [vmem:[#allocation2 + $0x100] sm:$0xff] }
  0xfc   : > { %967 = vmatmul.f32.gmra.mxu1 %v5335_v15  ;;  %2826 = vmatpush.msra.mxu2 %v2172_v53  ;;  %v7303_v53 = vand.u32 4294901760, %v5283_v22 }
  0xfd   : > { %2247 = vmatpush.msrb.mxu3 %v2246_v17  ;;  %2595 = vmatpush.msra.mxu1 %v5221_v52  ;;  %v5592_v17 = vand.u32 4294901760, %v287_v62 }
  0xfe   : > { %2830 = vmatpush.msra.mxu2 %v7301_v11  ;;  %2397 = vmatpush.msra.mxu0 %v5283_v22  ;;  %v674_v22 = vsub.f32 %v275_v50, %v5526_v20  ;;  %v291_v50 = vld [vmem:[#allocation2 + $0x120] sm:$0xff] }
  0xff   : > { %3005 = vmatpush.msra.mxu3 %v5154_v18  ;;  %1155 = vmatmul.f32.gmra.mxu2 %v5432_v16  ;;  %v660_v18 = vsub.f32 %v658_v29, %v659_v36 }
 0x100   : > { %2597 = vmatpush.msra.mxu1 %v5254_v5  ;;  %2834 = vmatpush.msra.mxu2 %v7302_v30 }
 0x101   : > { %3007 = vmatpush.msra.mxu3 %v5137_v13  ;;  %2400 = vmatpush.msra.mxu0 %v5299_v42  ;;  %v666_v13 = vsub.f32 %v273_v31, %v5507_v41  ;;  %v277_v42 = vld [vmem:[#allocation2 + $0xb0] sm:$0xff] }
 0x102   : > { %1355 = vmatmul.f32.gmra.mxu3 %v643_v8  ;;  %2599 = vmatpush.msra.mxu1 %v5258_v37  ;;  %v5545_v8 = vand.u32 4294901760, %v277_v42  ;;  %v289_v31 = vld [vmem:[#allocation2 + $0x110] sm:$0xff] }
 0x103   : > { %3009 = vmatpush.msra.mxu3 %v5206_v32  ;;  %654 = vmatmul.f32.gmra.mxu0 %v653_v34  ;;  %v661_v32 = vand.u32 4294901760, %v660_v18  ;;  %v667_v26 = vand.u32 4294901760, %v666_v13 }
 0x104   : > { %971 = vmatmul.f32.gmra.mxu1 %v5406_v23  ;;  %2838 = vmatpush.msra.mxu2 %v7303_v53 }
 0x105   : > { %3011 = vmatpush.msra.mxu3 %v5211_v12  ;;  %2601 = vmatpush.msra.mxu1 %v5273_v2  ;;  %v7304_v12 = vand.u32 4294901760, %v5325_v9 }
 0x106   : > { %2403 = vmatpush.msra.mxu0 %v5325_v9  ;;  %2842 = vmatpush.msra.mxu2 %v2196_v57  ;;  %v675_v57 = vand.u32 4294901760, %v674_v22 }
 0x107   : > { %3013 = vmatpush.msra.mxu3 %v5221_v52  ;;  %1160 = vmatmul.f32.gmra.mxu2 %v5473_v45  ;;  %v668_v52 = vsub.f32 %v666_v13, %v667_v26 }
 0x108   : > { %2603 = vmatpush.msra.mxu1 %v5314_v24  ;;  %2846 = vmatpush.msra.mxu2 %v7304_v12 }
 0x109   : > { %3015 = vmatpush.msra.mxu3 %v5254_v5  ;;  %2406 = vmatpush.msra.mxu0 %v5341_v7  ;;  %v7305_v5 = vand.u32 4294901760, %v5341_v7  ;;  %v669_v9 = vand.u32 4294901760, %v668_v52  ;;  %v682_v7 = vsub.f32 %v277_v42, %v5545_v8 }
 0x10a   : > { %1361 = vmatmul.f32.gmra.mxu3 %v651_v25  ;;  %2605 = vmatpush.msra.mxu1 %v5318_v19  ;;  %v715_v25 = vand.u32 4294901760, %v714_v47 }
 0x10b   : > { %3017 = vmatpush.msra.mxu3 %v5258_v37  ;;  %662 = vmatmul.f32.gmra.mxu0 %v661_v32  ;;  %v7306_v37 = vand.u32 4294901760, %v5357_v0 }
 0x10c   : > { %975 = vmatmul.f32.gmra.mxu1 %v5455_v1  ;;  %2850 = vmatpush.msra.mxu2 %v7305_v5  ;;  %v716_v10 = vsub.f32 %v714_v47, %v715_v25 }
 0x10d   : > { %3019 = vmatpush.msra.mxu3 %v5273_v2  ;;  %2409 = vmatpush.msra.mxu0 %v5357_v0  ;;  %v7307_v2 = vand.u32 4294901760, %v5388_v49  ;;  %v279_v0 = vld [vmem:[#allocation2 + $0xc0] sm:$0xff] }
 0x10e   : > { %2607 = vmatpush.msra.mxu1 %v5329_v63  ;;  %2854 = vmatpush.msra.mxu2 %v7306_v37  ;;  %v717_v11 = vand.u32 4294901760, %v716_v10  ;;  %v293_v37 = vld [vmem:[#allocation2 + $0x130] sm:$0xff] }
 0x10f   : > { %3021 = vmatpush.msra.mxu3 %v5314_v24  ;;  %1165 = vmatmul.f32.gmra.mxu2 %v658_v29  ;;  %v676_v24 = vsub.f32 %v674_v22, %v675_v57  ;;  %v722_v29 = vsub.f32 %v287_v62, %v5592_v17 }
 0x110   : > { %2412 = vmatpush.msra.mxu0 %v5388_v49  ;;  %2609 = vmatpush.msra.mxu1 %v5372_v59  ;;  %v5563_v49 = vand.u32 4294901760, %v279_v0 }
 0x111   : > { %3023 = vmatpush.msra.mxu3 %v5318_v19  ;;  %2858 = vmatpush.msra.mxu2 %v7307_v2  ;;  %v677_v19 = vand.u32 4294901760, %v676_v24  ;;  %v723_v34 = vand.u32 4294901760, %v722_v29 }
 0x112   : > { %1367 = vmatmul.f32.gmra.mxu3 %v659_v36  ;;  %2415 = vmatpush.msra.mxu0 %v5394_v21  ;;  %v281_v21 = vld [vmem:[#allocation2 + $0xd0] sm:$0xff]  ;;  %v5596_v36 = vand.u32 4294901760, %v289_v31 }
 0x113   : > { %3025 = vmatpush.msra.mxu3 %v5329_v63  ;;  %670 = vmatmul.f32.gmra.mxu0 %v669_v9  ;;  %v683_v63 = vand.u32 4294901760, %v682_v7  ;;  %v724_v18 = vsub.f32 %v722_v29, %v723_v34 }
 0x114   : > { %979 = vmatmul.f32.gmra.mxu1 %v5485_v48  ;;  %2862 = vmatpush.msra.mxu2 %v2226_v3  ;;  %v5580_v3 = vand.u32 4294901760, %v281_v21 }
 0x115   : > { %3027 = vmatpush.msra.mxu3 %v5372_v59  ;;  %2611 = vmatpush.msra.mxu1 %v5377_v27  ;;  %v684_v59 = vsub.f32 %v682_v7, %v683_v63  ;;  %v725_v53 = vand.u32 4294901760, %v724_v18 }
 0x116   : > { %2418 = vmatpush.msra.mxu0 %v5411_v35  ;;  %2866 = vmatpush.msra.mxu2 %v2232_v38  ;;  %v698_v16 = vsub.f32 %v281_v21, %v5580_v3  ;;  %v283_v38 = vld [vmem:[#allocation2 + $0xe0] sm:$0xff] }
 0x117   : > { %3029 = vmatpush.msra.mxu3 %v5377_v27  ;;  %2613 = vmatpush.msra.mxu1 %v5382_v60  ;;  %v690_v27 = vsub.f32 %v279_v0, %v5563_v49  ;;  %v5604_v0 = vand.u32 4294901760, %v293_v37 }
 0x118   : > { %1170 = vmatmul.f32.gmra.mxu2 %v666_v13  ;;  %2421 = vmatpush.msra.mxu0 %v5440_v46  ;;  %v730_v13 = vsub.f32 %v289_v31, %v5596_v36 }
 0x119   : > { %3031 = vmatpush.msra.mxu3 %v5382_v60  ;;  %2615 = vmatpush.msra.mxu1 %v5427_v43  ;;  %v685_v60 = vand.u32 4294901760, %v684_v59  ;;  %v691_v35 = vand.u32 4294901760, %v690_v27 }
 0x11a   : > { %1373 = vmatmul.f32.gmra.mxu3 %v667_v26  ;;  %2870 = vmatpush.msra.mxu2 %v2238_v40  ;;  %v699_v40 = vand.u32 4294901760, %v698_v16  ;;  %v731_v32 = vand.u32 4294901760, %v730_v13  ;;  %v5600_v26 = vand.u32 4294901760, %v291_v50 }
 0x11b   : > { %3033 = vmatpush.msra.mxu3 %v5427_v43  ;;  %678 = vmatmul.f32.gmra.mxu0 %v677_v19  ;;  %v692_v43 = vsub.f32 %v690_v27, %v691_v35 }
 0x11c   : > { %983 = vmatmul.f32.gmra.mxu1 %v5507_v41  ;;  %2424 = vmatpush.msra.mxu0 %v5445_v14  ;;  %v700_v14 = vsub.f32 %v698_v16, %v699_v40  ;;  %v732_v52 = vsub.f32 %v730_v13, %v731_v32  ;;  %v738_v42 = vsub.f32 %v291_v50, %v5600_v26 }
 0x11d   : > { %2617 = vmatpush.msra.mxu1 %v5429_v56  ;;  %3035 = vmatpush.msra.mxu3 %v5429_v56  ;;  %v693_v46 = vand.u32 4294901760, %v692_v43  ;;  %v5584_v56 = vand.u32 4294901760, %v283_v38 }
 0x11e   : > { %2874 = vmatpush.msra.mxu2 %v2244_v55  ;;  %v701_v45 = vand.u32 4294901760, %v700_v14  ;;  %v733_v24 = vand.u32 4294901760, %v732_v52 }
 0x11f   : > { %v706_v55 = vsub.f32 %v283_v38, %v5584_v56 }
 0x120   : > { %1175 = vmatmul.f32.gmra.mxu2 %v674_v22 }
 0x121   : > { %v707_v61 = vand.u32 4294901760, %v706_v55 }
 0x122   : > { %1379 = vmatmul.f32.gmra.mxu3 %v675_v57 }
 0x123   : > { %686 = vmatmul.f32.gmra.mxu0 %v685_v60  ;;  %v708_v58 = vsub.f32 %v706_v55, %v707_v61 }
 0x124   : > { %987 = vmatmul.f32.gmra.mxu1 %v5526_v20 }
 0x125   : > { %v709_v51 = vand.u32 4294901760, %v708_v58 }
 0x128   : > { %1180 = vmatmul.f32.gmra.mxu2 %v682_v7  ;;  %v739_v7 = vand.u32 4294901760, %v738_v42 }
 0x12a   : > { %1385 = vmatmul.f32.gmra.mxu3 %v683_v63  ;;  %v740_v59 = vsub.f32 %v738_v42, %v739_v7 }
 0x12b   : > { %694 = vmatmul.f32.gmra.mxu0 %v693_v46 }
 0x12c   : > { %991 = vmatmul.f32.gmra.mxu1 %v5545_v8  ;;  %v741_v46 = vand.u32 4294901760, %v740_v59 }
 0x130   : > { %1185 = vmatmul.f32.gmra.mxu2 %v690_v27  ;;  %v746_v27 = vsub.f32 %v293_v37, %v5604_v0 }
 0x132   : > { %1391 = vmatmul.f32.gmra.mxu3 %v691_v35  ;;  %v295_v35 = vld [vmem:[#allocation2 + $0x140] sm:$0xff] }
 0x133   : > { %702 = vmatmul.f32.gmra.mxu0 %v701_v45  ;;  %v5610_v14 = vand.u32 4294901760, %v295_v35 }
 0x134   : > { %995 = vmatmul.f32.gmra.mxu1 %v5563_v49 }
 0x135   : > { %v754_v45 = vsub.f32 %v295_v35, %v5610_v14 }
 0x137   : > { %v755_v31 = vand.u32 4294901760, %v754_v45 }
 0x138   : > { %1190 = vmatmul.f32.gmra.mxu2 %v698_v16 }
 0x13a   : > { %1397 = vmatmul.f32.gmra.mxu3 %v699_v40  ;;  %v747_v40 = vand.u32 4294901760, %v746_v27 }
 0x13b   : > { %710 = vmatmul.f32.gmra.mxu0 %v709_v51 }
 0x13c   : > { %999 = vmatmul.f32.gmra.mxu1 %v5580_v3  ;;  %v748_v39 = vsub.f32 %v746_v27, %v747_v40 }
 0x140   : > { %1195 = vmatmul.f32.gmra.mxu2 %v706_v55 }
 0x142   : > { %1403 = vmatmul.f32.gmra.mxu3 %v707_v61 }
 0x143   : > { %718 = vmatmul.f32.gmra.mxu0 %v717_v11  ;;  %v599_v30 = vpop.f32.mrf.mxu0 }
 0x144   : > { %1003 = vmatmul.f32.gmra.mxu1 %v5584_v56 }
 0x148   : > { %1200 = vmatmul.f32.gmra.mxu2 %v714_v47  ;;  %v297_v47 = vld [vmem:[#allocation2 + $0x150] sm:$0xff] }
 0x149   : > { %v5616_v11 = vand.u32 4294901760, %v297_v47 }
 0x14a   : > { %1409 = vmatmul.f32.gmra.mxu3 %v715_v25 }
 0x14b   : > { %726 = vmatmul.f32.gmra.mxu0 %v725_v53  ;;  %v607_v12 = vpop.f32.mrf.mxu0  ;;  %v1320_v22 = vpop.f32.mrf.mxu3  ;;  %v762_v18 = vsub.f32 %v297_v47, %v5616_v11 }
 0x14c   : > { %1007 = vmatmul.f32.gmra.mxu1 %v5588_v44  ;;  %v948_v5 = vpop.f32.mrf.mxu1 }
 0x14d   : > { %v949_v9 = vadd.f32 %v948_v5, %v599_v30  ;;  %v756_v30 = vsub.f32 %v754_v45, %v755_v31 }
 0x14e   : > { %v1126_v57 = vpop.f32.mrf.mxu2 }
 0x14f   : > { %v1127_v2 = vadd.f32 %v1126_v57, %v949_v9  ;;  %v757_v52 = vand.u32 4294901760, %v756_v30 }
 0x150   : > { %1205 = vmatmul.f32.gmra.mxu2 %v722_v29  ;;  %v749_v29 = vand.u32 4294901760, %v748_v39 }
 0x151   : > { %v5606_v19 = vadd.f32 %v1320_v22, %v1127_v2  ;;  %v763_v22 = vand.u32 4294901760, %v762_v18 }
 0x152   : > { %1415 = vmatmul.f32.gmra.mxu3 %v723_v34 }
 0x153   : > { %734 = vmatmul.f32.gmra.mxu0 %v733_v24  ;;  %v1326_v60 = vpop.f32.mrf.mxu3  ;;  %v764_v57 = vsub.f32 %v762_v18, %v763_v22  ;;  %v301_v24 = vld [vmem:[#allocation2 + $0x170] sm:$0xff] }
 0x154   : > { %1011 = vmatmul.f32.gmra.mxu1 %v5592_v17  ;;  %v615_v63 = vpop.f32.mrf.mxu0  ;;  %v952_v21 = vpop.f32.mrf.mxu1 }
 0x155   : > { %v953_v43 = vadd.f32 %v952_v21, %v607_v12 }
 0x156   : > { %v1131_v16 = vpop.f32.mrf.mxu2 }
 0x157   : > { %v1132_v38 = vadd.f32 %v1131_v16, %v953_v43 }
 0x158   : > { %1210 = vmatmul.f32.gmra.mxu2 %v730_v13  ;;  %v299_v13 = vld [vmem:[#allocation2 + $0x160] sm:$0xff] }
 0x159   : > { %v5612_v55 = vadd.f32 %v1326_v60, %v1132_v38 }
 0x15a   : > { %1421 = vmatmul.f32.gmra.mxu3 %v731_v32 }
 0x15b   : > { %742 = vmatmul.f32.gmra.mxu0 %v741_v46 }
 0x15c   : > { %1015 = vmatmul.f32.gmra.mxu1 %v5596_v36  ;;  %v623_v61 = vpop.f32.mrf.mxu0  ;;  %v1332_v25 = vpop.f32.mrf.mxu3 }
 0x15d   : > { %v956_v58 = vpop.f32.mrf.mxu1 }
 0x15e   : > { %v957_v62 = vadd.f32 %v956_v58, %v615_v63  ;;  %v1136_v51 = vpop.f32.mrf.mxu2  ;;  %v765_v63 = vand.u32 4294901760, %v764_v57 }
 0x160   : > { %1215 = vmatmul.f32.gmra.mxu2 %v738_v42  ;;  %v1137_v10 = vadd.f32 %v1136_v51, %v957_v62  ;;  %v5622_v42 = vand.u32 4294901760, %v299_v13 }
 0x162   : > { %1427 = vmatmul.f32.gmra.mxu3 %v739_v7  ;;  %v5618_v34 = vadd.f32 %v1332_v25, %v1137_v10  ;;  %v770_v2 = vsub.f32 %v299_v13, %v5622_v42  ;;  %v305_v13 = vld [vmem:[#allocation2 + $0x190] sm:$0xff] }
 0x163   : > { %750 = vmatmul.f32.gmra.mxu0 %v749_v29 }
 0x164   : > { %1019 = vmatmul.f32.gmra.mxu1 %v5600_v26  ;;  %v771_v59 = vand.u32 4294901760, %v770_v2 }
 0x166   : > { %v960_v50 = vpop.f32.mrf.mxu1  ;;  %v631_v53 = vpop.f32.mrf.mxu0  ;;  %v772_v38 = vsub.f32 %v770_v2, %v771_v59 }
 0x167   : > { %v961_v32 = vadd.f32 %v960_v50, %v623_v61  ;;  %v1141_v12 = vpop.f32.mrf.mxu2 }
 0x168   : > { %1220 = vmatmul.f32.gmra.mxu2 %v746_v27  ;;  %v5628_v27 = vand.u32 4294901760, %v301_v24 }
 0x169   : > { %v1142_v5 = vadd.f32 %v1141_v12, %v961_v32  ;;  %v1338_v37 = vpop.f32.mrf.mxu3  ;;  %v5640_v32 = vand.u32 4294901760, %v305_v13 }
 0x16a   : > { %1433 = vmatmul.f32.gmra.mxu3 %v747_v40  ;;  %v778_v46 = vsub.f32 %v301_v24, %v5628_v27  ;;  %v303_v40 = vld [vmem:[#allocation2 + $0x180] sm:$0xff] }
 0x16b   : > { %v5624_v9 = vadd.f32 %v1338_v37, %v1142_v5  ;;  %758 = vmatmul.f32.gmra.mxu0 %v757_v52  ;;  %v5634_v58 = vand.u32 4294901760, %v303_v40  ;;  %v794_v24 = vsub.f32 %v305_v13, %v5640_v32 }
 0x16c   : > { %1023 = vmatmul.f32.gmra.mxu1 %v5604_v0  ;;  %v779_v61 = vand.u32 4294901760, %v778_v46 }
 0x16e   : > { %v780_v29 = vsub.f32 %v778_v46, %v779_v61 }
 0x16f   : > { %v639_v7 = vpop.f32.mrf.mxu0 }
 0x170   : > { %1225 = vmatmul.f32.gmra.mxu2 %v754_v45  ;;  %v773_v45 = vand.u32 4294901760, %v772_v38 }
 0x171   : > { %v964_v21 = vpop.f32.mrf.mxu1  ;;  %v1146_v60 = vpop.f32.mrf.mxu2 }
 0x172   : > { %v965_v35 = vadd.f32 %v964_v21, %v631_v53  ;;  %1439 = vmatmul.f32.gmra.mxu3 %v755_v31  ;;  %v786_v31 = vsub.f32 %v303_v40, %v5634_v58 }
 0x173   : > { %766 = vmatmul.f32.gmra.mxu0 %v765_v63  ;;  %v1344_v16 = vpop.f32.mrf.mxu3  ;;  %v307_v63 = vld [vmem:[#allocation2 + $0x1a0] sm:$0xff] }
 0x174   : > { %v1147_v43 = vadd.f32 %v1146_v60, %v965_v35  ;;  %1027 = vmatmul.f32.gmra.mxu1 %v5610_v14  ;;  %v787_v53 = vand.u32 4294901760, %v786_v31  ;;  %v795_v60 = vand.u32 4294901760, %v794_v24  ;;  %v5646_v35 = vand.u32 4294901760, %v307_v63 }
 0x176   : > { %v5632_v39 = vadd.f32 %v1344_v16, %v1147_v43  ;;  %v788_v57 = vsub.f32 %v786_v31, %v787_v53 }
 0x178   : > { %1230 = vmatmul.f32.gmra.mxu2 %v762_v18  ;;  %v647_v47 = vpop.f32.mrf.mxu0  ;;  %v781_v18 = vand.u32 4294901760, %v780_v29 }
 0x179   : > { %v968_v62 = vpop.f32.mrf.mxu1 }
 0x17a   : > { %v969_v51 = vadd.f32 %v968_v62, %v639_v7  ;;  %1445 = vmatmul.f32.gmra.mxu3 %v763_v22  ;;  %v1151_v25 = vpop.f32.mrf.mxu2 }
 0x17b   : > { %774 = vmatmul.f32.gmra.mxu0 %v773_v45  ;;  %v796_v45 = vsub.f32 %v794_v24, %v795_v60 }
 0x17c   : > { %v1152_v10 = vadd.f32 %v1151_v25, %v969_v51  ;;  %1031 = vmatmul.f32.gmra.mxu1 %v5616_v11  ;;  %v309_v51 = vld [vmem:[#allocation2 + $0x1b0] sm:$0xff] }
 0x17d   : > { %v1350_v30 = vpop.f32.mrf.mxu3  ;;  %v5652_v29 = vand.u32 4294901760, %v309_v51 }
 0x17e   : > { %v5638_v50 = vadd.f32 %v1350_v30, %v1152_v10 }
 0x17f   : > { %7308 = vst [vmem:[#allocation10_spill] sm:$0xff] %v5652_v29 }
 0x180   : > { %1235 = vmatmul.f32.gmra.mxu2 %v770_v2  ;;  %v655_v12 = vpop.f32.mrf.mxu0  ;;  %v789_v2 = vand.u32 4294901760, %v788_v57 }
 0x181   : > { %v972_v52 = vpop.f32.mrf.mxu1 }
 0x182   : > { %v973_v22 = vadd.f32 %v972_v52, %v647_v47  ;;  %1451 = vmatmul.f32.gmra.mxu3 %v771_v59  ;;  %v1156_v5 = vpop.f32.mrf.mxu2  ;;  %v802_v47 = vsub.f32 %v307_v63, %v5646_v35 }
 0x183   : > { %782 = vmatmul.f32.gmra.mxu0 %v781_v18 }
 0x184   : > { %v1157_v37 = vadd.f32 %v1156_v5, %v973_v22  ;;  %1035 = vmatmul.f32.gmra.mxu1 %v5622_v42  ;;  %v803_v10 = vand.u32 4294901760, %v802_v47  ;;  %v810_v22 = vsub.f32 %v309_v51, %v5652_v29 }
 0x185   : > { %v1356_v7 = vpop.f32.mrf.mxu3 }
 0x186   : > { %v5644_v21 = vadd.f32 %v1356_v7, %v1157_v37  ;;  %v804_v52 = vsub.f32 %v802_v47, %v803_v10  ;;  %v311_v37 = vld [vmem:[#allocation2 + $0x1c0] sm:$0xff]  ;;  %v811_v7 = vand.u32 4294901760, %v810_v22 }
 0x187   : > { %v5658_v63 = vand.u32 4294901760, %v311_v37 }
 0x188   : > { %1240 = vmatmul.f32.gmra.mxu2 %v778_v46  ;;  %v663_v43 = vpop.f32.mrf.mxu0  ;;  %v797_v46 = vand.u32 4294901760, %v796_v45 }
 0x189   : > { %v976_v16 = vpop.f32.mrf.mxu1 }
 0x18a   : > { %v977_v59 = vadd.f32 %v976_v16, %v655_v12  ;;  %1457 = vmatmul.f32.gmra.mxu3 %v779_v61  ;;  %v1161_v38 = vpop.f32.mrf.mxu2 }
 0x18b   : > { %790 = vmatmul.f32.gmra.mxu0 %v789_v2 }
 0x18c   : > { %v1162_v40 = vadd.f32 %v1161_v38, %v977_v59  ;;  %1039 = vmatmul.f32.gmra.mxu1 %v5628_v27  ;;  %v812_v38 = vsub.f32 %v810_v22, %v811_v7 }
 0x18d   : > { %v1362_v62 = vpop.f32.mrf.mxu3 }
 0x18e   : > { %v5650_v25 = vadd.f32 %v1362_v62, %v1162_v40  ;;  %v818_v40 = vsub.f32 %v311_v37, %v5658_v63  ;;  %v313_v62 = vld [vmem:[#allocation2 + $0x1d0] sm:$0xff] }
 0x190   : > { %1245 = vmatmul.f32.gmra.mxu2 %v786_v31  ;;  %v671_v30 = vpop.f32.mrf.mxu0  ;;  %v805_v31 = vand.u32 4294901760, %v804_v52 }
 0x191   : > { %v980_v13 = vpop.f32.mrf.mxu1 }
 0x192   : > { %v981_v61 = vadd.f32 %v980_v13, %v663_v43  ;;  %1463 = vmatmul.f32.gmra.mxu3 %v787_v53  ;;  %v1166_v18 = vpop.f32.mrf.mxu2  ;;  %v5664_v13 = vand.u32 4294901760, %v313_v62 }
 0x193   : > { %798 = vmatmul.f32.gmra.mxu0 %v797_v46  ;;  %v819_v46 = vand.u32 4294901760, %v818_v40 }
 0x194   : > { %v1167_v12 = vadd.f32 %v1166_v18, %v981_v61  ;;  %1043 = vmatmul.f32.gmra.mxu1 %v5634_v58 }
 0x195   : > { %v1368_v5 = vpop.f32.mrf.mxu3  ;;  %v820_v52 = vsub.f32 %v818_v40, %v819_v46 }
 0x196   : > { %v5656_v57 = vadd.f32 %v1368_v5, %v1167_v12  ;;  %v826_v5 = vsub.f32 %v313_v62, %v5664_v13 }
 0x198   : > { %1250 = vmatmul.f32.gmra.mxu2 %v794_v24  ;;  %v679_v2 = vpop.f32.mrf.mxu0  ;;  %v813_v24 = vand.u32 4294901760, %v812_v38 }
 0x199   : > { %v984_v43 = vpop.f32.mrf.mxu1 }
 0x19a   : > { %v985_v53 = vadd.f32 %v984_v43, %v671_v30  ;;  %1469 = vmatmul.f32.gmra.mxu3 %v795_v60 }
 0x19b   : > { %v1171_v16 = vpop.f32.mrf.mxu2  ;;  %806 = vmatmul.f32.gmra.mxu0 %v805_v31  ;;  %v315_v31 = vld [vmem:[#allocation2 + $0x1e0] sm:$0xff] }
 0x19c   : > { %v1172_v59 = vadd.f32 %v1171_v16, %v985_v53  ;;  %1047 = vmatmul.f32.gmra.mxu1 %v5640_v32  ;;  %v827_v53 = vand.u32 4294901760, %v826_v5  ;;  %v5670_v16 = vand.u32 4294901760, %v315_v31 }
 0x19d   : > { %v1374_v45 = vpop.f32.mrf.mxu3 }
 0x19e   : > { %v5662_v51 = vadd.f32 %v1374_v45, %v1172_v59  ;;  %v834_v62 = vsub.f32 %v315_v31, %v5670_v16 }
 0x1a0   : > { %1255 = vmatmul.f32.gmra.mxu2 %v802_v47  ;;  %v687_v61 = vpop.f32.mrf.mxu0  ;;  %v821_v47 = vand.u32 4294901760, %v820_v52 }
 0x1a1   : > { %v988_v30 = vpop.f32.mrf.mxu1 }
 0x1a2   : > { %v989_v60 = vadd.f32 %v988_v30, %v679_v2  ;;  %1475 = vmatmul.f32.gmra.mxu3 %v803_v10 }
 0x1a3   : > { %v1176_v18 = vpop.f32.mrf.mxu2  ;;  %814 = vmatmul.f32.gmra.mxu0 %v813_v24  ;;  %v828_v24 = vsub.f32 %v826_v5, %v827_v53 }
 0x1a4   : > { %v1177_v12 = vadd.f32 %v1176_v18, %v989_v60  ;;  %1051 = vmatmul.f32.gmra.mxu1 %v5646_v35  ;;  %v317_v60 = vld [vmem:[#allocation2 + $0x1f0] sm:$0xff] }
 0x1a5   : > { %v1380_v37 = vpop.f32.mrf.mxu3  ;;  %v5676_v52 = vand.u32 4294901760, %v317_v60 }
 0x1a6   : > { %v5668_v43 = vadd.f32 %v1380_v37, %v1177_v12  ;;  %v835_v12 = vand.u32 4294901760, %v834_v62 }
 0x1a7   : > { %v842_v31 = vsub.f32 %v317_v60, %v5676_v52 }
 0x1a8   : > { %7309 = vst [vmem:[#allocation11_spill] sm:$0xff] %v5668_v43  ;;  %1260 = vmatmul.f32.gmra.mxu2 %v810_v22  ;;  %v695_v59 = vpop.f32.mrf.mxu0  ;;  %v829_v22 = vand.u32 4294901760, %v828_v24 }
 0x1a9   : > { %v992_v2 = vpop.f32.mrf.mxu1  ;;  %v843_v24 = vand.u32 4294901760, %v842_v31 }
 0x1aa   : > { %v993_v10 = vadd.f32 %v992_v2, %v687_v61  ;;  %1481 = vmatmul.f32.gmra.mxu3 %v811_v7 }
 0x1ab   : > { %v1181_v38 = vpop.f32.mrf.mxu2  ;;  %822 = vmatmul.f32.gmra.mxu0 %v821_v47 }
 0x1ac   : > { %v1182_v45 = vadd.f32 %v1181_v38, %v993_v10  ;;  %1055 = vmatmul.f32.gmra.mxu1 %v5652_v29  ;;  %v836_v10 = vsub.f32 %v834_v62, %v835_v12  ;;  %v256_v29 = vld [vmem:[#allocation2 + $0x8] sm:$0xff] }
 0x1ad   : > { %v1386_v30 = vpop.f32.mrf.mxu3 }
 0x1ae   : > { %v5674_v18 = vadd.f32 %v1386_v30, %v1182_v45 }
 0x1b0   : > { %7310 = vst [vmem:[#allocation12_spill] sm:$0xff] %v5674_v18  ;;  %1265 = vmatmul.f32.gmra.mxu2 %v818_v40  ;;  %v703_v37 = vpop.f32.mrf.mxu0  ;;  %v837_v40 = vand.u32 4294901760, %v836_v10 }
 0x1b1   : > { %v996_v61 = vpop.f32.mrf.mxu1 }
 0x1b2   : > { %v997_v7 = vadd.f32 %v996_v61, %v695_v59  ;;  %1487 = vmatmul.f32.gmra.mxu3 %v819_v46  ;;  %v5683_v61 = vand.u32 4294901760, %v256_v29 }
 0x1b3   : > { %v1186_v2 = vpop.f32.mrf.mxu2  ;;  %830 = vmatmul.f32.gmra.mxu0 %v829_v22  ;;  %v844_v22 = vsub.f32 %v842_v31, %v843_v24 }
 0x1b4   : > { %v1187_v47 = vadd.f32 %v1186_v2, %v997_v7  ;;  %1059 = vmatmul.f32.gmra.mxu1 %v5658_v63  ;;  %7311 = vst [vmem:[#allocation13_spill] sm:$0xff] %v5683_v61  ;;  %v5688_v2 = vsub.f32 %v256_v29, %v5683_v61 }
 0x1b5   : > { %v1392_v38 = vpop.f32.mrf.mxu3 }
 0x1b6   : > { %v5680_v45 = vadd.f32 %v1392_v38, %v1187_v47  ;;  %v7144_v38 = vand.u32 4294901760, %v5688_v2 }
 0x1b8   : > { %1270 = vmatmul.f32.gmra.mxu2 %v826_v5  ;;  %v711_v30 = vpop.f32.mrf.mxu0  ;;  %v845_v5 = vand.u32 4294901760, %v844_v22  ;;  %v1898_v29 = vsub.f32 %v5688_v2, %v7144_v38  ;;  %v260_v22 = vld [vmem:[#allocation2 + $0x28] sm:$0xff] }
 0x1b9   : > { %v1000_v18 = vpop.f32.mrf.mxu1 }
 0x1ba   : > { %v1001_v43 = vadd.f32 %v1000_v18, %v703_v37  ;;  %1493 = vmatmul.f32.gmra.mxu3 %v827_v53  ;;  %v258_v18 = vld [vmem:[#allocation2 + $0x18] sm:$0xff] }
 0x1bb   : > { %v1191_v46 = vpop.f32.mrf.mxu2  ;;  %838 = vmatmul.f32.gmra.mxu0 %v837_v40  ;;  %v5692_v40 = vand.u32 4294901760, %v258_v18 }
 0x1bc   : > { %v1192_v59 = vadd.f32 %v1191_v46, %v1001_v43  ;;  %1063 = vmatmul.f32.gmra.mxu1 %v5664_v13 }
 0x1bd   : > { %v1398_v60 = vpop.f32.mrf.mxu3  ;;  %7312 = vst [vmem:[#allocation14_spill] sm:$0xff] %v5692_v40 }
 0x1be   : > { %v5685_v7 = vadd.f32 %v1398_v60, %v1192_v59 }
 0x1c0   : > { %1275 = vmatmul.f32.gmra.mxu2 %v834_v62  ;;  %v719_v47 = vpop.f32.mrf.mxu0 }
 0x1c1   : > { %v1004_v10 = vpop.f32.mrf.mxu1 }
 0x1c2   : > { %v1005_v53 = vadd.f32 %v1004_v10, %v711_v30  ;;  %1499 = vmatmul.f32.gmra.mxu3 %v835_v12  ;;  %v5700_v30 = vsub.f32 %v258_v18, %v5692_v40 }
 0x1c3   : > { %v1196_v43 = vpop.f32.mrf.mxu2  ;;  %846 = vmatmul.f32.gmra.mxu0 %v845_v5 }
 0x1c4   : > { %v1197_v37 = vadd.f32 %v1196_v43, %v1005_v53  ;;  %1067 = vmatmul.f32.gmra.mxu1 %v5670_v16  ;;  %7313 = vst [vmem:[#allocation15_spill] sm:$0xff] %v5700_v30  ;;  %v1899_v53 = vand.u32 4294901760, %v1898_v29  ;;  %v5705_v43 = vand.u32 4294901760, %v260_v22 }
 0x1c5   : > { %v1404_v46 = vpop.f32.mrf.mxu3 }
 0x1c6   : > { %v5694_v62 = vadd.f32 %v1404_v46, %v1197_v37  ;;  %7314 = vst [vmem:[#allocation16_spill] sm:$0xff] %v5705_v43 }
 0x1c8   : > { %1280 = vmatmul.f32.gmra.mxu2 %v842_v31  ;;  %v727_v12 = vpop.f32.mrf.mxu0  ;;  %v7145_v31 = vand.u32 4294901760, %v5700_v30 }
 0x1c9   : > { %v1008_v59 = vpop.f32.mrf.mxu1 }
 0x1ca   : > { %v1009_v60 = vadd.f32 %v1008_v59, %v719_v47  ;;  %1505 = vmatmul.f32.gmra.mxu3 %v843_v24  ;;  %v1906_v47 = vsub.f32 %v5700_v30, %v7145_v31  ;;  %v5713_v24 = vsub.f32 %v260_v22, %v5705_v43  ;;  %v264_v30 = vld [vmem:[#allocation2 + $0x48] sm:$0xff] }
 0x1cb   : > { %v1201_v5 = vpop.f32.mrf.mxu2  ;;  %1574 = vmatmul.f32.vlgmr.msrb.gmra.mxu0 %v5048_v54 }
 0x1cc   : > { %v1202_v10 = vadd.f32 %v1201_v5, %v1009_v60  ;;  %1071 = vmatmul.f32.gmra.mxu1 %v5676_v52  ;;  %7315 = vst [vmem:[#allocation17_spill] sm:$0xff] %v5713_v24  ;;  %v262_v60 = vld [vmem:[#allocation2 + $0x38] sm:$0xff] }
 0x1cd   : > { %v1410_v37 = vpop.f32.mrf.mxu3 }
 0x1ce   : > { %v5707_v46 = vadd.f32 %v1410_v37, %v1202_v10  ;;  %v1907_v10 = vand.u32 4294901760, %v1906_v47  ;;  %v5719_v37 = vand.u32 4294901760, %v262_v60 }
 0x1d0   : > { %1900 = vmatmul.f32.vlgmr.msrb.gmra.mxu2 %v1899_v53  ;;  %v735_v18 = vpop.f32.mrf.mxu0  ;;  %v7150_v53 = vand.u32 4294901760, %v5713_v24  ;;  %7316 = vst [vmem:[#allocation18_spill] sm:$0xff] %v5719_v37 }
 0x1d1   : > { %v1012_v59 = vpop.f32.mrf.mxu1 }
 0x1d2   : > { %v1013_v5 = vadd.f32 %v1012_v59, %v727_v12  ;;  %2249 = vmatmul.f32.vlgmr.msrb.gmra.mxu3 %v5683_v61  ;;  %v1914_v12 = vsub.f32 %v5713_v24, %v7150_v53  ;;  %v5727_v59 = vsub.f32 %v262_v60, %v5719_v37  ;;  %v266_v24 = vld [vmem:[#allocation2 + $0x58] sm:$0xff] }
 0x1d3   : > { %v1206_v29 = vpop.f32.mrf.mxu2  ;;  %1578 = vmatmul.f32.gmra.mxu0 %v5089_v28 }
 0x1d4   : > { %v1207_v38 = vadd.f32 %v1206_v29, %v1013_v5  ;;  %1735 = vmatmul.f32.vlgmr.msrb.gmra.mxu1 %v5048_v54  ;;  %7317 = vst [vmem:[#allocation19_spill] sm:$0xff] %v5727_v59 }
 0x1d5   : > { %v1416_v31 = vpop.f32.mrf.mxu3 }
 0x1d6   : > { %v5721_v22 = vadd.f32 %v1416_v31, %v1207_v38  ;;  %v1915_v38 = vand.u32 4294901760, %v1914_v12  ;;  %v7155_v31 = vand.u32 4294901760, %v5727_v59 }
 0x1d8   : > { %1908 = vmatmul.f32.gmra.mxu2 %v1907_v10  ;;  %v743_v5 = vpop.f32.mrf.mxu0  ;;  %v5733_v10 = vand.u32 4294901760, %v264_v30 }
 0x1d9   : > { %v1016_v29 = vpop.f32.mrf.mxu1 }
 0x1da   : > { %v1017_v54 = vadd.f32 %v1016_v29, %v735_v18  ;;  %2253 = vmatmul.f32.gmra.mxu3 %v5692_v40  ;;  %7318 = vst [vmem:[#allocation20_spill] sm:$0xff] %v5733_v10  ;;  %v1922_v18 = vsub.f32 %v5727_v59, %v7155_v31  ;;  %v5741_v29 = vsub.f32 %v264_v30, %v5733_v10  ;;  %v268_v59 = vld [vmem:[#allocation2 + $0x68] sm:$0xff] }
 0x1db   : > { %v1211_v47 = vpop.f32.mrf.mxu2  ;;  %1582 = vmatmul.f32.gmra.mxu0 %v5148_v6 }
 0x1dc   : > { %v1212_v61 = vadd.f32 %v1211_v47, %v1017_v54  ;;  %1739 = vmatmul.f32.gmra.mxu1 %v5089_v28  ;;  %7319 = vst [vmem:[#allocation21_spill] sm:$0xff] %v5741_v29 }
 0x1dd   : > { %v1422_v53 = vpop.f32.mrf.mxu3 }
 0x1de   : > { %v5735_v60 = vadd.f32 %v1422_v53, %v1212_v61  ;;  %v1923_v61 = vand.u32 4294901760, %v1922_v18  ;;  %v7160_v53 = vand.u32 4294901760, %v5741_v29 }
 0x1e0   : > { %1916 = vmatmul.f32.gmra.mxu2 %v1915_v38  ;;  %v751_v54 = vpop.f32.mrf.mxu0  ;;  %v5747_v38 = vand.u32 4294901760, %v266_v24 }
 0x1e1   : > { %v1020_v47 = vpop.f32.mrf.mxu1 }
 0x1e2   : > { %v1021_v28 = vadd.f32 %v1020_v47, %v743_v5  ;;  %2257 = vmatmul.f32.gmra.mxu3 %v5705_v43  ;;  %7320 = vst [vmem:[#allocation22_spill] sm:$0xff] %v5747_v38  ;;  %v1930_v5 = vsub.f32 %v5741_v29, %v7160_v53  ;;  %v5755_v47 = vsub.f32 %v266_v24, %v5747_v38  ;;  %v270_v29 = vld [vmem:[#allocation2 + $0x78] sm:$0xff] }
 0x1e3   : > { %v1216_v12 = vpop.f32.mrf.mxu2  ;;  %1586 = vmatmul.f32.gmra.mxu0 %v5204_v33 }
 0x1e4   : > { %v1217_v40 = vadd.f32 %v1216_v12, %v1021_v28  ;;  %1743 = vmatmul.f32.gmra.mxu1 %v5148_v6  ;;  %7321 = vst [vmem:[#allocation23_spill] sm:$0xff] %v5755_v47 }
 0x1e5   : > { %v1428_v31 = vpop.f32.mrf.mxu3 }
 0x1e6   : > { %v5749_v30 = vadd.f32 %v1428_v31, %v1217_v40  ;;  %v1931_v40 = vand.u32 4294901760, %v1930_v5  ;;  %v7165_v31 = vand.u32 4294901760, %v5755_v47 }
 0x1e8   : > { %1924 = vmatmul.f32.gmra.mxu2 %v1923_v61  ;;  %v759_v28 = vpop.f32.mrf.mxu0  ;;  %v5761_v61 = vand.u32 4294901760, %v268_v59 }
 0x1e9   : > { %v1024_v12 = vpop.f32.mrf.mxu1 }
 0x1ea   : > { %v1025_v6 = vadd.f32 %v1024_v12, %v751_v54  ;;  %2261 = vmatmul.f32.gmra.mxu3 %v5719_v37  ;;  %7322 = vst [vmem:[#allocation24_spill] sm:$0xff] %v5761_v61  ;;  %v1938_v54 = vsub.f32 %v5755_v47, %v7165_v31  ;;  %v5769_v12 = vsub.f32 %v268_v59, %v5761_v61  ;;  %v272_v47 = vld [vmem:[#allocation2 + $0x88] sm:$0xff] }
 0x1eb   : > { %v1221_v18 = vpop.f32.mrf.mxu2  ;;  %1590 = vmatmul.f32.gmra.mxu0 %v5266_v4 }
 0x1ec   : > { %v1222_v43 = vadd.f32 %v1221_v18, %v1025_v6  ;;  %1747 = vmatmul.f32.gmra.mxu1 %v5204_v33  ;;  %7323 = vst [vmem:[#allocation25_spill] sm:$0xff] %v5769_v12 }
 0x1ed   : > { %v1434_v53 = vpop.f32.mrf.mxu3 }
 0x1ee   : > { %v5763_v24 = vadd.f32 %v1434_v53, %v1222_v43  ;;  %v1939_v43 = vand.u32 4294901760, %v1938_v54  ;;  %v7170_v53 = vand.u32 4294901760, %v5769_v12 }
 0x1f0   : > { %1932 = vmatmul.f32.gmra.mxu2 %v1931_v40  ;;  %v767_v6 = vpop.f32.mrf.mxu0  ;;  %v5775_v40 = vand.u32 4294901760, %v270_v29 }
 0x1f1   : > { %v1028_v18 = vpop.f32.mrf.mxu1 }
 0x1f2   : > { %v1029_v33 = vadd.f32 %v1028_v18, %v759_v28  ;;  %2265 = vmatmul.f32.gmra.mxu3 %v5733_v10  ;;  %7324 = vst [vmem:[#allocation26_spill] sm:$0xff] %v5775_v40  ;;  %v1946_v28 = vsub.f32 %v5769_v12, %v7170_v53  ;;  %v5783_v18 = vsub.f32 %v270_v29, %v5775_v40  ;;  %v274_v12 = vld [vmem:[#allocation2 + $0x98] sm:$0xff] }
 0x1f3   : > { %v1226_v5 = vpop.f32.mrf.mxu2  ;;  %1594 = vmatmul.f32.gmra.mxu0 %v5335_v15 }
 0x1f4   : > { %v1227_v37 = vadd.f32 %v1226_v5, %v1029_v33  ;;  %1751 = vmatmul.f32.gmra.mxu1 %v5266_v4  ;;  %7325 = vst [vmem:[#allocation27_spill] sm:$0xff] %v5783_v18 }
 0x1f5   : > { %v1440_v31 = vpop.f32.mrf.mxu3 }
 0x1f6   : > { %v5777_v59 = vadd.f32 %v1440_v31, %v1227_v37  ;;  %v1947_v37 = vand.u32 4294901760, %v1946_v28  ;;  %v7175_v31 = vand.u32 4294901760, %v5783_v18 }
 0x1f8   : > { %1940 = vmatmul.f32.gmra.mxu2 %v1939_v43  ;;  %v775_v33 = vpop.f32.mrf.mxu0  ;;  %v5789_v43 = vand.u32 4294901760, %v272_v47 }
 0x1f9   : > { %v1032_v5 = vpop.f32.mrf.mxu1 }
 0x1fa   : > { %v1033_v4 = vadd.f32 %v1032_v5, %v767_v6  ;;  %2269 = vmatmul.f32.gmra.mxu3 %v5747_v38  ;;  %7326 = vst [vmem:[#allocation28_spill] sm:$0xff] %v5789_v43  ;;  %v1954_v6 = vsub.f32 %v5783_v18, %v7175_v31  ;;  %v5797_v5 = vsub.f32 %v272_v47, %v5789_v43  ;;  %v276_v18 = vld [vmem:[#allocation2 + $0xa8] sm:$0xff] }
 0x1fb   : > { %v1231_v54 = vpop.f32.mrf.mxu2  ;;  %1598 = vmatmul.f32.gmra.mxu0 %v5406_v23 }
 0x1fc   : > { %v1232_v10 = vadd.f32 %v1231_v54, %v1033_v4  ;;  %1755 = vmatmul.f32.gmra.mxu1 %v5335_v15  ;;  %7327 = vst [vmem:[#allocation29_spill] sm:$0xff] %v5797_v5 }
 0x1fd   : > { %v1446_v53 = vpop.f32.mrf.mxu3 }
 0x1fe   : > { %v5791_v29 = vadd.f32 %v1446_v53, %v1232_v10  ;;  %v1955_v10 = vand.u32 4294901760, %v1954_v6  ;;  %v7180_v53 = vand.u32 4294901760, %v5797_v5 }
 0x200   : > { %1948 = vmatmul.f32.gmra.mxu2 %v1947_v37  ;;  %v783_v4 = vpop.f32.mrf.mxu0  ;;  %v5803_v37 = vand.u32 4294901760, %v274_v12 }
 0x201   : > { %v1036_v54 = vpop.f32.mrf.mxu1 }
 0x202   : > { %v1037_v15 = vadd.f32 %v1036_v54, %v775_v33  ;;  %2273 = vmatmul.f32.gmra.mxu3 %v5761_v61  ;;  %7328 = vst [vmem:[#allocation30_spill] sm:$0xff] %v5803_v37  ;;  %v1962_v33 = vsub.f32 %v5797_v5, %v7180_v53  ;;  %v5811_v54 = vsub.f32 %v274_v12, %v5803_v37  ;;  %v278_v5 = vld [vmem:[#allocation2 + $0xb8] sm:$0xff] }
 0x203   : > { %v1236_v28 = vpop.f32.mrf.mxu2  ;;  %1602 = vmatmul.f32.gmra.mxu0 %v5455_v1 }
 0x204   : > { %v1237_v38 = vadd.f32 %v1236_v28, %v1037_v15  ;;  %1759 = vmatmul.f32.gmra.mxu1 %v5406_v23  ;;  %7329 = vst [vmem:[#allocation31_spill] sm:$0xff] %v5811_v54 }
 0x205   : > { %v1452_v31 = vpop.f32.mrf.mxu3 }
 0x206   : > { %v5805_v47 = vadd.f32 %v1452_v31, %v1237_v38  ;;  %v1963_v38 = vand.u32 4294901760, %v1962_v33  ;;  %v7185_v31 = vand.u32 4294901760, %v5811_v54 }
 0x208   : > { %1956 = vmatmul.f32.gmra.mxu2 %v1955_v10  ;;  %v791_v15 = vpop.f32.mrf.mxu0  ;;  %v5817_v10 = vand.u32 4294901760, %v276_v18 }
 0x209   : > { %v1040_v28 = vpop.f32.mrf.mxu1 }
 0x20a   : > { %v1041_v23 = vadd.f32 %v1040_v28, %v783_v4  ;;  %2277 = vmatmul.f32.gmra.mxu3 %v5775_v40  ;;  %7330 = vst [vmem:[#allocation32_spill] sm:$0xff] %v5817_v10  ;;  %v1970_v4 = vsub.f32 %v5811_v54, %v7185_v31  ;;  %v5825_v28 = vsub.f32 %v276_v18, %v5817_v10  ;;  %v280_v54 = vld [vmem:[#allocation2 + $0xc8] sm:$0xff] }
 0x20b   : > { %v1241_v6 = vpop.f32.mrf.mxu2  ;;  %1606 = vmatmul.f32.gmra.mxu0 %v5485_v48 }
 0x20c   : > { %v1242_v61 = vadd.f32 %v1241_v6, %v1041_v23  ;;  %1763 = vmatmul.f32.gmra.mxu1 %v5455_v1  ;;  %7331 = vst [vmem:[#allocation33_spill] sm:$0xff] %v5825_v28 }
 0x20d   : > { %v1458_v53 = vpop.f32.mrf.mxu3 }
 0x20e   : > { %v5819_v12 = vadd.f32 %v1458_v53, %v1242_v61  ;;  %v1971_v61 = vand.u32 4294901760, %v1970_v4  ;;  %v7190_v53 = vand.u32 4294901760, %v5825_v28 }
 0x210   : > { %1964 = vmatmul.f32.gmra.mxu2 %v1963_v38  ;;  %v799_v23 = vpop.f32.mrf.mxu0  ;;  %v5831_v38 = vand.u32 4294901760, %v278_v5 }
 0x211   : > { %v1044_v6 = vpop.f32.mrf.mxu1 }
 0x212   : > { %v1045_v1 = vadd.f32 %v1044_v6, %v791_v15  ;;  %2281 = vmatmul.f32.gmra.mxu3 %v5789_v43  ;;  %7332 = vst [vmem:[#allocation34_spill] sm:$0xff] %v5831_v38  ;;  %v1978_v15 = vsub.f32 %v5825_v28, %v7190_v53  ;;  %v5839_v6 = vsub.f32 %v278_v5, %v5831_v38  ;;  %v282_v28 = vld [vmem:[#allocation2 + $0xd8] sm:$0xff] }
 0x213   : > { %v1246_v33 = vpop.f32.mrf.mxu2  ;;  %1610 = vmatmul.f32.gmra.mxu0 %v5507_v41 }
 0x214   : > { %v1247_v40 = vadd.f32 %v1246_v33, %v1045_v1  ;;  %1767 = vmatmul.f32.gmra.mxu1 %v5485_v48  ;;  %7333 = vst [vmem:[#allocation35_spill] sm:$0xff] %v5839_v6 }
 0x215   : > { %v1464_v31 = vpop.f32.mrf.mxu3 }
 0x216   : > { %v5833_v18 = vadd.f32 %v1464_v31, %v1247_v40  ;;  %v1979_v40 = vand.u32 4294901760, %v1978_v15  ;;  %v7195_v31 = vand.u32 4294901760, %v5839_v6 }
 0x218   : > { %1972 = vmatmul.f32.gmra.mxu2 %v1971_v61  ;;  %v807_v1 = vpop.f32.mrf.mxu0  ;;  %v5845_v61 = vand.u32 4294901760, %v280_v54 }
 0x219   : > { %v1048_v33 = vpop.f32.mrf.mxu1 }
 0x21a   : > { %v1049_v48 = vadd.f32 %v1048_v33, %v799_v23  ;;  %2285 = vmatmul.f32.gmra.mxu3 %v5803_v37  ;;  %7334 = vst [vmem:[#allocation36_spill] sm:$0xff] %v5845_v61  ;;  %v1986_v23 = vsub.f32 %v5839_v6, %v7195_v31  ;;  %v5853_v33 = vsub.f32 %v280_v54, %v5845_v61  ;;  %v284_v6 = vld [vmem:[#allocation2 + $0xe8] sm:$0xff] }
 0x21b   : > { %v1251_v4 = vpop.f32.mrf.mxu2  ;;  %1614 = vmatmul.f32.gmra.mxu0 %v5526_v20 }
 0x21c   : > { %v1252_v43 = vadd.f32 %v1251_v4, %v1049_v48  ;;  %1771 = vmatmul.f32.gmra.mxu1 %v5507_v41  ;;  %7335 = vst [vmem:[#allocation37_spill] sm:$0xff] %v5853_v33 }
 0x21d   : > { %v1470_v53 = vpop.f32.mrf.mxu3 }
 0x21e   : > { %v5847_v5 = vadd.f32 %v1470_v53, %v1252_v43  ;;  %v1987_v43 = vand.u32 4294901760, %v1986_v23  ;;  %v7200_v53 = vand.u32 4294901760, %v5853_v33 }
 0x220   : > { %1980 = vmatmul.f32.gmra.mxu2 %v1979_v40  ;;  %v815_v48 = vpop.f32.mrf.mxu0  ;;  %v5859_v40 = vand.u32 4294901760, %v282_v28 }
 0x221   : > { %v1052_v4 = vpop.f32.mrf.mxu1 }
 0x222   : > { %v1053_v41 = vadd.f32 %v1052_v4, %v807_v1  ;;  %2289 = vmatmul.f32.gmra.mxu3 %v5817_v10  ;;  %7336 = vst [vmem:[#allocation38_spill] sm:$0xff] %v5859_v40  ;;  %v1994_v1 = vsub.f32 %v5853_v33, %v7200_v53  ;;  %v5867_v4 = vsub.f32 %v282_v28, %v5859_v40  ;;  %v286_v33 = vld [vmem:[#allocation2 + $0xf8] sm:$0xff] }
 0x223   : > { %v1256_v15 = vpop.f32.mrf.mxu2  ;;  %1618 = vmatmul.f32.gmra.mxu0 %v5545_v8 }
 0x224   : > { %v1257_v37 = vadd.f32 %v1256_v15, %v1053_v41  ;;  %1775 = vmatmul.f32.gmra.mxu1 %v5526_v20  ;;  %7337 = vst [vmem:[#allocation39_spill] sm:$0xff] %v5867_v4 }
 0x225   : > { %v1476_v31 = vpop.f32.mrf.mxu3 }
 0x226   : > { %v5861_v54 = vadd.f32 %v1476_v31, %v1257_v37  ;;  %v1995_v37 = vand.u32 4294901760, %v1994_v1  ;;  %v7205_v31 = vand.u32 4294901760, %v5867_v4 }
 0x228   : > { %1988 = vmatmul.f32.gmra.mxu2 %v1987_v43  ;;  %v823_v41 = vpop.f32.mrf.mxu0  ;;  %v5873_v43 = vand.u32 4294901760, %v284_v6 }
 0x229   : > { %v1056_v15 = vpop.f32.mrf.mxu1 }
 0x22a   : > { %v1057_v20 = vadd.f32 %v1056_v15, %v815_v48  ;;  %2293 = vmatmul.f32.gmra.mxu3 %v5831_v38  ;;  %7338 = vst [vmem:[#allocation40_spill] sm:$0xff] %v5873_v43  ;;  %v2002_v48 = vsub.f32 %v5867_v4, %v7205_v31  ;;  %v5881_v15 = vsub.f32 %v284_v6, %v5873_v43  ;;  %v288_v4 = vld [vmem:[#allocation2 + $0x108] sm:$0xff] }
 0x22b   : > { %v1261_v23 = vpop.f32.mrf.mxu2  ;;  %1622 = vmatmul.f32.gmra.mxu0 %v5563_v49 }
 0x22c   : > { %v1262_v10 = vadd.f32 %v1261_v23, %v1057_v20  ;;  %1779 = vmatmul.f32.gmra.mxu1 %v5545_v8  ;;  %7339 = vst [vmem:[#allocation41_spill] sm:$0xff] %v5881_v15 }
 0x22d   : > { %v1482_v53 = vpop.f32.mrf.mxu3 }
 0x22e   : > { %v5875_v28 = vadd.f32 %v1482_v53, %v1262_v10  ;;  %v2003_v10 = vand.u32 4294901760, %v2002_v48  ;;  %v7210_v53 = vand.u32 4294901760, %v5881_v15 }
 0x230   : > { %1996 = vmatmul.f32.gmra.mxu2 %v1995_v37  ;;  %v831_v20 = vpop.f32.mrf.mxu0  ;;  %v5887_v37 = vand.u32 4294901760, %v286_v33 }
 0x231   : > { %v1060_v23 = vpop.f32.mrf.mxu1 }
 0x232   : > { %v1061_v8 = vadd.f32 %v1060_v23, %v823_v41  ;;  %2297 = vmatmul.f32.gmra.mxu3 %v5845_v61  ;;  %7340 = vst [vmem:[#allocation42_spill] sm:$0xff] %v5887_v37  ;;  %v2010_v41 = vsub.f32 %v5881_v15, %v7210_v53  ;;  %v5895_v23 = vsub.f32 %v286_v33, %v5887_v37  ;;  %v290_v15 = vld [vmem:[#allocation2 + $0x118] sm:$0xff] }
 0x233   : > { %v1266_v1 = vpop.f32.mrf.mxu2  ;;  %1626 = vmatmul.f32.gmra.mxu0 %v5580_v3 }
 0x234   : > { %v1267_v38 = vadd.f32 %v1266_v1, %v1061_v8  ;;  %1783 = vmatmul.f32.gmra.mxu1 %v5563_v49  ;;  %7341 = vst [vmem:[#allocation43_spill] sm:$0xff] %v5895_v23 }
 0x235   : > { %v1488_v31 = vpop.f32.mrf.mxu3 }
 0x236   : > { %v5889_v6 = vadd.f32 %v1488_v31, %v1267_v38  ;;  %v2011_v38 = vand.u32 4294901760, %v2010_v41  ;;  %v7215_v31 = vand.u32 4294901760, %v5895_v23 }
 0x238   : > { %2004 = vmatmul.f32.gmra.mxu2 %v2003_v10  ;;  %v839_v8 = vpop.f32.mrf.mxu0  ;;  %v5901_v10 = vand.u32 4294901760, %v288_v4 }
 0x239   : > { %v1064_v1 = vpop.f32.mrf.mxu1 }
 0x23a   : > { %v1065_v49 = vadd.f32 %v1064_v1, %v831_v20  ;;  %2301 = vmatmul.f32.gmra.mxu3 %v5859_v40  ;;  %v2018_v20 = vsub.f32 %v5895_v23, %v7215_v31  ;;  %v5909_v1 = vsub.f32 %v288_v4, %v5901_v10  ;;  %v292_v23 = vld [vmem:[#allocation2 + $0x128] sm:$0xff] }
 0x23b   : > { %v1271_v48 = vpop.f32.mrf.mxu2  ;;  %1630 = vmatmul.f32.gmra.mxu0 %v5584_v56 }
 0x23c   : > { %v1272_v61 = vadd.f32 %v1271_v48, %v1065_v49  ;;  %1787 = vmatmul.f32.gmra.mxu1 %v5580_v3  ;;  %7342 = vst [vmem:[#allocation44_spill] sm:$0xff] %v5909_v1 }
 0x23d   : > { %v1494_v53 = vpop.f32.mrf.mxu3 }
 0x23e   : > { %v5903_v33 = vadd.f32 %v1494_v53, %v1272_v61  ;;  %v2019_v61 = vand.u32 4294901760, %v2018_v20  ;;  %v7220_v53 = vand.u32 4294901760, %v5909_v1 }
 0x240   : > { %2012 = vmatmul.f32.gmra.mxu2 %v2011_v38  ;;  %v847_v49 = vpop.f32.mrf.mxu0  ;;  %v5915_v38 = vand.u32 4294901760, %v290_v15 }
 0x241   : > { %v1068_v48 = vpop.f32.mrf.mxu1 }
 0x242   : > { %v1069_v3 = vadd.f32 %v1068_v48, %v839_v8  ;;  %2305 = vmatmul.f32.gmra.mxu3 %v5873_v43  ;;  %v2026_v8 = vsub.f32 %v5909_v1, %v7220_v53  ;;  %v5923_v48 = vsub.f32 %v290_v15, %v5915_v38 }
 0x243   : > { %v1276_v41 = vpop.f32.mrf.mxu2  ;;  %1634 = vmatmul.f32.gmra.mxu0 %v5588_v44 }
 0x244   : > { %v1277_v40 = vadd.f32 %v1276_v41, %v1069_v3  ;;  %1791 = vmatmul.f32.gmra.mxu1 %v5584_v56  ;;  %7344 = vst [vmem:[#allocation46_spill] sm:$0xff] %v5923_v48 }
 0x245   : > { %v1500_v31 = vpop.f32.mrf.mxu3 }
 0x246   : > { %v5917_v4 = vadd.f32 %v1500_v31, %v1277_v40  ;;  %v2027_v40 = vand.u32 4294901760, %v2026_v8  ;;  %v7225_v31 = vand.u32 4294901760, %v5923_v48  ;;  %v294_v8 = vld [vmem:[#allocation2 + $0x138] sm:$0xff] }
 0x248   : > { %7343 = vst [vmem:[#allocation45_spill] sm:$0xff] %v5917_v4  ;;  %2020 = vmatmul.f32.gmra.mxu2 %v2019_v61  ;;  %v1575_v41 = vpop.f32.mrf.mxu0  ;;  %v5929_v61 = vand.u32 4294901760, %v292_v23 }
 0x249   : > { %v1072_v3 = vpop.f32.mrf.mxu1  ;;  %v1576_v1 = vadd.f32 %v1575_v41, %v5606_v19 }
 0x24a   : > { %v1073_v56 = vadd.f32 %v1072_v3, %v847_v49  ;;  %2309 = vmatmul.f32.gmra.mxu3 %v5887_v37  ;;  %v2034_v49 = vsub.f32 %v5923_v48, %v7225_v31  ;;  %v5938_v3 = vsub.f32 %v292_v23, %v5929_v61 }
 0x24b   : > { %v1281_v20 = vpop.f32.mrf.mxu2  ;;  %1638 = vmatmul.f32.gmra.mxu0 %v5592_v17 }
 0x24c   : > { %v1282_v43 = vadd.f32 %v1281_v20, %v1073_v56  ;;  %1795 = vmatmul.f32.gmra.mxu1 %v5588_v44  ;;  %7345 = vst [vmem:[#allocation47_spill] sm:$0xff] %v5938_v3  ;;  %v2035_v19 = vand.u32 4294901760, %v2034_v49  ;;  %v296_v49 = vld [vmem:[#allocation2 + $0x148] sm:$0xff] }
 0x24d   : > { %v1506_v53 = vpop.f32.mrf.mxu3 }
 0x24e   : > { %v5931_v15 = vadd.f32 %v1506_v53, %v1282_v43  ;;  %v7228_v43 = vand.u32 4294901760, %v5938_v3  ;;  %v5944_v53 = vand.u32 4294901760, %v294_v8 }
 0x250   : > { %2028 = vmatmul.f32.gmra.mxu2 %v2027_v40  ;;  %v1579_v56 = vpop.f32.mrf.mxu0 }
 0x251   : > { %v1736_v44 = vpop.f32.mrf.mxu1  ;;  %v1580_v40 = vadd.f32 %v1579_v56, %v5612_v55  ;;  %v5959_v56 = vand.u32 4294901760, %v296_v49 }
 0x252   : > { %v1737_v20 = vadd.f32 %v1736_v44, %v1576_v1  ;;  %2313 = vmatmul.f32.gmra.mxu3 %v5901_v10  ;;  %v2042_v1 = vsub.f32 %v5938_v3, %v7228_v43 }
 0x253   : > { %v1901_v37 = vpop.f32.mrf.mxu2  ;;  %1642 = vmatmul.f32.gmra.mxu0 %v5596_v36 }
 0x254   : > { %v1902_v4 = vadd.f32 %v1901_v37, %v1737_v20  ;;  %1799 = vmatmul.f32.gmra.mxu1 %v5592_v17  ;;  %v5953_v37 = vsub.f32 %v294_v8, %v5944_v53  ;;  %v2043_v55 = vand.u32 4294901760, %v2042_v1  ;;  %v298_v1 = vld [vmem:[#allocation2 + $0x158] sm:$0xff] }
 0x255   : > { %v2250_v41 = vpop.f32.mrf.mxu3 }
 0x256   : > { %v5946_v23 = vadd.f32 %v2250_v41, %v1902_v4  ;;  %7346 = vst [vmem:[#allocation48_spill] sm:$0xff] %v5953_v37  ;;  %v7231_v4 = vand.u32 4294901760, %v5953_v37 }
 0x258   : > { %2036 = vmatmul.f32.gmra.mxu2 %v2035_v19  ;;  %v1583_v44 = vpop.f32.mrf.mxu0 }
 0x259   : > { %v1740_v17 = vpop.f32.mrf.mxu1  ;;  %v1584_v41 = vadd.f32 %v1583_v44, %v5618_v34  ;;  %v5974_v44 = vand.u32 4294901760, %v298_v1 }
 0x25a   : > { %v1741_v20 = vadd.f32 %v1740_v17, %v1580_v40  ;;  %2317 = vmatmul.f32.gmra.mxu3 %v5915_v38  ;;  %v2050_v40 = vsub.f32 %v5953_v37, %v7231_v4 }
 0x25b   : > { %v1909_v31 = vpop.f32.mrf.mxu2  ;;  %1646 = vmatmul.f32.gmra.mxu0 %v5600_v26 }
 0x25c   : > { %v1910_v48 = vadd.f32 %v1909_v31, %v1741_v20  ;;  %1803 = vmatmul.f32.gmra.mxu1 %v5596_v36  ;;  %v5968_v31 = vsub.f32 %v296_v49, %v5959_v56  ;;  %v2051_v34 = vand.u32 4294901760, %v2050_v40  ;;  %v300_v40 = vld [vmem:[#allocation2 + $0x168] sm:$0xff] }
 0x25d   : > { %v2254_v19 = vpop.f32.mrf.mxu3 }
 0x25e   : > { %v5961_v8 = vadd.f32 %v2254_v19, %v1910_v48  ;;  %7347 = vst [vmem:[#allocation49_spill] sm:$0xff] %v5968_v31  ;;  %v7234_v48 = vand.u32 4294901760, %v5968_v31 }
 0x260   : > { %2044 = vmatmul.f32.gmra.mxu2 %v2043_v55  ;;  %v1587_v17 = vpop.f32.mrf.mxu0 }
 0x261   : > { %v1744_v36 = vpop.f32.mrf.mxu1  ;;  %v1588_v19 = vadd.f32 %v1587_v17, %v5624_v9  ;;  %v5989_v17 = vand.u32 4294901760, %v300_v40 }
 0x262   : > { %v1745_v20 = vadd.f32 %v1744_v36, %v1584_v41  ;;  %2321 = vmatmul.f32.gmra.mxu3 %v5929_v61  ;;  %v2058_v41 = vsub.f32 %v5968_v31, %v7234_v48 }
 0x263   : > { %v1917_v43 = vpop.f32.mrf.mxu2  ;;  %1650 = vmatmul.f32.gmra.mxu0 %v5604_v0 }
 0x264   : > { %v1918_v3 = vadd.f32 %v1917_v43, %v1745_v20  ;;  %1807 = vmatmul.f32.gmra.mxu1 %v5600_v26  ;;  %v5983_v43 = vsub.f32 %v298_v1, %v5974_v44  ;;  %v2059_v9 = vand.u32 4294901760, %v2058_v41  ;;  %v302_v41 = vld [vmem:[#allocation2 + $0x178] sm:$0xff] }
 0x265   : > { %v2258_v55 = vpop.f32.mrf.mxu3 }
 0x266   : > { %v5976_v49 = vadd.f32 %v2258_v55, %v1918_v3  ;;  %7348 = vst [vmem:[#allocation50_spill] sm:$0xff] %v5983_v43  ;;  %v7237_v3 = vand.u32 4294901760, %v5983_v43 }
 0x268   : > { %2052 = vmatmul.f32.gmra.mxu2 %v2051_v34  ;;  %v1591_v36 = vpop.f32.mrf.mxu0 }
 0x269   : > { %v1748_v26 = vpop.f32.mrf.mxu1  ;;  %v1592_v55 = vadd.f32 %v1591_v36, %v5632_v39  ;;  %v6004_v36 = vand.u32 4294901760, %v302_v41 }
 0x26a   : > { %v1749_v20 = vadd.f32 %v1748_v26, %v1588_v19  ;;  %2325 = vmatmul.f32.gmra.mxu3 %v5944_v53  ;;  %v2066_v19 = vsub.f32 %v5983_v43, %v7237_v3 }
 0x26b   : > { %v1925_v4 = vpop.f32.mrf.mxu2  ;;  %1654 = vmatmul.f32.gmra.mxu0 %v5610_v14 }
 0x26c   : > { %v1926_v37 = vadd.f32 %v1925_v4, %v1749_v20  ;;  %1811 = vmatmul.f32.gmra.mxu1 %v5604_v0  ;;  %v5998_v4 = vsub.f32 %v300_v40, %v5989_v17  ;;  %v2067_v39 = vand.u32 4294901760, %v2066_v19  ;;  %v304_v19 = vld [vmem:[#allocation2 + $0x188] sm:$0xff] }
 0x26d   : > { %v2262_v34 = vpop.f32.mrf.mxu3 }
 0x26e   : > { %v5991_v1 = vadd.f32 %v2262_v34, %v1926_v37  ;;  %7349 = vst [vmem:[#allocation51_spill] sm:$0xff] %v5998_v4  ;;  %v7240_v37 = vand.u32 4294901760, %v5998_v4 }
 0x270   : > { %2060 = vmatmul.f32.gmra.mxu2 %v2059_v9  ;;  %v1595_v26 = vpop.f32.mrf.mxu0 }
 0x271   : > { %v1752_v0 = vpop.f32.mrf.mxu1  ;;  %v1596_v34 = vadd.f32 %v1595_v26, %v5638_v50  ;;  %v6019_v26 = vand.u32 4294901760, %v304_v19 }
 0x272   : > { %v1753_v20 = vadd.f32 %v1752_v0, %v1592_v55  ;;  %2329 = vmatmul.f32.gmra.mxu3 %v5959_v56  ;;  %v2074_v55 = vsub.f32 %v5998_v4, %v7240_v37 }
 0x273   : > { %v1933_v48 = vpop.f32.mrf.mxu2  ;;  %1658 = vmatmul.f32.gmra.mxu0 %v5616_v11 }
 0x274   : > { %v1934_v31 = vadd.f32 %v1933_v48, %v1753_v20  ;;  %1815 = vmatmul.f32.gmra.mxu1 %v5610_v14  ;;  %v6013_v48 = vsub.f32 %v302_v41, %v6004_v36  ;;  %v2075_v50 = vand.u32 4294901760, %v2074_v55  ;;  %v306_v55 = vld [vmem:[#allocation2 + $0x198] sm:$0xff] }
 0x275   : > { %v2266_v9 = vpop.f32.mrf.mxu3 }
 0x276   : > { %v6006_v40 = vadd.f32 %v2266_v9, %v1934_v31  ;;  %7350 = vst [vmem:[#allocation52_spill] sm:$0xff] %v6013_v48  ;;  %v7243_v31 = vand.u32 4294901760, %v6013_v48 }
 0x278   : > { %2068 = vmatmul.f32.gmra.mxu2 %v2067_v39  ;;  %v1599_v0 = vpop.f32.mrf.mxu0 }
 0x279   : > { %v1756_v14 = vpop.f32.mrf.mxu1  ;;  %v1600_v9 = vadd.f32 %v1599_v0, %v5644_v21  ;;  %v6034_v0 = vand.u32 4294901760, %v306_v55 }
 0x27a   : > { %v1757_v20 = vadd.f32 %v1756_v14, %v1596_v34  ;;  %2333 = vmatmul.f32.gmra.mxu3 %v5974_v44  ;;  %v2082_v34 = vsub.f32 %v6013_v48, %v7243_v31 }
 0x27b   : > { %v1941_v3 = vpop.f32.mrf.mxu2  ;;  %1662 = vmatmul.f32.gmra.mxu0 %v5622_v42  ;;  %7352 = vst [vmem:[#allocation54_spill] sm:$0xff] %v6034_v0 }
 0x27c   : > { %v1942_v43 = vadd.f32 %v1941_v3, %v1757_v20  ;;  %1819 = vmatmul.f32.gmra.mxu1 %v5616_v11  ;;  %v6028_v3 = vsub.f32 %v304_v19, %v6019_v26  ;;  %v2083_v21 = vand.u32 4294901760, %v2082_v34  ;;  %v308_v34 = vld [vmem:[#allocation2 + $0x1a8] sm:$0xff] }
 0x27d   : > { %v2270_v39 = vpop.f32.mrf.mxu3 }
 0x27e   : > { %v6021_v41 = vadd.f32 %v2270_v39, %v1942_v43  ;;  %7351 = vst [vmem:[#allocation53_spill] sm:$0xff] %v6028_v3  ;;  %v7246_v43 = vand.u32 4294901760, %v6028_v3 }
 0x280   : > { %2076 = vmatmul.f32.gmra.mxu2 %v2075_v50  ;;  %v1603_v14 = vpop.f32.mrf.mxu0 }
 0x281   : > { %v1760_v11 = vpop.f32.mrf.mxu1  ;;  %v1604_v39 = vadd.f32 %v1603_v14, %v5650_v25  ;;  %v6049_v14 = vand.u32 4294901760, %v308_v34 }
 0x282   : > { %v1761_v20 = vadd.f32 %v1760_v11, %v1600_v9  ;;  %2337 = vmatmul.f32.gmra.mxu3 %v5989_v17  ;;  %v2090_v9 = vsub.f32 %v6028_v3, %v7246_v43 }
 0x283   : > { %v1949_v37 = vpop.f32.mrf.mxu2  ;;  %1666 = vmatmul.f32.gmra.mxu0 %v5628_v27  ;;  %7354 = vst [vmem:[#allocation56_spill] sm:$0xff] %v6049_v14 }
 0x284   : > { %v1950_v4 = vadd.f32 %v1949_v37, %v1761_v20  ;;  %1823 = vmatmul.f32.gmra.mxu1 %v5622_v42  ;;  %v6043_v37 = vsub.f32 %v306_v55, %v6034_v0  ;;  %v2091_v25 = vand.u32 4294901760, %v2090_v9  ;;  %v310_v9 = vld [vmem:[#allocation2 + $0x1b8] sm:$0xff] }
 0x285   : > { %v2274_v50 = vpop.f32.mrf.mxu3 }
 0x286   : > { %v6036_v19 = vadd.f32 %v2274_v50, %v1950_v4  ;;  %7353 = vst [vmem:[#allocation55_spill] sm:$0xff] %v6043_v37  ;;  %v7249_v4 = vand.u32 4294901760, %v6043_v37 }
 0x288   : > { %2084 = vmatmul.f32.gmra.mxu2 %v2083_v21  ;;  %v1607_v11 = vpop.f32.mrf.mxu0 }
 0x289   : > { %v1764_v42 = vpop.f32.mrf.mxu1  ;;  %v1608_v50 = vadd.f32 %v1607_v11, %v5656_v57  ;;  %v6064_v11 = vand.u32 4294901760, %v310_v9 }
 0x28a   : > { %v1765_v20 = vadd.f32 %v1764_v42, %v1604_v39  ;;  %2341 = vmatmul.f32.gmra.mxu3 %v6004_v36  ;;  %v2098_v39 = vsub.f32 %v6043_v37, %v7249_v4 }
 0x28b   : > { %v1957_v31 = vpop.f32.mrf.mxu2  ;;  %1670 = vmatmul.f32.gmra.mxu0 %v5634_v58 }
 0x28c   : > { %v1958_v48 = vadd.f32 %v1957_v31, %v1765_v20  ;;  %1827 = vmatmul.f32.gmra.mxu1 %v5628_v27  ;;  %v6058_v31 = vsub.f32 %v308_v34, %v6049_v14  ;;  %v2099_v57 = vand.u32 4294901760, %v2098_v39  ;;  %v312_v39 = vld [vmem:[#allocation2 + $0x1c8] sm:$0xff] }
 0x28d   : > { %v2278_v21 = vpop.f32.mrf.mxu3 }
 0x28e   : > { %v6051_v55 = vadd.f32 %v2278_v21, %v1958_v48  ;;  %7355 = vst [vmem:[#allocation57_spill] sm:$0xff] %v6058_v31  ;;  %v7252_v48 = vand.u32 4294901760, %v6058_v31 }
 0x290   : > { %2092 = vmatmul.f32.gmra.mxu2 %v2091_v25  ;;  %v1611_v42 = vpop.f32.mrf.mxu0 }
 0x291   : > { %v1768_v27 = vpop.f32.mrf.mxu1  ;;  %v1612_v21 = vadd.f32 %v1611_v42, %v5662_v51  ;;  %v6079_v42 = vand.u32 4294901760, %v312_v39 }
 0x292   : > { %v1769_v20 = vadd.f32 %v1768_v27, %v1608_v50  ;;  %2345 = vmatmul.f32.gmra.mxu3 %v6019_v26  ;;  %v2106_v50 = vsub.f32 %v6058_v31, %v7252_v48 }
 0x293   : > { %v1965_v43 = vpop.f32.mrf.mxu2  ;;  %1674 = vmatmul.f32.gmra.mxu0 %v5640_v32 }
 0x294   : > { %v1966_v3 = vadd.f32 %v1965_v43, %v1769_v20  ;;  %1831 = vmatmul.f32.gmra.mxu1 %v5634_v58  ;;  %v6073_v43 = vsub.f32 %v310_v9, %v6064_v11  ;;  %v2107_v51 = vand.u32 4294901760, %v2106_v50  ;;  %v314_v50 = vld [vmem:[#allocation2 + $0x1d8] sm:$0xff] }
 0x295   : > { %v2282_v25 = vpop.f32.mrf.mxu3 }
 0x296   : > { %v6066_v34 = vadd.f32 %v2282_v25, %v1966_v3  ;;  %7356 = vst [vmem:[#allocation58_spill] sm:$0xff] %v6073_v43  ;;  %v7257_v3 = vand.u32 4294901760, %v6073_v43  ;;  %v7358_v25 = vld [vmem:[#allocation11_spill] sm:$0xff] }
 0x298   : > { %2100 = vmatmul.f32.gmra.mxu2 %v2099_v57  ;;  %v1615_v27 = vpop.f32.mrf.mxu0 }
 0x299   : > { %v1772_v58 = vpop.f32.mrf.mxu1  ;;  %v1616_v48 = vadd.f32 %v1615_v27, %v7358_v25 }
 0x29a   : > { %v1773_v20 = vadd.f32 %v1772_v58, %v1612_v21  ;;  %2349 = vmatmul.f32.gmra.mxu3 %v6034_v0  ;;  %v2114_v21 = vsub.f32 %v6073_v43, %v7257_v3  ;;  %v7361_v3 = vld [vmem:[#allocation12_spill] sm:$0xff] }
 0x29b   : > { %v1973_v4 = vpop.f32.mrf.mxu2  ;;  %1678 = vmatmul.f32.gmra.mxu0 %v5646_v35 }
 0x29c   : > { %v1974_v37 = vadd.f32 %v1973_v4, %v1773_v20  ;;  %1835 = vmatmul.f32.gmra.mxu1 %v5640_v32  ;;  %v6088_v4 = vsub.f32 %v312_v39, %v6079_v42  ;;  %v2115_v27 = vand.u32 4294901760, %v2114_v21  ;;  %v316_v21 = vld [vmem:[#allocation2 + $0x1e8] sm:$0xff] }
 0x29d   : > { %v2286_v57 = vpop.f32.mrf.mxu3 }
 0x29e   : > { %v6081_v9 = vadd.f32 %v2286_v57, %v1974_v37  ;;  %7359 = vst [vmem:[#allocation11_spill] sm:$0xff] %v6088_v4  ;;  %v7360_v37 = vld [vmem:[#allocation10_spill] sm:$0xff]  ;;  %v6094_v57 = vand.u32 4294901760, %v314_v50 }
 0x2a0   : > { %7357 = vst [vmem:[#allocation59_spill] sm:$0xff] %v6081_v9  ;;  %2108 = vmatmul.f32.gmra.mxu2 %v2107_v51  ;;  %v1619_v58 = vpop.f32.mrf.mxu0  ;;  %v7262_v51 = vand.u32 4294901760, %v6088_v4 }
 0x2a1   : > { %v1776_v32 = vpop.f32.mrf.mxu1  ;;  %v1620_v43 = vadd.f32 %v1619_v58, %v7361_v3  ;;  %v6109_v58 = vand.u32 4294901760, %v316_v21 }
 0x2a2   : > { %v1777_v20 = vadd.f32 %v1776_v32, %v1616_v48  ;;  %2353 = vmatmul.f32.gmra.mxu3 %v6049_v14  ;;  %v2122_v48 = vsub.f32 %v6088_v4, %v7262_v51 }
 0x2a3   : > { %v1981_v31 = vpop.f32.mrf.mxu2  ;;  %1682 = vmatmul.f32.gmra.mxu0 %v7360_v37 }
 0x2a4   : > { %v1982_v0 = vadd.f32 %v1981_v31, %v1777_v20  ;;  %1839 = vmatmul.f32.gmra.mxu1 %v5646_v35  ;;  %v6103_v31 = vsub.f32 %v314_v50, %v6094_v57 }
 0x2a5   : > { %v2290_v25 = vpop.f32.mrf.mxu3 }
 0x2a6   : > { %v6096_v39 = vadd.f32 %v2290_v25, %v1982_v0  ;;  %v2123_v0 = vand.u32 4294901760, %v2122_v48  ;;  %v7265_v3 = vand.u32 4294901760, %v6103_v31  ;;  %v318_v48 = vld [vmem:[#allocation2 + $0x1f8] sm:$0xff] }
 0x2a8   : > { %2116 = vmatmul.f32.gmra.mxu2 %v2115_v27  ;;  %v1623_v32 = vpop.f32.mrf.mxu0 }
 0x2a9   : > { %v1780_v35 = vpop.f32.mrf.mxu1  ;;  %v1624_v25 = vadd.f32 %v1623_v32, %v5680_v45  ;;  %v6124_v32 = vand.u32 4294901760, %v318_v48 }
 0x2aa   : > { %v1781_v20 = vadd.f32 %v1780_v35, %v1620_v43  ;;  %2357 = vmatmul.f32.gmra.mxu3 %v6064_v11  ;;  %v2130_v43 = vsub.f32 %v6103_v31, %v7265_v3 }
 0x2ab   : > { %v1989_v14 = vpop.f32.mrf.mxu2  ;;  %1686 = vmatmul.f32.gmra.mxu0 %v5658_v63 }
 0x2ac   : > { %v1990_v9 = vadd.f32 %v1989_v14, %v1781_v20  ;;  %1843 = vmatmul.f32.gmra.mxu1 %v7360_v37  ;;  %v6118_v14 = vsub.f32 %v316_v21, %v6109_v58  ;;  %v2131_v45 = vand.u32 4294901760, %v2130_v43 }
 0x2ad   : > { %v2294_v27 = vpop.f32.mrf.mxu3 }
 0x2ae   : > { %v6111_v50 = vadd.f32 %v2294_v27, %v1990_v9  ;;  %v7267_v9 = vand.u32 4294901760, %v6118_v14 }
 0x2b0   : > { %2124 = vmatmul.f32.gmra.mxu2 %v2123_v0  ;;  %v1627_v35 = vpop.f32.mrf.mxu0 }
 0x2b1   : > { %v1784_v37 = vpop.f32.mrf.mxu1  ;;  %v1628_v27 = vadd.f32 %v1627_v35, %v5685_v7 }
 0x2b2   : > { %v1785_v20 = vadd.f32 %v1784_v37, %v1624_v25  ;;  %2361 = vmatmul.f32.gmra.mxu3 %v6079_v42  ;;  %v2138_v25 = vsub.f32 %v6118_v14, %v7267_v9 }
 0x2b3   : > { %v1997_v51 = vpop.f32.mrf.mxu2  ;;  %1690 = vmatmul.f32.gmra.mxu0 %v5664_v13 }
 0x2b4   : > { %v1998_v4 = vadd.f32 %v1997_v51, %v1785_v20  ;;  %1847 = vmatmul.f32.gmra.mxu1 %v5658_v63  ;;  %v6133_v51 = vsub.f32 %v318_v48, %v6124_v32  ;;  %v2139_v7 = vand.u32 4294901760, %v2138_v25 }
 0x2b5   : > { %v2298_v0 = vpop.f32.mrf.mxu3 }
 0x2b6   : > { %v6126_v21 = vadd.f32 %v2298_v0, %v1998_v4  ;;  %v7266_v4 = vand.u32 4294901760, %v6133_v51 }
 0x2b8   : > { %2132 = vmatmul.f32.gmra.mxu2 %v2131_v45  ;;  %v1631_v37 = vpop.f32.mrf.mxu0  ;;  %v2146_v0 = vsub.f32 %v6133_v51, %v7266_v4 }
 0x2b9   : > { %v1788_v63 = vpop.f32.mrf.mxu1  ;;  %v1632_v48 = vadd.f32 %v1631_v37, %v5694_v62 }
 0x2ba   : > { %v1789_v43 = vadd.f32 %v1788_v63, %v1628_v27  ;;  %2365 = vmatmul.f32.gmra.mxu3 %v6094_v57 }
 0x2bb   : > { %v2005_v20 = vpop.f32.mrf.mxu2  ;;  %1694 = vmatmul.f32.gmra.mxu0 %v5670_v16 }
 0x2bc   : > { %v2006_v3 = vadd.f32 %v2005_v20, %v1789_v43  ;;  %1851 = vmatmul.f32.gmra.mxu1 %v5664_v13 }
 0x2bd   : > { %v2302_v35 = vpop.f32.mrf.mxu3 }
 0x2be   : > { %v6139_v45 = vadd.f32 %v2302_v35, %v2006_v3  ;;  %v2147_v3 = vand.u32 4294901760, %v2146_v0 }
 0x2c0   : > { %2140 = vmatmul.f32.gmra.mxu2 %v2139_v7  ;;  %v1635_v27 = vpop.f32.mrf.mxu0 }
 0x2c1   : > { %v1792_v63 = vpop.f32.mrf.mxu1  ;;  %v1636_v62 = vadd.f32 %v1635_v27, %v5707_v46 }
 0x2c2   : > { %v1793_v43 = vadd.f32 %v1792_v63, %v1632_v48  ;;  %2369 = vmatmul.f32.gmra.mxu3 %v6109_v58 }
 0x2c3   : > { %v2013_v20 = vpop.f32.mrf.mxu2  ;;  %1698 = vmatmul.f32.gmra.mxu0 %v5676_v52 }
 0x2c4   : > { %v2014_v13 = vadd.f32 %v2013_v20, %v1793_v43  ;;  %1855 = vmatmul.f32.gmra.mxu1 %v5670_v16  ;;  %v7362_v20 = vld [vmem:[#allocation13_spill] sm:$0xff] }
 0x2c5   : > { %v2306_v25 = vpop.f32.mrf.mxu3 }
 0x2c6   : > { %v6148_v35 = vadd.f32 %v2306_v25, %v2014_v13 }
 0x2c8   : > { %2148 = vmatmul.f32.gmra.mxu2 %v2147_v3  ;;  %v1639_v37 = vpop.f32.mrf.mxu0 }
 0x2c9   : > { %v1796_v7 = vpop.f32.mrf.mxu1  ;;  %v1640_v0 = vadd.f32 %v1639_v37, %v5721_v22  ;;  %v7365_v22 = vld [vmem:[#allocation14_spill] sm:$0xff] }
 0x2ca   : > { %v1797_v4 = vadd.f32 %v1796_v7, %v1636_v62  ;;  %2373 = vmatmul.f32.gmra.mxu3 %v6124_v32  ;;  %v7363_v62 = vld [vmem:[#allocation15_spill] sm:$0xff] }
 0x2cb   : > { %v2021_v48 = vpop.f32.mrf.mxu2  ;;  %2427 = vmatmul.f32.vlgmr.msra.gmra.mxu0 %v5688_v2 }
 0x2cc   : > { %v2022_v63 = vadd.f32 %v2021_v48, %v1797_v4  ;;  %1859 = vmatmul.f32.gmra.mxu1 %v5676_v52  ;;  %v7364_v52 = vand.u32 4294901760, %v5688_v2 }
 0x2cd   : > { %v2310_v43 = vpop.f32.mrf.mxu3 }
 0x2ce   : > { %v6154_v16 = vadd.f32 %v2310_v43, %v2022_v63 }
 0x2d0   : > { %2876 = vmatmul.f32.vlgmr.msra.gmra.mxu2 %v7362_v20  ;;  %v1643_v46 = vpop.f32.mrf.mxu0 }
 0x2d1   : > { %v1800_v27 = vpop.f32.mrf.mxu1  ;;  %v1644_v48 = vadd.f32 %v1643_v46, %v5735_v60  ;;  %v7368_v60 = vld [vmem:[#allocation16_spill] sm:$0xff] }
 0x2d2   : > { %v1801_v13 = vadd.f32 %v1800_v27, %v1640_v0  ;;  %3037 = vmatmul.f32.vlgmr.msra.gmra.mxu3 %v7362_v20  ;;  %v7366_v27 = vld [vmem:[#allocation17_spill] sm:$0xff] }
 0x2d3   : > { %v2029_v3 = vpop.f32.mrf.mxu2  ;;  %2432 = vmatmul.f32.gmra.mxu0 %v7363_v62 }
 0x2d4   : > { %v2030_v25 = vadd.f32 %v2029_v3, %v1801_v13  ;;  %2621 = vmatmul.f32.vlgmr.msra.gmra.mxu1 %v7364_v52  ;;  %v7367_v13 = vand.u32 4294901760, %v7363_v62 }
 0x2d5   : > { %v2314_v4 = vpop.f32.mrf.mxu3 }
 0x2d6   : > { %v6162_v7 = vadd.f32 %v2314_v4, %v2030_v25 }
 0x2d8   : > { %2880 = vmatmul.f32.gmra.mxu2 %v7365_v22  ;;  %v1647_v37 = vpop.f32.mrf.mxu0 }
 0x2d9   : > { %v1804_v63 = vpop.f32.mrf.mxu1  ;;  %v1648_v25 = vadd.f32 %v1647_v37, %v5749_v30  ;;  %v7371_v30 = vld [vmem:[#allocation18_spill] sm:$0xff] }
 0x2da   : > { %v1805_v43 = vadd.f32 %v1804_v63, %v1644_v48  ;;  %3041 = vmatmul.f32.gmra.mxu3 %v7365_v22  ;;  %v7369_v63 = vld [vmem:[#allocation19_spill] sm:$0xff] }
 0x2db   : > { %v2037_v0 = vpop.f32.mrf.mxu2  ;;  %2437 = vmatmul.f32.gmra.mxu0 %v7366_v27 }
 0x2dc   : > { %v2038_v20 = vadd.f32 %v2037_v0, %v1805_v43  ;;  %2627 = vmatmul.f32.gmra.mxu1 %v7367_v13  ;;  %v7370_v43 = vand.u32 4294901760, %v7366_v27 }
 0x2dd   : > { %v2318_v2 = vpop.f32.mrf.mxu3 }
 0x2de   : > { %v6170_v3 = vadd.f32 %v2318_v2, %v2038_v20 }
 0x2e0   : > { %2884 = vmatmul.f32.gmra.mxu2 %v7368_v60  ;;  %v1651_v46 = vpop.f32.mrf.mxu0 }
 0x2e1   : > { %v1808_v52 = vpop.f32.mrf.mxu1  ;;  %v1652_v20 = vadd.f32 %v1651_v46, %v5763_v24  ;;  %v7374_v24 = vld [vmem:[#allocation20_spill] sm:$0xff] }
 0x2e2   : > { %v1809_v4 = vadd.f32 %v1808_v52, %v1648_v25  ;;  %3045 = vmatmul.f32.gmra.mxu3 %v7368_v60  ;;  %v7372_v52 = vld [vmem:[#allocation21_spill] sm:$0xff] }
 0x2e3   : > { %v2045_v48 = vpop.f32.mrf.mxu2  ;;  %2442 = vmatmul.f32.gmra.mxu0 %v7369_v63 }
 0x2e4   : > { %v2046_v22 = vadd.f32 %v2045_v48, %v1809_v4  ;;  %2633 = vmatmul.f32.gmra.mxu1 %v7370_v43  ;;  %v7373_v4 = vand.u32 4294901760, %v7369_v63 }
 0x2e5   : > { %v2322_v62 = vpop.f32.mrf.mxu3 }
 0x2e6   : > { %v6178_v0 = vadd.f32 %v2322_v62, %v2046_v22 }
 0x2e8   : > { %2888 = vmatmul.f32.gmra.mxu2 %v7371_v30  ;;  %v1655_v37 = vpop.f32.mrf.mxu0 }
 0x2e9   : > { %v1812_v13 = vpop.f32.mrf.mxu1  ;;  %v1656_v22 = vadd.f32 %v1655_v37, %v5777_v59  ;;  %v7377_v59 = vld [vmem:[#allocation22_spill] sm:$0xff] }
 0x2ea   : > { %v1813_v2 = vadd.f32 %v1812_v13, %v1652_v20  ;;  %3049 = vmatmul.f32.gmra.mxu3 %v7371_v30  ;;  %v7375_v13 = vld [vmem:[#allocation23_spill] sm:$0xff] }
 0x2eb   : > { %v2053_v25 = vpop.f32.mrf.mxu2  ;;  %2447 = vmatmul.f32.gmra.mxu0 %v7372_v52 }
 0x2ec   : > { %v2054_v60 = vadd.f32 %v2053_v25, %v1813_v2  ;;  %2639 = vmatmul.f32.gmra.mxu1 %v7373_v4  ;;  %v7376_v2 = vand.u32 4294901760, %v7372_v52 }
 0x2ed   : > { %v2326_v27 = vpop.f32.mrf.mxu3 }
 0x2ee   : > { %v6186_v48 = vadd.f32 %v2326_v27, %v2054_v60 }
 0x2f0   : > { %2892 = vmatmul.f32.gmra.mxu2 %v7374_v24  ;;  %v1659_v46 = vpop.f32.mrf.mxu0 }
 0x2f1   : > { %v1816_v43 = vpop.f32.mrf.mxu1  ;;  %v1660_v60 = vadd.f32 %v1659_v46, %v5791_v29  ;;  %v7380_v29 = vld [vmem:[#allocation24_spill] sm:$0xff] }
 0x2f2   : > { %v1817_v62 = vadd.f32 %v1816_v43, %v1656_v22  ;;  %3053 = vmatmul.f32.gmra.mxu3 %v7374_v24  ;;  %v7378_v43 = vld [vmem:[#allocation25_spill] sm:$0xff] }
 0x2f3   : > { %v2061_v20 = vpop.f32.mrf.mxu2  ;;  %2452 = vmatmul.f32.gmra.mxu0 %v7375_v13 }
 0x2f4   : > { %v2062_v30 = vadd.f32 %v2061_v20, %v1817_v62  ;;  %2645 = vmatmul.f32.gmra.mxu1 %v7376_v2  ;;  %v7379_v62 = vand.u32 4294901760, %v7375_v13 }
 0x2f5   : > { %v2330_v63 = vpop.f32.mrf.mxu3 }
 0x2f6   : > { %v6194_v25 = vadd.f32 %v2330_v63, %v2062_v30 }
 0x2f8   : > { %2896 = vmatmul.f32.gmra.mxu2 %v7377_v59  ;;  %v1663_v37 = vpop.f32.mrf.mxu0 }
 0x2f9   : > { %v1820_v4 = vpop.f32.mrf.mxu1  ;;  %v1664_v30 = vadd.f32 %v1663_v37, %v5805_v47  ;;  %v7383_v47 = vld [vmem:[#allocation26_spill] sm:$0xff] }
 0x2fa   : > { %v1821_v27 = vadd.f32 %v1820_v4, %v1660_v60  ;;  %3057 = vmatmul.f32.gmra.mxu3 %v7377_v59  ;;  %v7381_v4 = vld [vmem:[#allocation27_spill] sm:$0xff] }
 0x2fb   : > { %v2069_v22 = vpop.f32.mrf.mxu2  ;;  %2457 = vmatmul.f32.gmra.mxu0 %v7378_v43 }
 0x2fc   : > { %v2070_v24 = vadd.f32 %v2069_v22, %v1821_v27  ;;  %2651 = vmatmul.f32.gmra.mxu1 %v7379_v62  ;;  %v7382_v27 = vand.u32 4294901760, %v7378_v43 }
 0x2fd   : > { %v2334_v52 = vpop.f32.mrf.mxu3 }
 0x2fe   : > { %v6202_v20 = vadd.f32 %v2334_v52, %v2070_v24 }
 0x300   : > { %2900 = vmatmul.f32.gmra.mxu2 %v7380_v29  ;;  %v1667_v46 = vpop.f32.mrf.mxu0 }
 0x301   : > { %v1824_v2 = vpop.f32.mrf.mxu1  ;;  %v1668_v24 = vadd.f32 %v1667_v46, %v5819_v12  ;;  %v7386_v12 = vld [vmem:[#allocation28_spill] sm:$0xff] }
 0x302   : > { %v1825_v63 = vadd.f32 %v1824_v2, %v1664_v30  ;;  %3061 = vmatmul.f32.gmra.mxu3 %v7380_v29  ;;  %v7384_v2 = vld [vmem:[#allocation29_spill] sm:$0xff] }
 0x303   : > { %v2077_v60 = vpop.f32.mrf.mxu2  ;;  %2462 = vmatmul.f32.gmra.mxu0 %v7381_v4 }
 0x304   : > { %v2078_v59 = vadd.f32 %v2077_v60, %v1825_v63  ;;  %2657 = vmatmul.f32.gmra.mxu1 %v7382_v27  ;;  %v7385_v63 = vand.u32 4294901760, %v7381_v4 }
 0x305   : > { %v2338_v13 = vpop.f32.mrf.mxu3 }
 0x306   : > { %v6210_v22 = vadd.f32 %v2338_v13, %v2078_v59 }
 0x308   : > { %2904 = vmatmul.f32.gmra.mxu2 %v7383_v47  ;;  %v1671_v37 = vpop.f32.mrf.mxu0 }
 0x309   : > { %v1828_v62 = vpop.f32.mrf.mxu1  ;;  %v1672_v59 = vadd.f32 %v1671_v37, %v5833_v18  ;;  %v7389_v18 = vld [vmem:[#allocation30_spill] sm:$0xff] }
 0x30a   : > { %v1829_v52 = vadd.f32 %v1828_v62, %v1668_v24  ;;  %3065 = vmatmul.f32.gmra.mxu3 %v7383_v47  ;;  %v7387_v62 = vld [vmem:[#allocation31_spill] sm:$0xff] }
 0x30b   : > { %v2085_v30 = vpop.f32.mrf.mxu2  ;;  %2467 = vmatmul.f32.gmra.mxu0 %v7384_v2 }
 0x30c   : > { %v2086_v29 = vadd.f32 %v2085_v30, %v1829_v52  ;;  %2663 = vmatmul.f32.gmra.mxu1 %v7385_v63  ;;  %v7388_v52 = vand.u32 4294901760, %v7384_v2 }
 0x30d   : > { %v2342_v43 = vpop.f32.mrf.mxu3 }
 0x30e   : > { %v6218_v60 = vadd.f32 %v2342_v43, %v2086_v29 }
 0x310   : > { %2908 = vmatmul.f32.gmra.mxu2 %v7386_v12  ;;  %v1675_v46 = vpop.f32.mrf.mxu0 }
 0x311   : > { %v1832_v27 = vpop.f32.mrf.mxu1  ;;  %v1676_v29 = vadd.f32 %v1675_v46, %v5847_v5  ;;  %v7392_v5 = vld [vmem:[#allocation32_spill] sm:$0xff] }
 0x312   : > { %v1833_v13 = vadd.f32 %v1832_v27, %v1672_v59  ;;  %3069 = vmatmul.f32.gmra.mxu3 %v7386_v12  ;;  %v7390_v27 = vld [vmem:[#allocation33_spill] sm:$0xff] }
 0x313   : > { %v2093_v24 = vpop.f32.mrf.mxu2  ;;  %2472 = vmatmul.f32.gmra.mxu0 %v7387_v62 }
 0x314   : > { %v2094_v47 = vadd.f32 %v2093_v24, %v1833_v13  ;;  %2669 = vmatmul.f32.gmra.mxu1 %v7388_v52  ;;  %v7391_v13 = vand.u32 4294901760, %v7387_v62 }
 0x315   : > { %v2346_v4 = vpop.f32.mrf.mxu3 }
 0x316   : > { %v6226_v30 = vadd.f32 %v2346_v4, %v2094_v47 }
 0x318   : > { %2912 = vmatmul.f32.gmra.mxu2 %v7389_v18  ;;  %v1679_v37 = vpop.f32.mrf.mxu0 }
 0x319   : > { %v1836_v63 = vpop.f32.mrf.mxu1  ;;  %v1680_v47 = vadd.f32 %v1679_v37, %v5861_v54  ;;  %v7395_v54 = vld [vmem:[#allocation34_spill] sm:$0xff] }
 0x31a   : > { %v1837_v43 = vadd.f32 %v1836_v63, %v1676_v29  ;;  %3073 = vmatmul.f32.gmra.mxu3 %v7389_v18  ;;  %v7393_v63 = vld [vmem:[#allocation35_spill] sm:$0xff] }
 0x31b   : > { %v2101_v59 = vpop.f32.mrf.mxu2  ;;  %2477 = vmatmul.f32.gmra.mxu0 %v7390_v27 }
 0x31c   : > { %v2102_v12 = vadd.f32 %v2101_v59, %v1837_v43  ;;  %2675 = vmatmul.f32.gmra.mxu1 %v7391_v13  ;;  %v7394_v43 = vand.u32 4294901760, %v7390_v27 }
 0x31d   : > { %v2350_v2 = vpop.f32.mrf.mxu3 }
 0x31e   : > { %v6234_v24 = vadd.f32 %v2350_v2, %v2102_v12 }
 0x320   : > { %2916 = vmatmul.f32.gmra.mxu2 %v7392_v5  ;;  %v1683_v46 = vpop.f32.mrf.mxu0 }
 0x321   : > { %v1840_v52 = vpop.f32.mrf.mxu1  ;;  %v1684_v12 = vadd.f32 %v1683_v46, %v5875_v28  ;;  %v7398_v28 = vld [vmem:[#allocation36_spill] sm:$0xff] }
 0x322   : > { %v1841_v4 = vadd.f32 %v1840_v52, %v1680_v47  ;;  %3077 = vmatmul.f32.gmra.mxu3 %v7392_v5  ;;  %v7396_v52 = vld [vmem:[#allocation37_spill] sm:$0xff] }
 0x323   : > { %v2109_v29 = vpop.f32.mrf.mxu2  ;;  %2482 = vmatmul.f32.gmra.mxu0 %v7393_v63 }
 0x324   : > { %v2110_v18 = vadd.f32 %v2109_v29, %v1841_v4  ;;  %2681 = vmatmul.f32.gmra.mxu1 %v7394_v43  ;;  %v7397_v4 = vand.u32 4294901760, %v7393_v63 }
 0x325   : > { %v2354_v62 = vpop.f32.mrf.mxu3 }
 0x326   : > { %v6242_v59 = vadd.f32 %v2354_v62, %v2110_v18 }
 0x328   : > { %2920 = vmatmul.f32.gmra.mxu2 %v7395_v54  ;;  %v1687_v37 = vpop.f32.mrf.mxu0 }
 0x329   : > { %v1844_v13 = vpop.f32.mrf.mxu1  ;;  %v1688_v18 = vadd.f32 %v1687_v37, %v5889_v6  ;;  %v7401_v6 = vld [vmem:[#allocation38_spill] sm:$0xff] }
 0x32a   : > { %v1845_v2 = vadd.f32 %v1844_v13, %v1684_v12  ;;  %3081 = vmatmul.f32.gmra.mxu3 %v7395_v54  ;;  %v7399_v13 = vld [vmem:[#allocation39_spill] sm:$0xff] }
 0x32b   : > { %v2117_v47 = vpop.f32.mrf.mxu2  ;;  %2487 = vmatmul.f32.gmra.mxu0 %v7396_v52 }
 0x32c   : > { %v2118_v5 = vadd.f32 %v2117_v47, %v1845_v2  ;;  %2687 = vmatmul.f32.gmra.mxu1 %v7397_v4  ;;  %v7400_v2 = vand.u32 4294901760, %v7396_v52 }
 0x32d   : > { %v2358_v27 = vpop.f32.mrf.mxu3 }
 0x32e   : > { %v6250_v29 = vadd.f32 %v2358_v27, %v2118_v5 }
 0x330   : > { %2924 = vmatmul.f32.gmra.mxu2 %v7398_v28  ;;  %v1691_v46 = vpop.f32.mrf.mxu0 }
 0x331   : > { %v1848_v43 = vpop.f32.mrf.mxu1  ;;  %v1692_v5 = vadd.f32 %v1691_v46, %v5903_v33  ;;  %v7405_v33 = vld [vmem:[#allocation40_spill] sm:$0xff] }
 0x332   : > { %v1849_v62 = vadd.f32 %v1848_v43, %v1688_v18  ;;  %3085 = vmatmul.f32.gmra.mxu3 %v7398_v28  ;;  %v7402_v43 = vld [vmem:[#allocation41_spill] sm:$0xff] }
 0x333   : > { %v2125_v12 = vpop.f32.mrf.mxu2  ;;  %2492 = vmatmul.f32.gmra.mxu0 %v7399_v13 }
 0x334   : > { %v2126_v54 = vadd.f32 %v2125_v12, %v1849_v62  ;;  %2693 = vmatmul.f32.gmra.mxu1 %v7400_v2  ;;  %v7403_v62 = vand.u32 4294901760, %v7399_v13 }
 0x335   : > { %v2362_v63 = vpop.f32.mrf.mxu3 }
 0x336   : > { %v6258_v47 = vadd.f32 %v2362_v63, %v2126_v54  ;;  %v7404_v54 = vld [vmem:[#allocation45_spill] sm:$0xff] }
 0x338   : > { %2928 = vmatmul.f32.gmra.mxu2 %v7401_v6  ;;  %v1695_v37 = vpop.f32.mrf.mxu0 }
 0x339   : > { %v1852_v4 = vpop.f32.mrf.mxu1  ;;  %v1696_v2 = vadd.f32 %v1695_v37, %v7404_v54  ;;  %v7408_v37 = vld [vmem:[#allocation42_spill] sm:$0xff] }
 0x33a   : > { %v1853_v27 = vadd.f32 %v1852_v4, %v1692_v5  ;;  %3089 = vmatmul.f32.gmra.mxu3 %v7401_v6  ;;  %v7406_v4 = vld [vmem:[#allocation43_spill] sm:$0xff] }
 0x33b   : > { %v2133_v18 = vpop.f32.mrf.mxu2  ;;  %2497 = vmatmul.f32.gmra.mxu0 %v7402_v43 }
 0x33c   : > { %v2134_v28 = vadd.f32 %v2133_v18, %v1853_v27  ;;  %2699 = vmatmul.f32.gmra.mxu1 %v7403_v62  ;;  %v7407_v27 = vand.u32 4294901760, %v7402_v43 }
 0x33d   : > { %v2366_v52 = vpop.f32.mrf.mxu3 }
 0x33e   : > { %v6266_v12 = vadd.f32 %v2366_v52, %v2134_v28 }
 0x340   : > { %2932 = vmatmul.f32.gmra.mxu2 %v7405_v33  ;;  %v1699_v46 = vpop.f32.mrf.mxu0 }
 0x341   : > { %v1856_v63 = vpop.f32.mrf.mxu1  ;;  %v1700_v28 = vadd.f32 %v1699_v46, %v5931_v15 }
 0x342   : > { %v1857_v9 = vadd.f32 %v1856_v63, %v1696_v2  ;;  %3093 = vmatmul.f32.gmra.mxu3 %v7405_v33  ;;  %v7410_v63 = vand.u32 4294901760, %v7406_v4 }
 0x343   : > { %v2141_v5 = vpop.f32.mrf.mxu2  ;;  %2502 = vmatmul.f32.gmra.mxu0 %v7406_v4 }
 0x344   : > { %v2142_v6 = vadd.f32 %v2141_v5, %v1857_v9  ;;  %2705 = vmatmul.f32.gmra.mxu1 %v7407_v27  ;;  %v7409_v9 = vld [vmem:[#allocation44_spill] sm:$0xff] }
 0x345   : > { %v2370_v13 = vpop.f32.mrf.mxu3 }
 0x346   : > { %v6274_v18 = vadd.f32 %v2370_v13, %v2142_v6 }
 0x348   : > { %2936 = vmatmul.f32.gmra.mxu2 %v7408_v37  ;;  %v2428_v52 = vpop.f32.mrf.mxu0 }
 0x349   : > { %v1860_v62 = vpop.f32.mrf.mxu1  ;;  %v2429_v6 = vadd.f32 %v2428_v52, %v5946_v23 }
 0x34a   : > { %v1861_v54 = vadd.f32 %v1860_v62, %v1700_v28  ;;  %3097 = vmatmul.f32.gmra.mxu3 %v7408_v37  ;;  %v7411_v37 = vld [vmem:[#allocation46_spill] sm:$0xff]  ;;  %v7412_v62 = vand.u32 4294901760, %v7409_v9 }
 0x34b   : > { %v2149_v2 = vpop.f32.mrf.mxu2  ;;  %2507 = vmatmul.f32.gmra.mxu0 %v7409_v9  ;;  %v7414_v9 = vld [vmem:[#allocation47_spill] sm:$0xff] }
 0x34c   : > { %v2150_v33 = vadd.f32 %v2149_v2, %v1861_v54  ;;  %2711 = vmatmul.f32.gmra.mxu1 %v7410_v63 }
 0x34d   : > { %v2374_v43 = vpop.f32.mrf.mxu3 }
 0x34e   : > { %v6282_v5 = vadd.f32 %v2374_v43, %v2150_v33  ;;  %v7415_v43 = vand.u32 4294901760, %v7411_v37 }
 0x350   : > { %2940 = vmatmul.f32.gmra.mxu2 %v5901_v10  ;;  %v2433_v15 = vpop.f32.mrf.mxu0 }
 0x351   : > { %v2622_v46 = vpop.f32.mrf.mxu1  ;;  %v2434_v2 = vadd.f32 %v2433_v15, %v5961_v8 }
 0x352   : > { %v2623_v27 = vadd.f32 %v2622_v46, %v2429_v6  ;;  %3101 = vmatmul.f32.gmra.mxu3 %v5901_v10 }
 0x353   : > { %v2877_v13 = vpop.f32.mrf.mxu2  ;;  %2512 = vmatmul.f32.gmra.mxu0 %v7411_v37  ;;  %v7417_v37 = vand.u32 4294901760, %v7414_v9 }
 0x354   : > { %v2878_v28 = vadd.f32 %v2877_v13, %v2623_v27  ;;  %2717 = vmatmul.f32.gmra.mxu1 %v7412_v62  ;;  %v7416_v62 = vld [vmem:[#allocation48_spill] sm:$0xff] }
 0x355   : > { %v3038_v4 = vpop.f32.mrf.mxu3 }
 0x356   : > { %v6290_v54 = vadd.f32 %v3038_v4, %v2878_v28 }
 0x358   : > { %7413 = vst [vmem:[#allocation10_spill] sm:$0xff] %v6290_v54  ;;  %2944 = vmatmul.f32.gmra.mxu2 %v5915_v38  ;;  %3753 = vrot.lane.b32.xlu0 %v6290_v54, %s4723_s19  ;;  %v2438_v23 = vpop.f32.mrf.mxu0 }
 0x359   : > { %v2628_v10 = vpop.f32.mrf.mxu1  ;;  %v2439_v15 = vadd.f32 %v2438_v23, %v5976_v49 }
 0x35a   : > { %v2629_v52 = vadd.f32 %v2628_v10, %v2434_v2  ;;  %3105 = vmatmul.f32.gmra.mxu3 %v5915_v38 }
 0x35b   : > { %v2881_v33 = vpop.f32.mrf.mxu2  ;;  %2517 = vmatmul.f32.gmra.mxu0 %v7414_v9 }
 0x35c   : > { %v2882_v63 = vadd.f32 %v2881_v33, %v2629_v52  ;;  %2723 = vmatmul.f32.gmra.mxu1 %v7415_v43  ;;  %v7419_v43 = vand.u32 4294901760, %v7416_v62 }
 0x35d   : > { %v3042_v6 = vpop.f32.mrf.mxu3 }
 0x35e   : > { %v6300_v8 = vadd.f32 %v3042_v6, %v2882_v63  ;;  %v7418_v63 = vld [vmem:[#allocation49_spill] sm:$0xff] }
 0x360   : > { %2948 = vmatmul.f32.gmra.mxu2 %v5929_v61  ;;  %3755 = vrot.lane.b32.xlu1 %v6300_v8, %s4723_s19  ;;  %v2443_v46 = vpop.f32.mrf.mxu0 }
 0x361   : > { %v2634_v27 = vpop.f32.mrf.mxu1  ;;  %v2444_v49 = vadd.f32 %v2443_v46, %v5991_v1 }
 0x362   : > { %v2635_v38 = vadd.f32 %v2634_v27, %v2439_v15  ;;  %3109 = vmatmul.f32.gmra.mxu3 %v5929_v61 }
 0x363   : > { %v2885_v13 = vpop.f32.mrf.mxu2  ;;  %2522 = vmatmul.f32.gmra.mxu0 %v7416_v62 }
 0x364   : > { %v2886_v28 = vadd.f32 %v2885_v13, %v2635_v38  ;;  %2729 = vmatmul.f32.gmra.mxu1 %v7417_v37  ;;  %v7420_v13 = vld [vmem:[#allocation50_spill] sm:$0xff] }
 0x365   : > { %v3046_v4 = vpop.f32.mrf.mxu3 }
 0x366   : > { %v6310_v2 = vadd.f32 %v3046_v4, %v2886_v28  ;;  %v7421_v28 = vand.u32 4294901760, %v7418_v63 }
 0x368   : > { %2952 = vmatmul.f32.gmra.mxu2 %v5944_v53  ;;  %v2448_v23 = vpop.f32.mrf.mxu0 }
 0x369   : > { %v2640_v10 = vpop.f32.mrf.mxu1  ;;  %v2449_v15 = vadd.f32 %v2448_v23, %v6006_v40 }
 0x36a   : > { %v2641_v52 = vadd.f32 %v2640_v10, %v2444_v49  ;;  %3113 = vmatmul.f32.gmra.mxu3 %v5944_v53 }
 0x36b   : > { %v2889_v61 = vpop.f32.mrf.mxu2  ;;  %2527 = vmatmul.f32.gmra.mxu0 %v7418_v63 }
 0x36c   : > { %v2890_v33 = vadd.f32 %v2889_v61, %v2641_v52  ;;  %2735 = vmatmul.f32.gmra.mxu1 %v7419_v43  ;;  %v7422_v52 = vld [vmem:[#allocation51_spill] sm:$0xff]  ;;  %v7423_v61 = vand.u32 4294901760, %v7420_v13 }
 0x36d   : > { %v3050_v9 = vpop.f32.mrf.mxu3 }
 0x36e   : > { %v6318_v6 = vadd.f32 %v3050_v9, %v2890_v33 }
 0x370   : > { %2956 = vmatmul.f32.gmra.mxu2 %v5959_v56  ;;  %v2453_v1 = vpop.f32.mrf.mxu0 }
 0x371   : > { %v2646_v46 = vpop.f32.mrf.mxu1  ;;  %v2454_v4 = vadd.f32 %v2453_v1, %v6021_v41 }
 0x372   : > { %v2647_v27 = vadd.f32 %v2646_v46, %v2449_v15  ;;  %3117 = vmatmul.f32.gmra.mxu3 %v5959_v56  ;;  %v7424_v46 = vld [vmem:[#allocation52_spill] sm:$0xff] }
 0x373   : > { %v2893_v53 = vpop.f32.mrf.mxu2  ;;  %2532 = vmatmul.f32.gmra.mxu0 %v7420_v13 }
 0x374   : > { %v2894_v38 = vadd.f32 %v2893_v53, %v2647_v27  ;;  %2741 = vmatmul.f32.gmra.mxu1 %v7421_v28  ;;  %v7425_v27 = vand.u32 4294901760, %v7422_v52 }
 0x375   : > { %v3054_v62 = vpop.f32.mrf.mxu3 }
 0x376   : > { %v6326_v37 = vadd.f32 %v3054_v62, %v2894_v38 }
 0x378   : > { %2960 = vmatmul.f32.gmra.mxu2 %v5974_v44  ;;  %3169 = vrot.lane.b32.xlu2 %v6326_v37, %s4722_s18  ;;  %v2458_v40 = vpop.f32.mrf.mxu0 }
 0x379   : > { %v2652_v49 = vpop.f32.mrf.mxu1  ;;  %v2459_v41 = vadd.f32 %v2458_v40, %v6036_v19  ;;  %v7427_v40 = vld [vmem:[#allocation53_spill] sm:$0xff] }
 0x37a   : > { %v2653_v56 = vadd.f32 %v2652_v49, %v2454_v4  ;;  %3121 = vmatmul.f32.gmra.mxu3 %v5974_v44  ;;  %v7428_v49 = vand.u32 4294901760, %v7424_v46 }
 0x37b   : > { %v2897_v23 = vpop.f32.mrf.mxu2  ;;  %2537 = vmatmul.f32.gmra.mxu0 %v7422_v52 }
 0x37c   : > { %v2898_v10 = vadd.f32 %v2897_v23, %v2653_v56  ;;  %2747 = vmatmul.f32.gmra.mxu1 %v7423_v61 }
 0x37d   : > { %v3058_v33 = vpop.f32.mrf.mxu3 }
 0x37e   : > { %v6336_v63 = vadd.f32 %v3058_v33, %v2898_v10 }
 0x380   : > { %2964 = vmatmul.f32.gmra.mxu2 %v5989_v17  ;;  %3171 = vrot.lane.b32.xlu0 %v6336_v63, %s4722_s18  ;;  %v2463_v43 = vpop.f32.mrf.mxu0 }
 0x381   : > { %v2658_v9 = vpop.f32.mrf.mxu1  ;;  %v2464_v19 = vadd.f32 %v2463_v43, %v6051_v55  ;;  %v7431_v43 = vand.u32 4294901760, %v7427_v40 }
 0x382   : > { %v2659_v44 = vadd.f32 %v2658_v9, %v2459_v41  ;;  %3125 = vmatmul.f32.gmra.mxu3 %v5989_v17  ;;  %v7430_v41 = vld [vmem:[#allocation55_spill] sm:$0xff] }
 0x383   : > { %v2901_v15 = vpop.f32.mrf.mxu2  ;;  %2542 = vmatmul.f32.gmra.mxu0 %v7424_v46 }
 0x384   : > { %v2902_v1 = vadd.f32 %v2901_v15, %v2659_v44  ;;  %2753 = vmatmul.f32.gmra.mxu1 %v7425_v27 }
 0x385   : > { %v3062_v53 = vpop.f32.mrf.mxu3 }
 0x386   : > { %v6346_v38 = vadd.f32 %v3062_v53, %v2902_v1  ;;  %v7433_v1 = vld [vmem:[#allocation54_spill] sm:$0xff]  ;;  %v334_v53 = vld [vmem:[#allocation4 + $0x78] sm:$0xff] }
 0x388   : > { %7426 = vst [vmem:[#allocation12_spill] sm:$0xff] %v6346_v38  ;;  %2968 = vmatmul.f32.gmra.mxu2 %v6004_v36  ;;  %3173 = vrot.lane.b32.xlu1 %v6346_v38, %s4722_s18  ;;  %v2468_v13 = vpop.f32.mrf.mxu0 }
 0x389   : > { %v2664_v28 = vpop.f32.mrf.mxu1  ;;  %v2469_v55 = vadd.f32 %v2468_v13, %v6066_v34  ;;  %v7432_v34 = vld [vmem:[#allocation59_spill] sm:$0xff]  ;;  %v6371_v13 = vand.u32 4294901760, %v334_v53 }
 0x38a   : > { %v2665_v17 = vadd.f32 %v2664_v28, %v2464_v19  ;;  %3129 = vmatmul.f32.gmra.mxu3 %v6004_v36 }
 0x38b   : > { %v2905_v62 = vpop.f32.mrf.mxu2  ;;  %2547 = vmatmul.f32.gmra.mxu0 %v7427_v40  ;;  %v6377_v40 = vsub.f32 %v334_v53, %v6371_v13  ;;  %3559 = vmatpush.msrb.mxu3 %v6371_v13  ;;  %v333_v53 = vld [vmem:[#allocation4 + $0x70] sm:$0xff] }
 0x38c   : > { %v2906_v4 = vadd.f32 %v2905_v62, %v2665_v17  ;;  %2759 = vmatmul.f32.gmra.mxu1 %v7428_v49  ;;  %v7434_v17 = vld [vmem:[#allocation57_spill] sm:$0xff]  ;;  %v7435_v62 = vand.u32 4294901760, %v7430_v41  ;;  %3312 = vmatpush.msrb.mxu0 %v6371_v13 }
 0x38d   : > { %v3066_v56 = vpop.f32.mrf.mxu3  ;;  %7436 = vst [vmem:[#allocation15_spill] sm:$0xff] %v6377_v40  ;;  %3491 = vmatpush.msrb.mxu2 %v6377_v40 }
 0x38e   : > { %v6356_v23 = vadd.f32 %v3066_v56, %v2906_v4  ;;  %v6383_v56 = vand.u32 4294901760, %v6377_v40 }
 0x390   : > { %7429 = vst [vmem:[#allocation13_spill] sm:$0xff] %v6356_v23  ;;  %2972 = vmatmul.f32.gmra.mxu2 %v6019_v26  ;;  %3175 = vrot.lane.b32.xlu2 %v6356_v23, %s4722_s18  ;;  %v2473_v10 = vpop.f32.mrf.mxu0 }
 0x391   : > { %v2670_v52 = vpop.f32.mrf.mxu1  ;;  %v2474_v15 = vadd.f32 %v2473_v10, %v7432_v34  ;;  %v7437_v10 = vld [vmem:[#allocation56_spill] sm:$0xff] }
 0x392   : > { %v2671_v36 = vadd.f32 %v2670_v52, %v2469_v55  ;;  %3133 = vmatmul.f32.gmra.mxu3 %v6019_v26 }
 0x393   : > { %v2909_v61 = vpop.f32.mrf.mxu2  ;;  %2552 = vmatmul.f32.gmra.mxu0 %v7430_v41 }
 0x394   : > { %v2910_v33 = vadd.f32 %v2909_v61, %v2671_v36  ;;  %2765 = vmatmul.f32.gmra.mxu1 %v7431_v43  ;;  %v3379_v61 = vsub.f32 %v6377_v40, %v6383_v56 }
 0x395   : > { %v3070_v9 = vpop.f32.mrf.mxu3 }
 0x396   : > { %v3071_v44 = vadd.f32 %v3070_v9, %v2910_v33  ;;  %v6392_v43 = vand.u32 4294901760, %v3379_v61 }
 0x398   : > { %2976 = vmatmul.f32.gmra.mxu2 %v7433_v1  ;;  %3765 = vrot.lane.b32.xlu1 %v3071_v44, %s4722_s18  ;;  %v2478_v46 = vpop.f32.mrf.mxu0 }
 0x399   : > { %3185 = vrot.lane.b32.xlu0 %v3071_v44, %s4724_s20  ;;  %v2676_v26 = vpop.f32.mrf.mxu1  ;;  %v2479_v55 = vadd.f32 %v2478_v46, %v6096_v39  ;;  %v7438_v44 = vld [vmem:[#allocation58_spill] sm:$0xff]  ;;  %v7439_v39 = vand.u32 4294901760, %v7434_v17  ;;  %3381 = vmatpush.msrb.mxu1 %v6392_v43 }
 0x39a   : > { %v2677_v27 = vadd.f32 %v2676_v26, %v2474_v15  ;;  %3137 = vmatmul.f32.gmra.mxu3 %v7433_v1 }
 0x39b   : > { %v2913_v19 = vpop.f32.mrf.mxu2  ;;  %2557 = vmatmul.f32.gmra.mxu0 %v7434_v17 }
 0x39c   : > { %v2914_v28 = vadd.f32 %v2913_v19, %v2677_v27  ;;  %2771 = vmatmul.f32.gmra.mxu1 %v7435_v62  ;;  %v7440_v62 = vld [vmem:[#allocation11_spill] sm:$0xff] }
 0x39d   : > { %v3074_v4 = vpop.f32.mrf.mxu3 }
 0x39e   : > { %v3075_v49 = vadd.f32 %v3074_v4, %v2914_v28  ;;  %v6405_v28 = vand.u32 4294901760, %v333_v53  ;;  %v7441_v4 = vand.u32 4294901760, %v7438_v44 }
 0x3a0   : > { %2980 = vmatmul.f32.gmra.mxu2 %v7437_v10  ;;  %3767 = vrot.lane.b32.xlu2 %v3075_v49, %s4722_s18  ;;  %v2483_v52 = vpop.f32.mrf.mxu0 }
 0x3a1   : > { %3187 = vrot.lane.b32.xlu1 %v3075_v49, %s4724_s20  ;;  %v2682_v36 = vpop.f32.mrf.mxu1  ;;  %v2484_v1 = vadd.f32 %v2483_v52, %v6111_v50  ;;  %v6411_v49 = vsub.f32 %v333_v53, %v6405_v28  ;;  %3314 = vmatpush.msrb.mxu0 %v6405_v28 }
 0x3a2   : > { %v2683_v33 = vadd.f32 %v2682_v36, %v2479_v55  ;;  %3141 = vmatmul.f32.gmra.mxu3 %v7437_v10 }
 0x3a3   : > { %v2917_v41 = vpop.f32.mrf.mxu2  ;;  %2562 = vmatmul.f32.gmra.mxu0 %v7438_v44  ;;  %7442 = vst [vmem:[#allocation14_spill] sm:$0xff] %v6411_v49  ;;  %3561 = vmatpush.msrb.mxu3 %v6405_v28 }
 0x3a4   : > { %v2918_v9 = vadd.f32 %v2917_v41, %v2683_v33  ;;  %2777 = vmatmul.f32.gmra.mxu1 %v7439_v39  ;;  %3494 = vmatpush.msrb.mxu2 %v6411_v49 }
 0x3a5   : > { %v3078_v34 = vpop.f32.mrf.mxu3 }
 0x3a6   : > { %v6398_v15 = vadd.f32 %v3078_v34, %v2918_v9 }
 0x3a8   : > { %2984 = vmatmul.f32.gmra.mxu2 %v6064_v11  ;;  %3189 = vrot.lane.b32.xlu2 %v6398_v15, %s4724_s20  ;;  %v2488_v46 = vpop.f32.mrf.mxu0 }
 0x3a9   : > { %v2688_v26 = vpop.f32.mrf.mxu1  ;;  %v2489_v10 = vadd.f32 %v2488_v46, %v6126_v21  ;;  %v7443_v21 = vand.u32 4294901760, %v7440_v62 }
 0x3aa   : > { %v2689_v27 = vadd.f32 %v2688_v26, %v2484_v1  ;;  %3145 = vmatmul.f32.gmra.mxu3 %v6064_v11  ;;  %v6419_v11 = vand.u32 4294901760, %v6411_v49 }
 0x3ab   : > { %v2921_v19 = vpop.f32.mrf.mxu2  ;;  %2567 = vmatmul.f32.gmra.mxu0 %v7440_v62 }
 0x3ac   : > { %v2922_v17 = vadd.f32 %v2921_v19, %v2689_v27  ;;  %2783 = vmatmul.f32.gmra.mxu1 %v7441_v4  ;;  %v3385_v61 = vsub.f32 %v6411_v49, %v6419_v11  ;;  %v332_v27 = vld [vmem:[#allocation4 + $0x68] sm:$0xff] }
 0x3ad   : > { %v3082_v50 = vpop.f32.mrf.mxu3  ;;  %v6439_v19 = vand.u32 4294901760, %v332_v27 }
 0x3ae   : > { %v6415_v55 = vadd.f32 %v3082_v50, %v2922_v17  ;;  %v6428_v9 = vand.u32 4294901760, %v3385_v61 }
 0x3af   : > { %v6445_v4 = vsub.f32 %v332_v27, %v6439_v19  ;;  %3316 = vmatpush.msrb.mxu0 %v6439_v19  ;;  %3563 = vmatpush.msrb.mxu3 %v6439_v19 }
 0x3b0   : > { %2988 = vmatmul.f32.gmra.mxu2 %v6079_v42  ;;  %3191 = vrot.lane.b32.xlu0 %v6415_v55, %s4724_s20  ;;  %v2493_v52 = vpop.f32.mrf.mxu0 }
 0x3b1   : > { %v2694_v36 = vpop.f32.mrf.mxu1  ;;  %3387 = vmatpush.msrb.mxu1 %v6428_v9  ;;  %v2494_v1 = vadd.f32 %v2493_v52, %v6139_v45  ;;  %v7444_v45 = vand.u32 4294901760, %v6103_v31  ;;  %7445 = vst [vmem:[#allocation17_spill] sm:$0xff] %v6445_v4  ;;  %3497 = vmatpush.msrb.mxu2 %v6445_v4 }
 0x3b2   : > { %v2695_v33 = vadd.f32 %v2694_v36, %v2489_v10  ;;  %3149 = vmatmul.f32.gmra.mxu3 %v6079_v42 }
 0x3b3   : > { %v2925_v41 = vpop.f32.mrf.mxu2  ;;  %2572 = vmatmul.f32.gmra.mxu0 %v6103_v31 }
 0x3b4   : > { %v2926_v44 = vadd.f32 %v2925_v41, %v2695_v33  ;;  %2789 = vmatmul.f32.gmra.mxu1 %v7443_v21 }
 0x3b5   : > { %v3086_v39 = vpop.f32.mrf.mxu3 }
 0x3b6   : > { %v3087_v34 = vadd.f32 %v3086_v39, %v2926_v44 }
 0x3b8   : > { %2992 = vmatmul.f32.gmra.mxu2 %v6094_v57  ;;  %3777 = vrot.lane.b32.xlu2 %v3087_v34, %s4724_s20  ;;  %v2498_v42 = vpop.f32.mrf.mxu0 }
 0x3b9   : > { %3201 = vrot.lane.b32.xlu1 %v3087_v34, %s4725_s12  ;;  %v2700_v46 = vpop.f32.mrf.mxu1  ;;  %v2499_v10 = vadd.f32 %v2498_v42, %v6148_v35  ;;  %v7446_v35 = vand.u32 4294901760, %v6118_v14 }
 0x3ba   : > { %v2701_v26 = vadd.f32 %v2700_v46, %v2494_v1  ;;  %3153 = vmatmul.f32.gmra.mxu3 %v6094_v57  ;;  %v6451_v57 = vand.u32 4294901760, %v6445_v4  ;;  %v331_v46 = vld [vmem:[#allocation4 + $0x60] sm:$0xff] }
 0x3bb   : > { %v2929_v53 = vpop.f32.mrf.mxu2  ;;  %2577 = vmatmul.f32.gmra.mxu0 %v6118_v14 }
 0x3bc   : > { %v2930_v17 = vadd.f32 %v2929_v53, %v2701_v26  ;;  %2795 = vmatmul.f32.gmra.mxu1 %v7444_v45  ;;  %v3391_v36 = vsub.f32 %v6445_v4, %v6451_v57  ;;  %v6473_v26 = vand.u32 4294901760, %v331_v46  ;;  %v7447_v53 = vand.u32 4294901760, %v6133_v51 }
 0x3bd   : > { %v3090_v62 = vpop.f32.mrf.mxu3 }
 0x3be   : > { %v3091_v50 = vadd.f32 %v3090_v62, %v2930_v17  ;;  %v6460_v41 = vand.u32 4294901760, %v3391_v36  ;;  %3318 = vmatpush.msrb.mxu0 %v6473_v26  ;;  %3565 = vmatpush.msrb.mxu3 %v6473_v26 }
 0x3c0   : > { %2996 = vmatmul.f32.gmra.mxu2 %v6109_v58  ;;  %3203 = vrot.lane.b32.xlu2 %v3091_v50, %s4725_s12  ;;  %v2503_v31 = vpop.f32.mrf.mxu0 }
 0x3c1   : > { %3779 = vrot.lane.b32.xlu0 %v3091_v50, %s4724_s20  ;;  %v2706_v52 = vpop.f32.mrf.mxu1  ;;  %3393 = vmatpush.msrb.mxu1 %v6460_v41  ;;  %v2504_v34 = vadd.f32 %v2503_v31, %v6154_v16  ;;  %v6478_v16 = vsub.f32 %v331_v46, %v6473_v26 }
 0x3c2   : > { %v2707_v61 = vadd.f32 %v2706_v52, %v2499_v10  ;;  %3157 = vmatmul.f32.gmra.mxu3 %v6109_v58 }
 0x3c3   : > { %v2933_v33 = vpop.f32.mrf.mxu2  ;;  %2582 = vmatmul.f32.gmra.mxu0 %v6133_v51  ;;  %7448 = vst [vmem:[#allocation16_spill] sm:$0xff] %v6478_v16  ;;  %3500 = vmatpush.msrb.mxu2 %v6478_v16 }
 0x3c4   : > { %v2934_v44 = vadd.f32 %v2933_v33, %v2707_v61  ;;  %2801 = vmatmul.f32.gmra.mxu1 %v7446_v35 }
 0x3c5   : > { %v3094_v21 = vpop.f32.mrf.mxu3 }
 0x3c6   : > { %v6466_v39 = vadd.f32 %v3094_v21, %v2934_v44 }
 0x3c8   : > { %3000 = vmatmul.f32.gmra.mxu2 %v6124_v32  ;;  %v2508_v58 = vpop.f32.mrf.mxu0 }
 0x3c9   : > { %3205 = vrot.lane.b32.xlu0 %v6466_v39, %s4725_s12  ;;  %v2712_v1 = vpop.f32.mrf.mxu1  ;;  %v2509_v62 = vadd.f32 %v2508_v58, %v6162_v7  ;;  %v330_v58 = vld [vmem:[#allocation4 + $0x58] sm:$0xff] }
 0x3ca   : > { %v2713_v42 = vadd.f32 %v2712_v1, %v2504_v34  ;;  %3161 = vmatmul.f32.gmra.mxu3 %v6124_v32  ;;  %v6486_v32 = vand.u32 4294901760, %v6478_v16 }
 0x3cb   : > { %v2937_v14 = vpop.f32.mrf.mxu2 }
 0x3cc   : > { %v2938_v27 = vadd.f32 %v2937_v14, %v2713_v42  ;;  %2807 = vmatmul.f32.gmra.mxu1 %v7447_v53  ;;  %v3397_v10 = vsub.f32 %v6478_v16, %v6486_v32  ;;  %v6499_v42 = vand.u32 4294901760, %v330_v58 }
 0x3cd   : > { %v3098_v17 = vpop.f32.mrf.mxu3 }
 0x3ce   : > { %v6482_v45 = vadd.f32 %v3098_v17, %v2938_v27  ;;  %v6493_v36 = vand.u32 4294901760, %v3397_v10  ;;  %v6502_v27 = vsub.f32 %v330_v58, %v6499_v42  ;;  %3320 = vmatpush.msrb.mxu0 %v6499_v42  ;;  %3567 = vmatpush.msrb.mxu3 %v6499_v42  ;;  %v329_v58 = vld [vmem:[#allocation4 + $0x50] sm:$0xff] }
 0x3d0   : > { %3207 = vrot.lane.b32.xlu1 %v6482_v45, %s4725_s12  ;;  %v2513_v51 = vpop.f32.mrf.mxu0  ;;  %3399 = vmatpush.msrb.mxu1 %v6493_v36  ;;  %7449 = vst [vmem:[#allocation19_spill] sm:$0xff] %v6502_v27  ;;  %v6508_v53 = vand.u32 4294901760, %v6502_v27 }
 0x3d1   : > { %v2718_v50 = vpop.f32.mrf.mxu1  ;;  %v2514_v35 = vadd.f32 %v2513_v51, %v6170_v3  ;;  %3503 = vmatpush.msrb.mxu2 %v6502_v27 }
 0x3d2   : > { %v2719_v31 = vadd.f32 %v2718_v50, %v2509_v62  ;;  %v3403_v50 = vsub.f32 %v6502_v27, %v6508_v53  ;;  %v3754_v27 = vpop.permute.xlu0 %3753 }
 0x3d3   : > { %v2941_v52 = vpop.f32.mrf.mxu2 }
 0x3d4   : > { %v2942_v61 = vadd.f32 %v2941_v52, %v2719_v31  ;;  %v6515_v52 = vand.u32 4294901760, %v3403_v50 }
 0x3d5   : > { %v3102_v33 = vpop.f32.mrf.mxu3 }
 0x3d6   : > { %v3103_v44 = vadd.f32 %v3102_v33, %v2942_v61  ;;  %3405 = vmatpush.msrb.mxu1 %v6515_v52 }
 0x3d8   : > { %3217 = vrot.lane.b32.xlu2 %v3103_v44, %s4726_s21  ;;  %3789 = vrot.lane.b32.xlu0 %v3103_v44, %s4725_s12  ;;  %v2518_v7 = vpop.f32.mrf.mxu0 }
 0x3d9   : > { %v2724_v21 = vpop.f32.mrf.mxu1  ;;  %v2519_v17 = vadd.f32 %v2518_v7, %v6178_v0 }
 0x3da   : > { %v2725_v34 = vadd.f32 %v2724_v21, %v2514_v35  ;;  %v6523_v21 = vpop.permute.xlu2 %3169 }
 0x3db   : > { %v2945_v1 = vpop.f32.mrf.mxu2  ;;  %7450 = vst [vmem:[#allocation18_spill] sm:$0xff] %v6523_v21 }
 0x3dc   : > { %v2946_v46 = vadd.f32 %v2945_v1, %v2725_v34 }
 0x3dd   : > { %v3106_v14 = vpop.f32.mrf.mxu3 }
 0x3de   : > { %v3107_v3 = vadd.f32 %v3106_v14, %v2946_v46  ;;  %v6525_v46 = vand.u32 4294901760, %v329_v58 }
 0x3e0   : > { %3791 = vrot.lane.b32.xlu1 %v3107_v3, %s4725_s12  ;;  %3219 = vrot.lane.b32.xlu0 %v3107_v3, %s4726_s21  ;;  %v2523_v62 = vpop.f32.mrf.mxu0 }
 0x3e1   : > { %v2730_v51 = vpop.f32.mrf.mxu1  ;;  %v2524_v0 = vadd.f32 %v2523_v62, %v6186_v48  ;;  %3322 = vmatpush.msrb.mxu0 %v6525_v46  ;;  %3569 = vmatpush.msrb.mxu3 %v6525_v46 }
 0x3e2   : > { %v2731_v10 = vadd.f32 %v2730_v51, %v2519_v17  ;;  %v6528_v17 = vsub.f32 %v329_v58, %v6525_v46 }
 0x3e3   : > { %v2949_v31 = vpop.f32.mrf.mxu2 }
 0x3e4   : > { %v2950_v61 = vadd.f32 %v2949_v31, %v2731_v10  ;;  %7451 = vst [vmem:[#allocation21_spill] sm:$0xff] %v6528_v17  ;;  %3506 = vmatpush.msrb.mxu2 %v6528_v17  ;;  %v6536_v62 = vand.u32 4294901760, %v6528_v17 }
 0x3e5   : > { %v3110_v33 = vpop.f32.mrf.mxu3 }
 0x3e6   : > { %v6518_v44 = vadd.f32 %v3110_v33, %v2950_v61  ;;  %v3409_v31 = vsub.f32 %v6528_v17, %v6536_v62 }
 0x3e8   : > { %3221 = vrot.lane.b32.xlu1 %v6518_v44, %s4726_s21  ;;  %v2528_v35 = vpop.f32.mrf.mxu0 }
 0x3e9   : > { %v2736_v7 = vpop.f32.mrf.mxu1  ;;  %v2529_v51 = vadd.f32 %v2528_v35, %v6194_v25  ;;  %v3756_v25 = vpop.permute.xlu1 %3755 }
 0x3ea   : > { %v2737_v34 = vadd.f32 %v2736_v7, %v2524_v0  ;;  %v6543_v61 = vpop.permute.xlu2 %3175  ;;  %v6545_v7 = vand.u32 4294901760, %v3409_v31 }
 0x3eb   : > { %v2953_v1 = vpop.f32.mrf.mxu2 }
 0x3ec   : > { %v2954_v14 = vadd.f32 %v2953_v1, %v2737_v34  ;;  %3411 = vmatpush.msrb.mxu1 %v6545_v7 }
 0x3ed   : > { %v3114_v3 = vpop.f32.mrf.mxu3 }
 0x3ee   : > { %v6532_v48 = vadd.f32 %v3114_v3, %v2954_v14 }
 0x3f0   : > { %3223 = vrot.lane.b32.xlu2 %v6532_v48, %s4726_s21  ;;  %v2533_v50 = vpop.f32.mrf.mxu0 }
 0x3f1   : > { %v2742_v10 = vpop.f32.mrf.mxu1  ;;  %v2534_v35 = vadd.f32 %v2533_v50, %v6202_v20 }
 0x3f2   : > { %v2743_v33 = vadd.f32 %v2742_v10, %v2529_v51  ;;  %v3838_v51 = vsel %vm528_vm0, %v3756_v25, %v6336_v63 }
 0x3f3   : > { %v2957_v0 = vpop.f32.mrf.mxu2 }
 0x3f4   : > { %v2958_v34 = vadd.f32 %v2957_v0, %v2743_v33  ;;  %v328_v33 = vld [vmem:[#allocation4 + $0x48] sm:$0xff] }
 0x3f5   : > { %v3118_v58 = vpop.f32.mrf.mxu3 }
 0x3f6   : > { %v3119_v1 = vadd.f32 %v3118_v58, %v2958_v34  ;;  %v6556_v58 = vand.u32 4294901760, %v328_v33 }
 0x3f8   : > { %3801 = vrot.lane.b32.xlu1 %v3119_v1, %s4726_s21  ;;  %3233 = vrot.lane.b32.xlu0 %v3119_v1, %s4727_s22  ;;  %v2538_v14 = vpop.f32.mrf.mxu0  ;;  %v6559_v23 = vsub.f32 %v328_v33, %v6556_v58 }
 0x3f9   : > { %v2748_v3 = vpop.f32.mrf.mxu1  ;;  %3324 = vmatpush.msrb.mxu0 %v6556_v58  ;;  %3571 = vmatpush.msrb.mxu3 %v6556_v58 }
 0x3fa   : > { %v2749_v10 = vadd.f32 %v2748_v3, %v2534_v35  ;;  %v3768_v31 = vpop.permute.xlu2 %3767  ;;  %7452 = vst [vmem:[#allocation20_spill] sm:$0xff] %v6559_v23  ;;  %v3174_v63 = vpop.permute.xlu1 %3173  ;;  %3509 = vmatpush.msrb.mxu2 %v6559_v23  ;;  %v6567_v25 = vand.u32 4294901760, %v6559_v23  ;;  %v2539_v35 = vadd.f32 %v2538_v14, %v6210_v22 }
 0x3fb   : > { %v6554_v0 = vsel %vm3281_vm1, %v3838_v51, %v3768_v31  ;;  %v2961_v34 = vpop.f32.mrf.mxu2  ;;  %v3279_v31 = vsel %vm528_vm0, %v6310_v2, %v3174_v63 }
 0x3fc   : > { %v2962_v20 = vadd.f32 %v2961_v34, %v2749_v10  ;;  %v3415_v10 = vsub.f32 %v6559_v23, %v6567_v25 }
 0x3fd   : > { %v3122_v50 = vpop.f32.mrf.mxu3 }
 0x3fe   : > { %v6563_v1 = vadd.f32 %v3122_v50, %v2962_v20  ;;  %v6579_v38 = vand.u32 4294901760, %v3415_v10 }
 0x400   : > { %3235 = vrot.lane.b32.xlu1 %v6563_v1, %s4727_s22  ;;  %v2543_v3 = vpop.f32.mrf.mxu0  ;;  %3417 = vmatpush.msrb.mxu1 %v6579_v38 }
 0x401   : > { %v2754_v51 = vpop.f32.mrf.mxu1  ;;  %v2544_v23 = vadd.f32 %v2543_v3, %v6218_v60 }
 0x402   : > { %v2755_v33 = vadd.f32 %v2754_v51, %v2539_v35  ;;  %v3190_v34 = vpop.permute.xlu2 %3189  ;;  %v3837_v51 = vsel %vm528_vm0, %v3754_v27, %v6326_v37 }
 0x403   : > { %v6577_v20 = vsel %vm3281_vm1, %v3279_v31, %v3190_v34  ;;  %v2965_v50 = vpop.f32.mrf.mxu2  ;;  %v327_v34 = vld [vmem:[#allocation4 + $0x40] sm:$0xff] }
 0x404   : > { %7453 = vst [vmem:[#allocation23_spill] sm:$0xff] %v6577_v20  ;;  %v2966_v22 = vadd.f32 %v2965_v50, %v2755_v33  ;;  %v6590_v20 = vand.u32 4294901760, %v327_v34 }
 0x405   : > { %v3126_v14 = vpop.f32.mrf.mxu3 }
 0x406   : > { %v6582_v17 = vadd.f32 %v3126_v14, %v2966_v22  ;;  %v6593_v60 = vsub.f32 %v327_v34, %v6590_v20  ;;  %3326 = vmatpush.msrb.mxu0 %v6590_v20  ;;  %3573 = vmatpush.msrb.mxu3 %v6590_v20 }
 0x408   : > { %3237 = vrot.lane.b32.xlu2 %v6582_v17, %s4727_s22  ;;  %v2548_v63 = vpop.f32.mrf.mxu0  ;;  %7454 = vst [vmem:[#allocation22_spill] sm:$0xff] %v6593_v60  ;;  %3512 = vmatpush.msrb.mxu2 %v6593_v60  ;;  %v6601_v37 = vand.u32 4294901760, %v6593_v60 }
 0x409   : > { %v2760_v35 = vpop.f32.mrf.mxu1  ;;  %v2549_v27 = vadd.f32 %v2548_v63, %v6226_v30 }
 0x40a   : > { %v2761_v31 = vadd.f32 %v2760_v35, %v2544_v23  ;;  %v3766_v10 = vpop.permute.xlu1 %3765  ;;  %v3172_v23 = vpop.permute.xlu0 %3171 }
 0x40b   : > { %v3841_v33 = vsel %vm3281_vm1, %v3837_v51, %v3766_v10  ;;  %v2969_v50 = vpop.f32.mrf.mxu2 }
 0x40c   : > { %v2970_v22 = vadd.f32 %v2969_v50, %v2761_v31  ;;  %v3421_v31 = vsub.f32 %v6593_v60, %v6601_v37  ;;  %v3278_v50 = vsel %vm528_vm0, %v6300_v8, %v3172_v23  ;;  %v325_v60 = vld [vmem:[#allocation4 + $0x30] sm:$0xff] }
 0x40d   : > { %v3130_v14 = vpop.f32.mrf.mxu3 }
 0x40e   : > { %v6597_v3 = vadd.f32 %v3130_v14, %v2970_v22  ;;  %v6613_v30 = vand.u32 4294901760, %v3421_v31 }
 0x410   : > { %3239 = vrot.lane.b32.xlu0 %v6597_v3, %s4727_s22  ;;  %v2553_v35 = vpop.f32.mrf.mxu0  ;;  %3423 = vmatpush.msrb.mxu1 %v6613_v30 }
 0x411   : > { %v2766_v51 = vpop.f32.mrf.mxu1 }
 0x412   : > { %v2767_v10 = vadd.f32 %v2766_v51, %v2549_v27  ;;  %v3778_v34 = vpop.permute.xlu2 %3777  ;;  %v2554_v27 = vadd.f32 %v2553_v35, %v6234_v24  ;;  %v6620_v23 = vpop.permute.xlu0 %3185 }
 0x413   : > { %v6611_v22 = vsel %vm3286_vm2, %v3841_v33, %v3778_v34  ;;  %v3188_v14 = vpop.permute.xlu1 %3187  ;;  %v2973_v16 = vpop.f32.mrf.mxu2  ;;  %7455 = vst [vmem:[#allocation25_spill] sm:$0xff] %v6620_v23  ;;  %v326_v34 = vld [vmem:[#allocation4 + $0x38] sm:$0xff] }
 0x414   : > { %v3283_v63 = vsel %vm3281_vm1, %v3278_v50, %v3188_v14  ;;  %v2974_v4 = vadd.f32 %v2973_v16, %v2767_v10  ;;  %v6625_v50 = vand.u32 4294901760, %v326_v34 }
 0x415   : > { %v3134_v49 = vpop.f32.mrf.mxu3 }
 0x416   : > { %v3135_v40 = vadd.f32 %v3134_v49, %v2974_v4  ;;  %v6628_v4 = vsub.f32 %v326_v34, %v6625_v50  ;;  %3328 = vmatpush.msrb.mxu0 %v6625_v50  ;;  %3575 = vmatpush.msrb.mxu3 %v6625_v50 }
 0x418   : > { %3813 = vrot.lane.b32.xlu2 %v3135_v40, %s4727_s22  ;;  %3249 = vrot.lane.b32.xlu1 %v3135_v40, %s4728_s23  ;;  %v2558_v8 = vpop.f32.mrf.mxu0  ;;  %7457 = vst [vmem:[#allocation27_spill] sm:$0xff] %v6628_v4  ;;  %v6636_v35 = vand.u32 4294901760, %v6628_v4 }
 0x419   : > { %v2772_v33 = vpop.f32.mrf.mxu1  ;;  %3515 = vmatpush.msrb.mxu2 %v6628_v4  ;;  %v2559_v14 = vadd.f32 %v2558_v8, %v6242_v59 }
 0x41a   : > { %v2773_v51 = vadd.f32 %v2772_v33, %v2554_v27  ;;  %v3204_v31 = vpop.permute.xlu2 %3203  ;;  %v3427_v33 = vsub.f32 %v6628_v4, %v6636_v35 }
 0x41b   : > { %v6623_v16 = vsel %vm3286_vm2, %v3283_v63, %v3204_v31  ;;  %v2977_v10 = vpop.f32.mrf.mxu2 }
 0x41c   : > { %7456 = vst [vmem:[#allocation24_spill] sm:$0xff] %v6623_v16  ;;  %v2978_v49 = vadd.f32 %v2977_v10, %v2773_v51  ;;  %v3280_v51 = vsel %vm528_vm0, %v6318_v6, %v6543_v61 }
 0x41d   : > { %v3138_v24 = vpop.f32.mrf.mxu3 }
 0x41e   : > { %v6632_v40 = vadd.f32 %v3138_v24, %v2978_v49  ;;  %v6649_v24 = vand.u32 4294901760, %v3427_v33 }
 0x420   : > { %3251 = vrot.lane.b32.xlu2 %v6632_v40, %s4728_s23  ;;  %v2563_v63 = vpop.f32.mrf.mxu0  ;;  %3429 = vmatpush.msrb.mxu1 %v6649_v24 }
 0x421   : > { %v2778_v27 = vpop.f32.mrf.mxu1  ;;  %v2564_v4 = vadd.f32 %v2563_v63, %v6250_v29 }
 0x422   : > { %v2779_v31 = vadd.f32 %v2778_v27, %v2559_v14  ;;  %v3192_v34 = vpop.permute.xlu0 %3191 }
 0x423   : > { %v6647_v10 = vsel %vm3281_vm1, %v3280_v51, %v3192_v34  ;;  %v2981_v49 = vpop.f32.mrf.mxu2  ;;  %v6657_v34 = vand.u32 4294901760, %v325_v60 }
 0x424   : > { %v2982_v59 = vadd.f32 %v2981_v49, %v2779_v31 }
 0x425   : > { %v3142_v8 = vpop.f32.mrf.mxu3  ;;  %v6660_v31 = vsub.f32 %v325_v60, %v6657_v34  ;;  %3330 = vmatpush.msrb.mxu0 %v6657_v34  ;;  %3577 = vmatpush.msrb.mxu3 %v6657_v34 }
 0x426   : > { %v6652_v16 = vadd.f32 %v3142_v8, %v2982_v59 }
 0x427   : > { %7458 = vst [vmem:[#allocation26_spill] sm:$0xff] %v6660_v31  ;;  %3518 = vmatpush.msrb.mxu2 %v6660_v31  ;;  %v6668_v63 = vand.u32 4294901760, %v6660_v31 }
 0x428   : > { %3253 = vrot.lane.b32.xlu0 %v6652_v16, %s4728_s23  ;;  %v2568_v61 = vpop.f32.mrf.mxu0 }
 0x429   : > { %v2784_v14 = vpop.f32.mrf.mxu1  ;;  %v3433_v60 = vsub.f32 %v6660_v31, %v6668_v63 }
 0x42a   : > { %v2785_v27 = vadd.f32 %v2784_v14, %v2564_v4  ;;  %v2569_v4 = vadd.f32 %v2568_v61, %v6258_v47 }
 0x42b   : > { %v2985_v51 = vpop.f32.mrf.mxu2  ;;  %v6685_v31 = vpop.permute.xlu1 %3201 }
 0x42c   : > { %v2986_v33 = vadd.f32 %v2985_v51, %v2785_v27  ;;  %7459 = vst [vmem:[#allocation29_spill] sm:$0xff] %v6685_v31 }
 0x42d   : > { %v3146_v23 = vpop.f32.mrf.mxu3 }
 0x42e   : > { %v6664_v29 = vadd.f32 %v3146_v23, %v2986_v33  ;;  %v6675_v23 = vand.u32 4294901760, %v3433_v60 }
 0x430   : > { %3255 = vrot.lane.b32.xlu1 %v6664_v29, %s4728_s23  ;;  %v2573_v49 = vpop.f32.mrf.mxu0  ;;  %3435 = vmatpush.msrb.mxu1 %v6675_v23 }
 0x431   : > { %v2790_v59 = vpop.f32.mrf.mxu1  ;;  %v2574_v61 = vadd.f32 %v2573_v49, %v6266_v12 }
 0x432   : > { %v2791_v8 = vadd.f32 %v2790_v59, %v2569_v4  ;;  %v324_v59 = vld [vmem:[#allocation4 + $0x28] sm:$0xff] }
 0x433   : > { %v3780_v14 = vpop.permute.xlu0 %3779  ;;  %v2989_v27 = vpop.f32.mrf.mxu2  ;;  %v6687_v21 = vand.u32 4294901760, %v324_v59 }
 0x434   : > { %v6679_v51 = vsel %vm3286_vm2, %v6554_v0, %v3780_v14  ;;  %v2990_v33 = vadd.f32 %v2989_v27, %v2791_v8 }
 0x435   : > { %v3150_v54 = vpop.f32.mrf.mxu3  ;;  %7460 = vst [vmem:[#allocation28_spill] sm:$0xff] %v6687_v21  ;;  %v6690_v27 = vsub.f32 %v324_v59, %v6687_v21  ;;  %3332 = vmatpush.msrb.mxu0 %v6687_v21  ;;  %3579 = vmatpush.msrb.mxu3 %v6687_v21 }
 0x436   : > { %v3151_v47 = vadd.f32 %v3150_v54, %v2990_v33 }
 0x437   : > { %7461 = vst [vmem:[#allocation31_spill] sm:$0xff] %v6690_v27  ;;  %3521 = vmatpush.msrb.mxu2 %v6690_v27  ;;  %v6696_v49 = vand.u32 4294901760, %v6690_v27 }
 0x438   : > { %3265 = vrot.lane.b32.xlu2 %v3151_v47, %s4723_s19  ;;  %3825 = vrot.lane.b32.xlu0 %v3151_v47, %s4728_s23  ;;  %v2578_v0 = vpop.f32.mrf.mxu0 }
 0x439   : > { %v2796_v4 = vpop.f32.mrf.mxu1  ;;  %v2579_v33 = vadd.f32 %v2578_v0, %v6274_v18  ;;  %v3439_v47 = vsub.f32 %v6690_v27, %v6696_v49 }
 0x43a   : > { %v2797_v60 = vadd.f32 %v2796_v4, %v2574_v61  ;;  %v6704_v61 = vpop.permute.xlu2 %3217 }
 0x43b   : > { %v2993_v14 = vpop.f32.mrf.mxu2  ;;  %v6706_v59 = vpop.permute.xlu0 %3205 }
 0x43c   : > { %v2994_v8 = vadd.f32 %v2993_v14, %v2797_v60 }
 0x43d   : > { %v3154_v12 = vpop.f32.mrf.mxu3 }
 0x43e   : > { %v3155_v54 = vadd.f32 %v3154_v12, %v2994_v8  ;;  %v6708_v8 = vand.u32 4294901760, %v3439_v47  ;;  %v323_v47 = vld [vmem:[#allocation4 + $0x20] sm:$0xff] }
 0x440   : > { %3803 = vrot.lane.b32.xlu2 %v6563_v1, %s4726_s21  ;;  %3267 = vrot.lane.b32.xlu0 %v3155_v54, %s4723_s19  ;;  %v2583_v1 = vpop.f32.mrf.mxu0 }
 0x441   : > { %v2802_v4 = vpop.f32.mrf.mxu1  ;;  %3441 = vmatpush.msrb.mxu1 %v6708_v8  ;;  %v2584_v27 = vadd.f32 %v2583_v1, %v6282_v5 }
 0x442   : > { %v2803_v60 = vadd.f32 %v2802_v4, %v2579_v33  ;;  %v3208_v14 = vpop.permute.xlu1 %3207 }
 0x443   : > { %v3290_v18 = vsel %vm3286_vm2, %v6647_v10, %v3208_v14  ;;  %v2997_v0 = vpop.f32.mrf.mxu2  ;;  %v6719_v14 = vand.u32 4294901760, %v323_v47 }
 0x444   : > { %v2998_v12 = vadd.f32 %v2997_v0, %v2803_v60 }
 0x445   : > { %v3158_v31 = vpop.f32.mrf.mxu3  ;;  %3334 = vmatpush.msrb.mxu0 %v6719_v14  ;;  %3581 = vmatpush.msrb.mxu3 %v6719_v14 }
 0x446   : > { %v3159_v21 = vadd.f32 %v3158_v31, %v2998_v12  ;;  %v6727_v12 = vsub.f32 %v323_v47, %v6719_v14 }
 0x448   : > { %3757 = vrot.lane.b32.xlu2 %v6310_v2, %s4723_s19  ;;  %3269 = vrot.lane.b32.xlu1 %v3159_v21, %s4723_s19  ;;  %v6733_v1 = vand.u32 4294901760, %v6727_v12 }
 0x449   : > { %3815 = vrot.lane.b32.xlu0 %v6632_v40, %s4727_s22  ;;  %v2808_v33 = vpop.f32.mrf.mxu1  ;;  %3524 = vmatpush.msrb.mxu2 %v6727_v12 }
 0x44a   : > { %v2809_v10 = vadd.f32 %v2808_v33, %v2584_v27  ;;  %v3224_v4 = vpop.permute.xlu2 %3223  ;;  %v3790_v60 = vpop.permute.xlu0 %3789 }
 0x44b   : > { %v6722_v31 = vsel %vm3291_vm3, %v3290_v18, %v3224_v4  ;;  %v3849_v5 = vsel %vm3291_vm3, %v6611_v22, %v3790_v60  ;;  %v3001_v2 = vpop.f32.mrf.mxu2  ;;  %v3445_v22 = vsub.f32 %v6727_v12, %v6733_v1 }
 0x44c   : > { %v3002_v0 = vadd.f32 %v3001_v2, %v2809_v10  ;;  %v322_v10 = vld [vmem:[#allocation4 + $0x18] sm:$0xff] }
 0x44d   : > { %v3162_v40 = vpop.f32.mrf.mxu3  ;;  %v6741_v33 = vand.u32 4294901760, %v3445_v22  ;;  %v6748_v4 = vand.u32 4294901760, %v322_v10 }
 0x44e   : > { %v3163_v27 = vadd.f32 %v3162_v40, %v3002_v0 }
 0x44f   : > { %3447 = vmatpush.msrb.mxu1 %v6741_v33  ;;  %3336 = vmatpush.msrb.mxu0 %v6748_v4 }
 0x450   : > { %3827 = vrot.lane.b32.xlu1 %v3155_v54, %s4728_s23  ;;  %3271 = vrot.lane.b32.xlu2 %v3163_v27, %s4723_s19  ;;  %v6753_v54 = vsub.f32 %v322_v10, %v6748_v4 }
 0x451   : > { %3769 = vrot.lane.b32.xlu0 %v6398_v15, %s4722_s18  ;;  %3583 = vmatpush.msrb.mxu3 %v6748_v4 }
 0x452   : > { %v3792_v18 = vpop.permute.xlu1 %3791  ;;  %3527 = vmatpush.msrb.mxu2 %v6753_v54  ;;  %v6763_v15 = vand.u32 4294901760, %v6753_v54 }
 0x453   : > { %v6745_v47 = vsel %vm3291_vm3, %v6679_v51, %v3792_v18 }
 0x454   : > { %v3451_v51 = vsub.f32 %v6753_v54, %v6763_v15 }
 0x456   : > { %v6767_v60 = vand.u32 4294901760, %v3451_v51 }
 0x458   : > { %3781 = vrot.lane.b32.xlu1 %v6466_v39, %s4724_s20  ;;  %3793 = vrot.lane.b32.xlu2 %v6518_v44, %s4725_s12  ;;  %v321_v44 = vld [vmem:[#allocation4 + $0x10] sm:$0xff] }
 0x459   : > { %3805 = vrot.lane.b32.xlu0 %v6582_v17, %s4726_s21  ;;  %3453 = vmatpush.msrb.mxu1 %v6767_v60  ;;  %v6777_v17 = vand.u32 4294901760, %v321_v44 }
 0x45a   : > { %v6775_v39 = vpop.permute.xlu1 %3221 }
 0x45b   : > { %3338 = vmatpush.msrb.mxu0 %v6777_v17  ;;  %3585 = vmatpush.msrb.mxu3 %v6777_v17  ;;  %v6782_v2 = vsub.f32 %v321_v44, %v6777_v17 }
 0x45d   : > { %3530 = vmatpush.msrb.mxu2 %v6782_v2  ;;  %v6797_v22 = vand.u32 4294901760, %v6782_v2 }
 0x460   : > { %3817 = vrot.lane.b32.xlu1 %v6652_v16, %s4727_s22  ;;  %3829 = vrot.lane.b32.xlu2 %v3159_v21, %s4728_s23 }
 0x461   : > { %3759 = vrot.lane.b32.xlu0 %v6318_v6, %s4723_s19  ;;  %v320_v6 = vld [vmem:[#allocation4 + $0x8] sm:$0xff] }
 0x462   : > { %v6791_v21 = vpop.permute.xlu2 %3237  ;;  %v6793_v0 = vand.u32 4294901760, %v320_v6 }
 0x464   : > { %3587 = vmatpush.msrb.mxu3 %v6793_v0  ;;  %3340 = vmatpush.msrb.mxu0 %v6793_v0 }
 0x468   : > { %3771 = vrot.lane.b32.xlu1 %v6415_v55, %s4722_s18  ;;  %3783 = vrot.lane.b32.xlu2 %v6482_v45, %s4724_s20  ;;  %v319_v55 = vld [vmem:[#allocation4] sm:$0xff]  ;;  %v6800_v45 = vsub.f32 %v320_v6, %v6793_v0 }
 0x469   : > { %3795 = vrot.lane.b32.xlu0 %v6532_v48, %s4725_s12  ;;  %v6802_v18 = vand.u32 4294901760, %v319_v55  ;;  %v3457_v48 = vsub.f32 %v6782_v2, %v6797_v22 }
 0x46a   : > { %v3802_v16 = vpop.permute.xlu1 %3801  ;;  %v6809_v10 = vand.u32 4294901760, %v6800_v45  ;;  %3533 = vmatpush.msrb.mxu2 %v6800_v45 }
 0x46b   : > { %v3853_v40 = vsel %vm3296_vm4, %v3849_v5, %v3802_v16  ;;  %v6812_v5 = vsub.f32 %v319_v55, %v6802_v18  ;;  %3589 = vmatpush.msrb.mxu3 %v6802_v18  ;;  %v6816_v51 = vand.u32 4294901760, %v3457_v48  ;;  %3342 = vmatpush.msrb.mxu0 %v6802_v18 }
 0x46c   : > { %v3463_v44 = vsub.f32 %v6800_v45, %v6809_v10 }
 0x46d   : > { %3935 = vmatpush.msra.mxu3 %v6392_v43  ;;  %v6827_v6 = vand.u32 4294901760, %v6812_v5  ;;  %3459 = vmatpush.msrb.mxu1 %v6816_v51 }
 0x46e   : > { %v3464_v55 = vand.u32 4294901760, %v3463_v44  ;;  %3536 = vmatpush.msrb.mxu2 %v6812_v5  ;;  %3618 = vmatpush.msra.mxu0 %v6383_v56 }
 0x46f   : > { %v3469_v43 = vsub.f32 %v6812_v5, %v6827_v6  ;;  %3941 = vmatpush.msra.mxu3 %v6428_v9 }
 0x470   : > { %3807 = vrot.lane.b32.xlu1 %v6597_v3, %s4726_s21  ;;  %3819 = vrot.lane.b32.xlu2 %v6664_v29, %s4727_s22 }
 0x471   : > { %3831 = vrot.lane.b32.xlu0 %v3163_v27, %s4728_s23  ;;  %3866 = vmatpush.msra.mxu2 %v6371_v13  ;;  %v3470_v29 = vand.u32 4294901760, %v3469_v43  ;;  %v7466_v27 = vld [vmem:[#allocation29_spill] sm:$0xff] }
 0x472   : > { %v3814_v16 = vpop.permute.xlu2 %3813  ;;  %3465 = vmatpush.msrb.mxu1 %v3464_v55  ;;  %3947 = vmatpush.msra.mxu3 %v6460_v41  ;;  %v6878_v9 = vpop.permute.xlu1 %3235  ;;  %v7462_v41 = vld [vmem:[#allocation28_spill] sm:$0xff] }
 0x473   : > { %v6836_v3 = vsel %vm3301_vm5, %v3853_v40, %v3814_v16  ;;  %3868 = vmatpush.msra.mxu2 %v6405_v28  ;;  %3622 = vmatpush.msra.mxu0 %v6419_v11 }
 0x474   : > { %3471 = vmatpush.msrb.mxu1 %v3470_v29  ;;  %3953 = vmatpush.msra.mxu3 %v6493_v36 }
 0x475   : > { %3870 = vmatpush.msra.mxu2 %v6439_v19  ;;  %3626 = vmatpush.msra.mxu0 %v6451_v57 }
 0x476   : > { %3697 = vmatpush.msra.mxu1 %v6371_v13  ;;  %3959 = vmatpush.msra.mxu3 %v6515_v52  ;;  %v7463_v52 = vld [vmem:[#allocation18_spill] sm:$0xff] }
 0x477   : > { %3872 = vmatpush.msra.mxu2 %v6473_v26  ;;  %3630 = vmatpush.msra.mxu0 %v6486_v32 }
 0x478   : > { %3699 = vmatpush.msra.mxu1 %v6405_v28  ;;  %3965 = vmatpush.msra.mxu3 %v6545_v7  ;;  %v7464_v7 = vld [vmem:[#allocation10_spill] sm:$0xff] }
 0x479   : > { %3874 = vmatpush.msra.mxu2 %v6499_v42  ;;  %3634 = vmatpush.msra.mxu0 %v6508_v53 }
 0x47a   : > { %3701 = vmatpush.msra.mxu1 %v6439_v19  ;;  %3971 = vmatpush.msra.mxu3 %v6579_v38  ;;  %v6874_v38 = vpop.permute.xlu0 %3219  ;;  %v6886_v36 = vpop.permute.xlu2 %3251 }
 0x47b   : > { %3876 = vmatpush.msra.mxu2 %v6525_v46  ;;  %3638 = vmatpush.msra.mxu0 %v6536_v62 }
 0x47c   : > { %3703 = vmatpush.msra.mxu1 %v6473_v26  ;;  %3977 = vmatpush.msra.mxu3 %v6613_v30  ;;  %v3277_v30 = vsel %vm528_vm0, %v7464_v7, %v7463_v52 }
 0x47d   : > { %3878 = vmatpush.msra.mxu2 %v6556_v58  ;;  %3642 = vmatpush.msra.mxu0 %v6567_v25 }
 0x47e   : > { %3705 = vmatpush.msra.mxu1 %v6499_v42  ;;  %3983 = vmatpush.msra.mxu3 %v6649_v24  ;;  %v7465_v24 = vld [vmem:[#allocation25_spill] sm:$0xff] }
 0x47f   : > { %3880 = vmatpush.msra.mxu2 %v6590_v20  ;;  %3646 = vmatpush.msra.mxu0 %v6601_v37 }
 0x480   : > { %3707 = vmatpush.msra.mxu1 %v6525_v46  ;;  %3989 = vmatpush.msra.mxu3 %v6675_v23  ;;  %v3282_v23 = vsel %vm3281_vm1, %v3277_v30, %v7465_v24  ;;  %v7467_v30 = vld [vmem:[#allocation15_spill] sm:$0xff] }
 0x481   : > { %3882 = vmatpush.msra.mxu2 %v6625_v50  ;;  %3650 = vmatpush.msra.mxu0 %v6636_v35 }
 0x482   : > { %3709 = vmatpush.msra.mxu1 %v6556_v58  ;;  %3995 = vmatpush.msra.mxu3 %v6708_v8  ;;  %v3234_v8 = vpop.permute.xlu0 %3233 }
 0x483   : > { %3884 = vmatpush.msra.mxu2 %v6657_v34  ;;  %3654 = vmatpush.msra.mxu0 %v6668_v63 }
 0x484   : > { %3711 = vmatpush.msra.mxu1 %v6590_v20  ;;  %4001 = vmatpush.msra.mxu3 %v6741_v33  ;;  %v3287_v33 = vsel %vm3286_vm2, %v3282_v23, %v7466_v27 }
 0x485   : > { %3886 = vmatpush.msra.mxu2 %v7462_v41  ;;  %3658 = vmatpush.msra.mxu0 %v6696_v49  ;;  %v3292_v40 = vsel %vm3291_vm3, %v3287_v33, %v6704_v61 }
 0x486   : > { %3713 = vmatpush.msra.mxu1 %v6625_v50  ;;  %4007 = vmatpush.msra.mxu3 %v6767_v60  ;;  %v3297_v48 = vsel %vm3296_vm4, %v3292_v40, %v3234_v8 }
 0x487   : > { %3888 = vmatpush.msra.mxu2 %v6719_v14  ;;  %3662 = vmatpush.msra.mxu0 %v6733_v1 }
 0x488   : > { %3715 = vmatpush.msra.mxu1 %v6657_v34  ;;  %4013 = vmatpush.msra.mxu3 %v6816_v51 }
 0x489   : > { %3890 = vmatpush.msra.mxu2 %v6748_v4  ;;  %3666 = vmatpush.msra.mxu0 %v6763_v15 }
 0x48a   : > { %3717 = vmatpush.msra.mxu1 %v7462_v41  ;;  %4019 = vmatpush.msra.mxu3 %v3464_v55  ;;  %v3250_v60 = vpop.permute.xlu1 %3249 }
 0x48b   : > { %3892 = vmatpush.msra.mxu2 %v6777_v17  ;;  %3670 = vmatpush.msra.mxu0 %v6797_v22  ;;  %v3302_v51 = vsel %vm3301_vm5, %v3297_v48, %v3250_v60 }
 0x48c   : > { %3719 = vmatpush.msra.mxu1 %v6719_v14  ;;  %4025 = vmatpush.msra.mxu3 %v3470_v29  ;;  %v6923_v29 = vpop.permute.xlu0 %3239 }
 0x48d   : > { %3894 = vmatpush.msra.mxu2 %v6793_v0  ;;  %3674 = vmatpush.msra.mxu0 %v6809_v10 }
 0x48e   : > { %3721 = vmatpush.msra.mxu1 %v6748_v4 }
 0x48f   : > { %3896 = vmatpush.msra.mxu2 %v6802_v18  ;;  %3678 = vmatpush.msra.mxu0 %v6827_v6 }
 0x490   : > { %3723 = vmatpush.msra.mxu1 %v6777_v17 }
 0x492   : > { %v3266_v44 = vpop.permute.xlu2 %3265  ;;  %3725 = vmatpush.msra.mxu1 %v6793_v0 }
 0x493   : > { %v3307_v16 = vsel %vm3306_vm6, %v3302_v51, %v3266_v44 }
 0x494   : > { %v6915_v55 = vand.u32 4294901760, %v3307_v16  ;;  %3727 = vmatpush.msra.mxu1 %v6802_v18 }
 0x496   : > { %v3344_v61 = vsub.f32 %v3307_v16, %v6915_v55  ;;  %3473 = vmatmul.f32.vlgmr.msrb.gmra.mxu1 %v6915_v55 }
 0x497   : > { %4113 = vmatpush.msrb.mxu1 %v6371_v13 }
 0x498   : > { %v3345_v43 = vand.u32 4294901760, %v3344_v61  ;;  %3539 = vmatmul.f32.vlgmr.msrb.gmra.mxu2 %v3344_v61 }
 0x499   : > { %4115 = vmatpush.msrb.mxu1 %v6405_v28  ;;  %4172 = vmatpush.msrb.mxu2 %v6383_v56  ;;  %v7468_v56 = vld [vmem:[#allocation14_spill] sm:$0xff] }
 0x49a   : > { %v3346_v52 = vsub.f32 %v3344_v61, %v3345_v43  ;;  %3593 = vmatmul.f32.vlgmr.msrb.gmra.mxu3 %v3345_v43  ;;  %v7480_v43 = vld [vmem:[#allocation12_spill] sm:$0xff] }
 0x49b   : > { %4117 = vmatpush.msrb.mxu1 %v6439_v19  ;;  %4251 = vmatpush.msrb.mxu3 %v6371_v13  ;;  %v6937_v13 = vpop.permute.xlu2 %3803 }
 0x49c   : > { %v3347_v7 = vand.u32 4294901760, %v3346_v52  ;;  %4176 = vmatpush.msrb.mxu2 %v6419_v11  ;;  %v6939_v11 = vpop.permute.xlu0 %3253 }
 0x49d   : > { %4119 = vmatpush.msrb.mxu1 %v6473_v26  ;;  %4253 = vmatpush.msrb.mxu3 %v6405_v28  ;;  %v7469_v28 = vld [vmem:[#allocation17_spill] sm:$0xff] }
 0x49e   : > { %3348 = vmatmul.f32.vlgmr.msrb.gmra.mxu0 %v3347_v7  ;;  %4180 = vmatpush.msrb.mxu2 %v6451_v57  ;;  %v7471_v57 = vld [vmem:[#allocation19_spill] sm:$0xff] }
 0x49f   : > { %4045 = vmatpush.msrb.mxu0 %v7467_v30  ;;  %4121 = vmatpush.msrb.mxu1 %v6499_v42 }
 0x4a0   : > { %4255 = vmatpush.msrb.mxu3 %v6439_v19  ;;  %4184 = vmatpush.msrb.mxu2 %v6486_v32  ;;  %v7470_v19 = vld [vmem:[#allocation16_spill] sm:$0xff] }
 0x4a1   : > { %4048 = vmatpush.msrb.mxu0 %v7468_v56  ;;  %4123 = vmatpush.msrb.mxu1 %v6525_v46 }
 0x4a2   : > { %4257 = vmatpush.msrb.mxu3 %v6473_v26  ;;  %4188 = vmatpush.msrb.mxu2 %v6508_v53  ;;  %v7472_v26 = vld [vmem:[#allocation21_spill] sm:$0xff] }
 0x4a3   : > { %4051 = vmatpush.msrb.mxu0 %v7469_v28  ;;  %4125 = vmatpush.msrb.mxu1 %v6556_v58  ;;  %v6961_v53 = vpop.permute.xlu2 %3757 }
 0x4a4   : > { %4259 = vmatpush.msrb.mxu3 %v6499_v42  ;;  %4192 = vmatpush.msrb.mxu2 %v6536_v62  ;;  %v7473_v42 = vld [vmem:[#allocation20_spill] sm:$0xff]  ;;  %v7475_v62 = vld [vmem:[#allocation27_spill] sm:$0xff] }
 0x4a5   : > { %4054 = vmatpush.msrb.mxu0 %v7470_v19  ;;  %4127 = vmatpush.msrb.mxu1 %v6590_v20 }
 0x4a6   : > { %4261 = vmatpush.msrb.mxu3 %v6525_v46  ;;  %4196 = vmatpush.msrb.mxu2 %v6567_v25  ;;  %v7474_v46 = vld [vmem:[#allocation22_spill] sm:$0xff] }
 0x4a7   : > { %4057 = vmatpush.msrb.mxu0 %v7471_v57  ;;  %4129 = vmatpush.msrb.mxu1 %v6625_v50 }
 0x4a8   : > { %4263 = vmatpush.msrb.mxu3 %v6556_v58  ;;  %4200 = vmatpush.msrb.mxu2 %v6601_v37  ;;  %v7476_v58 = vld [vmem:[#allocation24_spill] sm:$0xff]  ;;  %v7477_v37 = vld [vmem:[#allocation26_spill] sm:$0xff] }
 0x4a9   : > { %4060 = vmatpush.msrb.mxu0 %v7472_v26  ;;  %4131 = vmatpush.msrb.mxu1 %v6657_v34  ;;  %v3293_v25 = vsel %vm3291_vm3, %v7476_v58, %v6874_v38 }
 0x4aa   : > { %v3826_v32 = vpop.permute.xlu0 %3825  ;;  %4265 = vmatpush.msrb.mxu3 %v6590_v20  ;;  %4204 = vmatpush.msrb.mxu2 %v6636_v35  ;;  %v3298_v20 = vsel %vm3296_vm4, %v3293_v25, %v6878_v9  ;;  %v3256_v35 = vpop.permute.xlu1 %3255 }
 0x4ab   : > { %4063 = vmatpush.msrb.mxu0 %v7473_v42  ;;  %4133 = vmatpush.msrb.mxu1 %v7462_v41  ;;  %v3272_v38 = vpop.permute.xlu2 %3271 }
 0x4ac   : > { %4267 = vmatpush.msrb.mxu3 %v6625_v50  ;;  %4208 = vmatpush.msrb.mxu2 %v6668_v63  ;;  %v3303_v50 = vsel %vm3301_vm5, %v3298_v20, %v6886_v36 }
 0x4ad   : > { %4066 = vmatpush.msrb.mxu0 %v7474_v46  ;;  %4135 = vmatpush.msrb.mxu1 %v6719_v14 }
 0x4ae   : > { %4269 = vmatpush.msrb.mxu3 %v6657_v34  ;;  %4212 = vmatpush.msrb.mxu2 %v6696_v49  ;;  %v7478_v49 = vld [vmem:[#allocation31_spill] sm:$0xff] }
 0x4af   : > { %4069 = vmatpush.msrb.mxu0 %v7475_v62  ;;  %4137 = vmatpush.msrb.mxu1 %v6748_v4 }
 0x4b0   : > { %4271 = vmatpush.msrb.mxu3 %v7462_v41  ;;  %4216 = vmatpush.msrb.mxu2 %v6733_v1 }
 0x4b1   : > { %4072 = vmatpush.msrb.mxu0 %v7477_v37  ;;  %4139 = vmatpush.msrb.mxu1 %v6777_v17 }
 0x4b2   : > { %v3268_v34 = vpop.permute.xlu0 %3267  ;;  %4273 = vmatpush.msrb.mxu3 %v6719_v14  ;;  %4220 = vmatpush.msrb.mxu2 %v6763_v15  ;;  %v7479_v15 = vld [vmem:[#allocation23_spill] sm:$0xff] }
 0x4b3   : > { %v3308_v63 = vsel %vm3306_vm6, %v3303_v50, %v3268_v34  ;;  %4075 = vmatpush.msrb.mxu0 %v7478_v49  ;;  %4141 = vmatpush.msrb.mxu1 %v6793_v0  ;;  %v3289_v9 = vsel %vm3286_vm2, %v7479_v15, %v6706_v59  ;;  %v3794_v44 = vpop.permute.xlu2 %3793  ;;  %v7481_v49 = vld [vmem:[#allocation13_spill] sm:$0xff] }
 0x4b4   : > { %v6987_v1 = vand.u32 4294901760, %v3308_v63  ;;  %4275 = vmatpush.msrb.mxu3 %v6748_v4  ;;  %4224 = vmatpush.msrb.mxu2 %v6797_v22  ;;  %v3300_v4 = vsel %vm3296_vm4, %v6722_v31, %v6923_v29  ;;  %v3839_v29 = vsel %vm528_vm0, %v6961_v53, %v7480_v43 }
 0x4b5   : > { %4078 = vmatpush.msrb.mxu0 %v6727_v12  ;;  %4143 = vmatpush.msrb.mxu1 %v6802_v18  ;;  %v3294_v12 = vsel %vm3291_vm3, %v3289_v9, %v6775_v39  ;;  %v3305_v22 = vsel %vm3301_vm5, %v3300_v4, %v3256_v35 }
 0x4b6   : > { %v3352_v14 = vsub.f32 %v3308_v63, %v6987_v1  ;;  %3477 = vmatmul.f32.gmra.mxu1 %v6987_v1  ;;  %4277 = vmatpush.msrb.mxu3 %v6777_v17  ;;  %v3299_v59 = vsel %vm3296_vm4, %v3294_v12, %v6791_v21  ;;  %v3310_v17 = vsel %vm3306_vm6, %v3305_v22, %v3272_v38 }
 0x4b7   : > { %4081 = vmatpush.msrb.mxu0 %v6753_v54  ;;  %4228 = vmatpush.msrb.mxu2 %v6809_v10  ;;  %v3304_v31 = vsel %vm3301_vm5, %v3299_v59, %v6939_v11  ;;  %v3861_v10 = vsel %vm3306_vm6, %v6836_v3, %v3826_v32  ;;  %v7020_v21 = vand.u32 4294901760, %v3310_v17 }
 0x4b8   : > { %3544 = vmatmul.f32.gmra.mxu2 %v3352_v14  ;;  %v3353_v41 = vand.u32 4294901760, %v3352_v14  ;;  %4279 = vmatpush.msrb.mxu3 %v6793_v0  ;;  %v7025_v24 = vand.u32 4294901760, %v3861_v10 }
 0x4b9   : > { %4084 = vmatpush.msrb.mxu0 %v6782_v2  ;;  %4232 = vmatpush.msrb.mxu2 %v6827_v6  ;;  %v3368_v3 = vsub.f32 %v3310_v17, %v7020_v21 }
 0x4ba   : > { %v3270_v54 = vpop.permute.xlu1 %3269  ;;  %3599 = vmatmul.f32.gmra.mxu3 %v3353_v41  ;;  %v3354_v39 = vsub.f32 %v3352_v14, %v3353_v41  ;;  %v7034_v8 = vsub.f32 %v3861_v10, %v7025_v24 }
 0x4bb   : > { %v3309_v0 = vsel %vm3306_vm6, %v3304_v31, %v3270_v54  ;;  %v3816_v36 = vpop.permute.xlu0 %3815  ;;  %4281 = vmatpush.msrb.mxu3 %v6802_v18  ;;  %4087 = vmatpush.msrb.mxu0 %v6800_v45  ;;  %v3854_v45 = vsel %vm3296_vm4, %v6745_v47, %v6937_v13  ;;  %v3369_v51 = vand.u32 4294901760, %v3368_v3  ;;  %v3830_v26 = vpop.permute.xlu2 %3829 }
 0x4bc   : > { %v7022_v2 = vand.u32 4294901760, %v3309_v0  ;;  %v3355_v6 = vand.u32 4294901760, %v3354_v39  ;;  %v3899_v16 = vand.u32 4294901760, %v7034_v8 }
 0x4bd   : > { %4090 = vmatpush.msrb.mxu0 %v6812_v5  ;;  %v3858_v5 = vsel %vm3301_vm5, %v3854_v45, %v3816_v36  ;;  %v3370_v47 = vsub.f32 %v3368_v3, %v3369_v51 }
 0x4be   : > { %v3360_v23 = vsub.f32 %v3309_v0, %v7022_v2  ;;  %3356 = vmatmul.f32.gmra.mxu0 %v3355_v6  ;;  %3481 = vmatmul.f32.gmra.mxu1 %v7022_v2  ;;  %v3900_v52 = vsub.f32 %v7034_v8, %v3899_v16 }
 0x4bf   : > { %v3371_v28 = vand.u32 4294901760, %v3370_v47 }
 0x4c0   : > { %3549 = vmatmul.f32.gmra.mxu2 %v3360_v23  ;;  %v3361_v18 = vand.u32 4294901760, %v3360_v23  ;;  %v3901_v19 = vand.u32 4294901760, %v3900_v52 }
 0x4c2   : > { %v3828_v27 = vpop.permute.xlu1 %3827  ;;  %3605 = vmatmul.f32.gmra.mxu3 %v3361_v18  ;;  %v3362_v33 = vsub.f32 %v3360_v23, %v3361_v18 }
 0x4c3   : > { %v3862_v60 = vsel %vm3306_vm6, %v3858_v5, %v3828_v27  ;;  %v3770_v40 = vpop.permute.xlu0 %3769  ;;  %v3784_v35 = vpop.permute.xlu2 %3783 }
 0x4c4   : > { %v3363_v48 = vand.u32 4294901760, %v3362_v33  ;;  %v7039_v61 = vand.u32 4294901760, %v3862_v60  ;;  %v3843_v56 = vsel %vm3281_vm1, %v3839_v29, %v3770_v40 }
 0x4c6   : > { %3364 = vmatmul.f32.gmra.mxu0 %v3363_v48  ;;  %3485 = vmatmul.f32.gmra.mxu1 %v7020_v21  ;;  %v7049_v7 = vsub.f32 %v3862_v60, %v7039_v61 }
 0x4c8   : > { %3554 = vmatmul.f32.gmra.mxu2 %v3368_v3  ;;  %v3907_v57 = vand.u32 4294901760, %v7049_v7 }
 0x4ca   : > { %v3782_v30 = vpop.permute.xlu1 %3781  ;;  %3611 = vmatmul.f32.gmra.mxu3 %v3369_v51  ;;  %v3908_v46 = vsub.f32 %v7049_v7, %v3907_v57 }
 0x4cb   : > { %v3806_v13 = vpop.permute.xlu0 %3805  ;;  %v3847_v11 = vsel %vm3286_vm2, %v3843_v56, %v3782_v30  ;;  %v3820_v41 = vpop.permute.xlu2 %3819 }
 0x4cc   : > { %v3851_v32 = vsel %vm3291_vm3, %v3847_v11, %v3794_v44  ;;  %v3909_v37 = vand.u32 4294901760, %v3908_v46 }
 0x4cd   : > { %v3855_v42 = vsel %vm3296_vm4, %v3851_v32, %v3806_v13 }
 0x4ce   : > { %3372 = vmatmul.f32.gmra.mxu0 %v3371_v28  ;;  %3729 = vmatmul.f32.vlgmr.msra.gmra.mxu1 %v6915_v55 }
 0x4d0   : > { %3902 = vmatmul.f32.vlgmr.msra.gmra.mxu2 %v3901_v19 }
 0x4d2   : > { %v3818_v53 = vpop.permute.xlu1 %3817  ;;  %4027 = vmatmul.f32.vlgmr.msra.gmra.mxu3 %v7025_v24 }
 0x4d3   : > { %v3859_v62 = vsel %vm3301_vm5, %v3855_v42, %v3818_v53  ;;  %v3760_v58 = vpop.permute.xlu0 %3759 }
 0x4d4   : > { %v3863_v25 = vsel %vm3306_vm6, %v3859_v62, %v3830_v26  ;;  %v3840_v38 = vsel %vm528_vm0, %v3760_v58, %v7481_v49 }
 0x4d5   : > { %v3913_v20 = vand.u32 4294901760, %v3863_v25 }
 0x4d6   : > { %3680 = vmatmul.f32.vlgmr.msra.gmra.mxu0 %v6915_v55  ;;  %3733 = vmatmul.f32.gmra.mxu1 %v6987_v1 }
 0x4d7   : > { %v3914_v50 = vsub.f32 %v3863_v25, %v3913_v20 }
 0x4d8   : > { %3910 = vmatmul.f32.gmra.mxu2 %v3909_v37 }
 0x4d9   : > { %v3915_v34 = vand.u32 4294901760, %v3914_v50 }
 0x4da   : > { %v3772_v63 = vpop.permute.xlu1 %3771  ;;  %4031 = vmatmul.f32.gmra.mxu3 %v7039_v61 }
 0x4db   : > { %v3796_v14 = vpop.permute.xlu0 %3795  ;;  %v3916_v15 = vsub.f32 %v3914_v50, %v3915_v34  ;;  %v3844_v9 = vsel %vm3281_vm1, %v3840_v38, %v3772_v63 }
 0x4dc   : > { %v3848_v55 = vsel %vm3286_vm2, %v3844_v9, %v3784_v35 }
 0x4dd   : > { %v3917_v4 = vand.u32 4294901760, %v3916_v15  ;;  %v3852_v12 = vsel %vm3291_vm3, %v3848_v55, %v3796_v14 }
 0x4de   : > { %3684 = vmatmul.f32.gmra.mxu0 %v6987_v1  ;;  %3737 = vmatmul.f32.gmra.mxu1 %v7022_v2 }
 0x4e0   : > { %3918 = vmatmul.f32.gmra.mxu2 %v3917_v4 }
 0x4e2   : > { %v3808_v22 = vpop.permute.xlu1 %3807  ;;  %4035 = vmatmul.f32.gmra.mxu3 %v3913_v20 }
 0x4e3   : > { %v3856_v59 = vsel %vm3296_vm4, %v3852_v12, %v3808_v22  ;;  %v3832_v17 = vpop.permute.xlu0 %3831 }
 0x4e4   : > { %v3860_v31 = vsel %vm3301_vm5, %v3856_v59, %v3820_v41 }
 0x4e5   : > { %v3864_v54 = vsel %vm3306_vm6, %v3860_v31, %v3832_v17 }
 0x4e6   : > { %v3921_v39 = vand.u32 4294901760, %v3864_v54  ;;  %3688 = vmatmul.f32.gmra.mxu0 %v7022_v2  ;;  %3741 = vmatmul.f32.gmra.mxu1 %v7020_v21 }
 0x4e8   : > { %v3922_v1 = vsub.f32 %v3864_v54, %v3921_v39 }
 0x4ea   : > { %4039 = vmatmul.f32.gmra.mxu3 %v3921_v39  ;;  %v3923_v10 = vand.u32 4294901760, %v3922_v1 }
 0x4ec   : > { %v3924_v0 = vsub.f32 %v3922_v1, %v3923_v10 }
 0x4ee   : > { %3692 = vmatmul.f32.gmra.mxu0 %v7020_v21  ;;  %4147 = vmatmul.f32.vlgmr.msrb.gmra.mxu1 %v3899_v16  ;;  %v3925_v36 = vand.u32 4294901760, %v3924_v0 }
 0x4f0   : > { %3926 = vmatmul.f32.gmra.mxu2 %v3925_v36 }
 0x4f2   : > { %4283 = vmatmul.f32.vlgmr.msrb.gmra.mxu3 %v7025_v24 }
 0x4f6   : > { %4093 = vmatmul.f32.vlgmr.msrb.gmra.mxu0 %v7034_v8  ;;  %4153 = vmatmul.f32.gmra.mxu1 %v3907_v57 }
 0x4f8   : > { %4234 = vmatmul.f32.vlgmr.msrb.gmra.mxu2 %v7025_v24 }
 0x4fa   : > { %4287 = vmatmul.f32.gmra.mxu3 %v7039_v61 }
 0x4fe   : > { %4098 = vmatmul.f32.gmra.mxu0 %v7049_v7  ;;  %4159 = vmatmul.f32.gmra.mxu1 %v3915_v34 }
 0x500   : > { %4238 = vmatmul.f32.gmra.mxu2 %v7039_v61 }
 0x502   : > { %4291 = vmatmul.f32.gmra.mxu3 %v3913_v20 }
 0x506   : > { %4103 = vmatmul.f32.gmra.mxu0 %v3914_v50  ;;  %4165 = vmatmul.f32.gmra.mxu1 %v3923_v10 }
 0x508   : > { %4242 = vmatmul.f32.gmra.mxu2 %v3913_v20 }
 0x50a   : > { %4295 = vmatmul.f32.gmra.mxu3 %v3921_v39 }
 0x50e   : > { %4108 = vmatmul.f32.gmra.mxu0 %v3922_v1 }
 0x510   : > { %4246 = vmatmul.f32.gmra.mxu2 %v3921_v39 }
 0x513   : > { %v3474_v21 = vpop.f32.mrf.mxu1 }
 0x51b   : > { %v3349_v2 = vpop.f32.mrf.mxu0  ;;  %v3540_v23 = vpop.f32.mrf.mxu2 }
 0x51c   : > { %v3475_v40 = vadd.f32 %v3474_v21, %v3349_v2 }
 0x51d   : > { %v3594_v24 = vpop.f32.mrf.mxu3 }
 0x51e   : > { %v3541_v61 = vadd.f32 %v3540_v23, %v3475_v40 }
 0x520   : > { %v3595_v47 = vadd.f32 %v3594_v24, %v3541_v61 }
 0x533   : > { %v3478_v6 = vpop.f32.mrf.mxu1 }
 0x53b   : > { %v3357_v3 = vpop.f32.mrf.mxu0  ;;  %v3482_v18 = vpop.f32.mrf.mxu1 }
 0x53c   : > { %v3545_v45 = vpop.f32.mrf.mxu2  ;;  %v3479_v43 = vadd.f32 %v3478_v6, %v3357_v3 }
 0x53d   : > { %v3600_v8 = vpop.f32.mrf.mxu3 }
 0x53e   : > { %v3546_v56 = vadd.f32 %v3545_v45, %v3479_v43 }
 0x540   : > { %v3601_v28 = vadd.f32 %v3600_v8, %v3546_v56 }
 0x543   : > { %v3365_v5 = vpop.f32.mrf.mxu0  ;;  %v3486_v27 = vpop.f32.mrf.mxu1 }
 0x544   : > { %v3550_v33 = vpop.f32.mrf.mxu2  ;;  %v3483_v19 = vadd.f32 %v3482_v18, %v3365_v5 }
 0x545   : > { %v3606_v60 = vpop.f32.mrf.mxu3 }
 0x546   : > { %v3551_v42 = vadd.f32 %v3550_v33, %v3483_v19 }
 0x548   : > { %v3607_v58 = vadd.f32 %v3606_v60, %v3551_v42 }
 0x54b   : > { %v3373_v48 = vpop.f32.mrf.mxu0  ;;  %v3730_v51 = vpop.f32.mrf.mxu1 }
 0x54c   : > { %v3555_v44 = vpop.f32.mrf.mxu2  ;;  %v3487_v25 = vadd.f32 %v3486_v27, %v3373_v48 }
 0x54d   : > { %v3612_v16 = vpop.f32.mrf.mxu3 }
 0x54e   : > { %v3556_v35 = vadd.f32 %v3555_v44, %v3487_v25 }
 0x550   : > { %v3613_v49 = vadd.f32 %v3612_v16, %v3556_v35 }
 0x553   : > { %v3681_v29 = vpop.f32.mrf.mxu0  ;;  %v3734_v7 = vpop.f32.mrf.mxu1 }
 0x554   : > { %v3682_v52 = vadd.f32 %v3681_v29, %v3595_v47  ;;  %v3903_v11 = vpop.f32.mrf.mxu2 }
 0x555   : > { %v4028_v30 = vpop.f32.mrf.mxu3 }
 0x556   : > { %v3731_v13 = vadd.f32 %v3730_v51, %v3682_v52  ;;  %v4029_v41 = vadd.f32 %v4028_v30, %v3903_v11 }
 0x558   : > { %3745 = vst [vmem:[%s7090_s29] sm:$0xff] %v3731_v13 }
 0x55b   : > { %v3685_v57 = vpop.f32.mrf.mxu0  ;;  %v3738_v46 = vpop.f32.mrf.mxu1 }
 0x55c   : > { %v3686_v26 = vadd.f32 %v3685_v57, %v3601_v28  ;;  %v3911_v62 = vpop.f32.mrf.mxu2 }
 0x55d   : > { %v4032_v32 = vpop.f32.mrf.mxu3 }
 0x55e   : > { %v3735_v53 = vadd.f32 %v3734_v7, %v3686_v26  ;;  %v4033_v1 = vadd.f32 %v4032_v32, %v3911_v62 }
 0x560   : > { %3746 = vst [vmem:[%s7090_s29 + $0x8] sm:$0xff] %v3735_v53 }
 0x563   : > { %v3689_v20 = vpop.f32.mrf.mxu0  ;;  %v3742_v63 = vpop.f32.mrf.mxu1 }
 0x564   : > { %v3690_v37 = vadd.f32 %v3689_v20, %v3607_v58  ;;  %v3919_v38 = vpop.f32.mrf.mxu2 }
 0x565   : > { %v4036_v50 = vpop.f32.mrf.mxu3 }
 0x566   : > { %v3739_v34 = vadd.f32 %v3738_v46, %v3690_v37  ;;  %v4037_v3 = vadd.f32 %v4036_v50, %v3919_v38 }
 0x568   : > { %3747 = vst [vmem:[%s7090_s29 + $0x10] sm:$0xff] %v3739_v34 }
 0x56b   : > { %v3693_v14 = vpop.f32.mrf.mxu0  ;;  %v4148_v55 = vpop.f32.mrf.mxu1 }
 0x56c   : > { %v3694_v15 = vadd.f32 %v3693_v14, %v3613_v49 }
 0x56d   : > { %v4040_v9 = vpop.f32.mrf.mxu3 }
 0x56e   : > { %v3743_v4 = vadd.f32 %v3742_v63, %v3694_v15 }
 0x570   : > { %3748 = vst [vmem:[%s7090_s29 + $0x18] sm:$0xff] %v3743_v4 }
 0x573   : > { %v3927_v12 = vpop.f32.mrf.mxu2  ;;  %v4094_v22 = vpop.f32.mrf.mxu0 }
 0x574   : > { %v4095_v59 = vadd.f32 %v4094_v22, %v4029_v41  ;;  %v4154_v0 = vpop.f32.mrf.mxu1  ;;  %v4041_v48 = vadd.f32 %v4040_v9, %v3927_v12 }
 0x575   : > { %v4284_v17 = vpop.f32.mrf.mxu3 }
 0x576   : > { %v4149_v31 = vadd.f32 %v4148_v55, %v4095_v59 }
 0x57b   : > { %v4099_v54 = vpop.f32.mrf.mxu0  ;;  %v4235_v39 = vpop.f32.mrf.mxu2 }
 0x57c   : > { %v4236_v10 = vadd.f32 %v4235_v39, %v4149_v31  ;;  %v4100_v36 = vadd.f32 %v4099_v54, %v4033_v1  ;;  %v4160_v5 = vpop.f32.mrf.mxu1 }
 0x57d   : > { %v4288_v2 = vpop.f32.mrf.mxu3 }
 0x57e   : > { %v4285_v21 = vadd.f32 %v4284_v17, %v4236_v10  ;;  %v4155_v6 = vadd.f32 %v4154_v0, %v4100_v36 }
 0x580   : > { %4471 = vst [vmem:[%s7090_s29 + $0x20] sm:$0xff] %v4285_v21 }
 0x583   : > { %v4104_v23 = vpop.f32.mrf.mxu0  ;;  %v4239_v24 = vpop.f32.mrf.mxu2 }
 0x584   : > { %v4240_v18 = vadd.f32 %v4239_v24, %v4155_v6  ;;  %v4105_v45 = vadd.f32 %v4104_v23, %v4037_v3  ;;  %v4166_v61 = vpop.f32.mrf.mxu1 }
 0x585   : > { %v4292_v27 = vpop.f32.mrf.mxu3 }
 0x586   : > { %v4289_v8 = vadd.f32 %v4288_v2, %v4240_v18  ;;  %v4161_v33 = vadd.f32 %v4160_v5, %v4105_v45 }
 0x588   : > { %4472 = vst [vmem:[%s7090_s29 + $0x28] sm:$0xff] %v4289_v8 }
 0x58b   : > { %v4109_v60 = vpop.f32.mrf.mxu0  ;;  %v4243_v40 = vpop.f32.mrf.mxu2 }
 0x58c   : > { %v4244_v51 = vadd.f32 %v4243_v40, %v4161_v33  ;;  %v4110_v44 = vadd.f32 %v4109_v60, %v4041_v48 }
 0x58d   : > { %v4296_v52 = vpop.f32.mrf.mxu3 }
 0x58e   : > { %v4293_v16 = vadd.f32 %v4292_v27, %v4244_v51  ;;  %v4167_v47 = vadd.f32 %v4166_v61, %v4110_v44 }
 0x590   : > { %4473 = vst [vmem:[%s7090_s29 + $0x30] sm:$0xff] %v4293_v16 }
 0x593   : > { %v4247_v43 = vpop.f32.mrf.mxu2 }
 0x594   : > { %v4248_v29 = vadd.f32 %v4247_v43, %v4167_v47 }
 0x596   : > { %v4297_v7 = vadd.f32 %v4296_v52, %v4248_v29 }
 0x598   : > { %4474 = vst [vmem:[%s7090_s29 + $0x38] sm:$0xff] %v4297_v7 }
 0x599 PF: > { %s15_s17 = sadd.s32 1, %s4714_s17   ;;  %s7482_s12 = smov %s4698_s13 }
 0x59a   : > { %p12_p2 = scmp.ge.s32.totalorder %s15_s17, 4   ;;  %s7483_s13 = smov %s4702_s14 }
 0x59b   : > { %s7484_s14 = smov %s4828_s26  ;;  %s7485_s15 = smov %s4710_s16 }
 0x59c   : > { %s7486_s16 = smov %s7488_s9  ;;  %14 = sbr.rel (!%p12_p2) target bundleno = 4 (0x4), region = 81 }
 0x5a1   :  { %4336 = vsyncpa [#allocation3], 1 }
 0x5a2   :  { %4338 = vsyncpa [#allocation3 + $0x1], 1 }
 0x5a3   :  { %4339 = vsyncpa [#allocation5], 1 }

</bundles_post_ra>
